<compile_context>
chip_gen: v7x
topology: tpu7x:2x2x1
jax: 0.10.0
libtpu: 0.0.40
codegen_flags: <defaults>
</compile_context>

<pallas_src>
import jax
import jax.numpy as jnp
import numpy as np
from jax import lax
from jax.experimental import pallas as pl
from jax.experimental.pallas import tpu as pltpu


NCLS = 10      # real number of classes
NPAD = 128     # fc2 output padded to a full 128-lane vreg width


def _round_up(x, m):
    return ((x + m - 1) // m) * m


# ----------------------------------------------------------------------------
# Kernel 1: conv1 as an M-tiled matmul with fused bias + ReLU.
# Single K block (K = 9) -> no accumulator scratch; write output directly.
# ----------------------------------------------------------------------------
def _conv1_kernel(p_ref, w_ref, b_ref, o_ref):
    y = jnp.dot(p_ref[...], w_ref[...], preferred_element_type=jnp.float32)
    o_ref[...] = jnp.maximum(y + b_ref[...], 0.0).astype(o_ref.dtype)


def conv1_matmul(p, w, b, *, tm=512):
    """relu(p @ w + b). p: (M, 9) bf16, w: (9, 32) bf16, b: (1, 32) f32."""
    M, K = p.shape
    _, C = w.shape
    tm = min(tm, _round_up(M, 8))
    Mp = _round_up(M, tm)
    if Mp != M:                                   # zero rows -> relu(b), sliced off
        p = jnp.pad(p, ((0, Mp - M), (0, 0)))
    out = pl.pallas_call(
        _conv1_kernel,
        out_shape=jax.ShapeDtypeStruct((Mp, C), jnp.bfloat16),
        grid_spec=pltpu.PrefetchScalarGridSpec(
            num_scalar_prefetch=0,
            grid=(Mp // tm,),
            in_specs=[
                pl.BlockSpec((tm, K), lambda m: (m, 0)),
                pl.BlockSpec((K, C), lambda m: (0, 0)),
                pl.BlockSpec((1, C), lambda m: (0, 0)),
            ],
            out_specs=pl.BlockSpec((tm, C), lambda m: (m, 0)),
        ),
        compiler_params=pltpu.CompilerParams(
            dimension_semantics=("parallel",)),
    )(p, w, b)
    return out[:M]


# ----------------------------------------------------------------------------
# Kernel 2: fused conv2 (as 9 shifted matmuls) + bias + ReLU + 2x2 maxpool,
# one image per grid step.  No im2col materialization in HBM; the pre-pool
# (24,24,64) activation never leaves VMEM.
# ----------------------------------------------------------------------------
def _conv2_pool_kernel(h1_ref, w2_ref, b2_ref, o_ref, h1f_ref, row_ref):
    # h1_ref : (26, 26, 32) bf16   one image, channels in lanes
    # w2_ref : (9, 32, 64)  f32    tap-major conv2 weights
    # b2_ref : (1, 64)      f32
    # o_ref  : (12, 12, 64) bf16   pooled output, one image
    # h1f_ref: (26, 26, 32) f32    VMEM scratch (f32 copy => clean slicing/reshape)
    # row_ref: (12, 24, 64) f32    VMEM scratch (H-pooled rows)
    h1f_ref[...] = h1_ref[...].astype(jnp.float32)

    acc = jnp.zeros((576, 64), jnp.float32)
    for t in range(9):                            # 3x3 taps, fully unrolled
        i, j = divmod(t, 3)
        win = h1f_ref[pl.ds(i, 24), pl.ds(j, 24), :]          # (24, 24, 32)
        acc = acc + jnp.dot(win.reshape(576, 32), w2_ref[t],
                            preferred_element_type=jnp.float32)

    y = jnp.maximum(acc + b2_ref[...], 0.0).reshape(24, 24, 64)
    # 2x2 maxpool: H pairs reduce over a leading dim (cheap); W pairs via
    # strided sublane loads from the small VMEM scratch.
    row_ref[...] = jnp.max(y.reshape(12, 2, 24, 64), axis=1)  # (12, 24, 64)
    o_ref[...] = jnp.maximum(row_ref[:, pl.ds(0, 12, 2), :],
                             row_ref[:, pl.ds(1, 12, 2), :]).astype(o_ref.dtype)


def conv2_relu_pool(h1, w2, b2):
    N = h1.shape[0]
    return pl.pallas_call(
        _conv2_pool_kernel,
        out_shape=jax.ShapeDtypeStruct((N, 12, 12, 64), jnp.bfloat16),
        grid_spec=pltpu.PrefetchScalarGridSpec(
            num_scalar_prefetch=0,
            grid=(N,),
            in_specs=[
                pl.BlockSpec((None, 26, 26, 32), lambda n: (n, 0, 0, 0)),
                pl.BlockSpec((9, 32, 64), lambda n: (0, 0, 0)),
                pl.BlockSpec((1, 64), lambda n: (0, 0)),
            ],
            out_specs=pl.BlockSpec((None, 12, 12, 64), lambda n: (n, 0, 0, 0)),
            scratch_shapes=[pltpu.VMEM((26, 26, 32), jnp.float32),
                            pltpu.VMEM((12, 24, 64), jnp.float32)],
        ),
        compiler_params=pltpu.CompilerParams(
            dimension_semantics=("parallel",)),
    )(h1, w2, b2)


# ----------------------------------------------------------------------------
# Kernel 3: fused FC head: fc1 (K-tiled, f32 accumulator) + ReLU + fc2
# (lane-padded to 128) + log_softmax in the last-K epilogue.
# grid = (M tiles, K tiles) with ("parallel", "arbitrary").
# ----------------------------------------------------------------------------
def _fc_head_kernel(a_ref, w1_ref, b1_ref, w2_ref, b2_ref, o_ref, acc_ref):
    k = pl.program_id(1)

    @pl.when(k == 0)
    def _():
        acc_ref[...] = jnp.zeros_like(acc_ref)

    acc_ref[...] += jnp.dot(a_ref[...], w1_ref[...],
                            preferred_element_type=jnp.float32)

    @pl.when(k == pl.num_programs(1) - 1)
    def _():
        h = jnp.maximum(acc_ref[...] + b1_ref[...], 0.0)            # fc1+ReLU
        logits = jnp.dot(h.astype(jnp.bfloat16), w2_ref[...],
                         preferred_element_type=jnp.float32) + b2_ref[...]
        m = jnp.max(logits, axis=-1, keepdims=True)
        z = logits - m                       # padded lanes carry -1e30 bias
        o_ref[...] = (z - jnp.log(jnp.sum(jnp.exp(z), axis=-1,
                                          keepdims=True))).astype(o_ref.dtype)


def fc_head(a, w1, b1, w2p, b2p, *, tm=256, tk=1152):
    M, K = a.shape
    H = w1.shape[1]
    NP = w2p.shape[1]
    tm = min(tm, _round_up(M, 8))
    Mp = _round_up(M, tm)
    if Mp != M:                                   # padded rows sliced off below
        a = jnp.pad(a, ((0, Mp - M), (0, 0)))
    if K % tk != 0:
        tk = K
    out = pl.pallas_call(
        _fc_head_kernel,
        out_shape=jax.ShapeDtypeStruct((Mp, NP), jnp.float32),
        grid_spec=pltpu.PrefetchScalarGridSpec(
            num_scalar_prefetch=0,
            grid=(Mp // tm, K // tk),
            in_specs=[
                pl.BlockSpec((tm, tk), lambda m, k: (m, k)),
                pl.BlockSpec((tk, H), lambda m, k: (k, 0)),
                pl.BlockSpec((1, H), lambda m, k: (0, 0)),
                pl.BlockSpec((H, NP), lambda m, k: (0, 0)),
                pl.BlockSpec((1, NP), lambda m, k: (0, 0)),
            ],
            out_specs=pl.BlockSpec((tm, NP), lambda m, k: (m, 0)),
            scratch_shapes=[pltpu.VMEM((tm, NP), jnp.float32)],
        ),
        compiler_params=pltpu.CompilerParams(
            dimension_semantics=("parallel", "arbitrary")),
    )(a.astype(jnp.bfloat16), w1, b1, w2p, b2p)
    return out[:M, :NCLS]


# ----------------------------------------------------------------------------
# Parameters (PyTorch shape conventions) + one-time weight layout preparation
# ----------------------------------------------------------------------------
def init_params(key):
    ks = jax.random.split(key, 8)

    def rnd(k, shape, scale):
        return jax.random.normal(k, shape, jnp.float32) * scale

    return {
        "conv1_w": rnd(ks[0], (32, 1, 3, 3), 1.0 / 3.0),             # OIHW
        "conv1_b": rnd(ks[1], (32,), 0.1),
        "conv2_w": rnd(ks[2], (64, 32, 3, 3), 1.0 / np.sqrt(288.0)),
        "conv2_b": rnd(ks[3], (64,), 0.1),
        "fc1_w":   rnd(ks[4], (128, 9216), 1.0 / np.sqrt(9216.0)),
        "fc1_b":   rnd(ks[5], (128,), 0.1),
        "fc2_w":   rnd(ks[6], (10, 128), 1.0 / np.sqrt(128.0)),
        "fc2_b":   rnd(ks[7], (10,), 0.1),
    }


def prepare_params(params):
    """Weight reshapes / transposes / padding done ONCE, outside the forward."""
    w1 = params["conv1_w"].transpose(2, 3, 1, 0).reshape(9, 32)      # (kh*kw*ci, co)
    w2 = params["conv2_w"].transpose(2, 3, 1, 0).reshape(9, 32, 64)  # tap-major
    # fc1 columns reordered from PyTorch's (C,H,W) flatten to our (H,W,C) flatten
    w_fc1 = (params["fc1_w"].reshape(128, 64, 12, 12)
             .transpose(0, 2, 3, 1).reshape(128, 9216).T)            # (9216, 128)
    w_fc2p = jnp.pad(params["fc2_w"].T, ((0, 0), (0, NPAD - NCLS)))  # (128, 128)
    b_fc2p = jnp.concatenate(
        [params["fc2_b"].astype(jnp.float32),
         jnp.full((NPAD - NCLS,), -1e30, jnp.float32)]).reshape(1, NPAD)
    return {
        "w1": w1.astype(jnp.bfloat16),
        "b1": params["conv1_b"].reshape(1, 32).astype(jnp.float32),
        "w2": w2.astype(jnp.float32),       # conv2 runs f32 in-kernel (tiny FLOPs)
        "b2": params["conv2_b"].reshape(1, 64).astype(jnp.float32),
        "w_fc1": w_fc1.astype(jnp.bfloat16),
        "b_fc1": params["fc1_b"].reshape(1, 128).astype(jnp.float32),
        "w_fc2p": w_fc2p.astype(jnp.bfloat16),
        "b_fc2p": b_fc2p,
    }


# ----------------------------------------------------------------------------
# Forward pass
# ----------------------------------------------------------------------------
def _im2col_3x3(x):
    """3x3 VALID patches; feature order (kh, kw, ci) matching the weight prep."""
    N, H, W, C = x.shape
    Ho, Wo = H - 2, W - 2
    cols = []
    for i in range(3):
        for j in range(3):
            cols.append(x[:, i:i + Ho, j:j + Wo, :])
    return jnp.concatenate(cols, axis=-1)                 # (N, Ho, Wo, 9*C)


def net_forward(prep, x_nchw):
    N = x_nchw.shape[0]
    x = jnp.transpose(x_nchw, (0, 2, 3, 1))               # NCHW -> NHWC (N,28,28,1)

    # conv1 + ReLU (im2col of the 1-channel input is negligible: 9*784 B/image)
    p1 = _im2col_3x3(x).reshape(N * 26 * 26, 9).astype(jnp.bfloat16)
    h1 = conv1_matmul(p1, prep["w1"], prep["b1"]).reshape(N, 26, 26, 32)

    # conv2 + ReLU + 2x2 maxpool fused per image (no im2col in HBM)
    h3 = conv2_relu_pool(h1, prep["w2"], prep["b2"])      # (N, 12, 12, 64) bf16

    # dropout1 / dropout2: identity in eval mode.

    # fc1 + ReLU + fc2 + log_softmax fused; the reshape is a free HBM bitcast.
    return fc_head(h3.reshape(N, 12 * 12 * 64), prep["w_fc1"], prep["b_fc1"],
                   prep["w_fc2p"], prep["b_fc2p"])        # (N, 10) f32


# ----------------------------------------------------------------------------
# Pure-JAX f32 reference (correctness check)
# ----------------------------------------------------------------------------
def net_reference(params, x_nchw):
    hi = lax.Precision.HIGHEST
    dn = ("NHWC", "HWIO", "NHWC")
    x = jnp.transpose(x_nchw, (0, 2, 3, 1))
    y = lax.conv_general_dilated(x, params["conv1_w"].transpose(2, 3, 1, 0),
                                 (1, 1), "VALID", dimension_numbers=dn,
                                 precision=hi) + params["conv1_b"]
    y = jax.nn.relu(y)
    y = lax.conv_general_dilated(y, params["conv2_w"].transpose(2, 3, 1, 0),
                                 (1, 1), "VALID", dimension_numbers=dn,
                                 precision=hi) + params["conv2_b"]
    y = jax.nn.relu(y)
    N = y.shape[0]
    y = y.reshape(N, 12, 2, 12, 2, 64).max(axis=(2, 4))
    w_fc1 = (params["fc1_w"].reshape(128, 64, 12, 12)
             .transpose(0, 2, 3, 1).reshape(128, 9216).T)
    y = jax.nn.relu(jnp.dot(y.reshape(N, 9216), w_fc1, precision=hi)
                    + params["fc1_b"])
    y = jnp.dot(y, params["fc2_w"].T, precision=hi) + params["fc2_b"]
    return jax.nn.log_softmax(y, axis=-1)


if __name__ == "__main__":
    key = jax.random.PRNGKey(0)
    pkey, xkey = jax.random.split(key)
    params = init_params(pkey)
    prep = prepare_params(params)            # weight layout prep done once
    # MNIST-style input: fc1's 9216 = 64*12*12 implies 1x28x28 images; batch=2
    x = jax.random.normal(xkey, (2, 1, 28, 28), jnp.float32)

    out = jax.block_until_ready(jax.jit(net_forward)(prep, x))
    ref = jax.block_until_ready(net_reference(params, x))

    assert out.shape == (2, 10)
    # bf16 MXU inputs (f32 accumulation) -> slightly looser tolerance than f32
    np.testing.assert_allclose(np.asarray(out), np.asarray(ref),
                               atol=5e-2, rtol=5e-2)
    np.testing.assert_allclose(np.exp(np.asarray(out)).sum(axis=1), 1.0,
                               atol=5e-3)
    print("KERNEL_OK")
</pallas_src>

<mosaic_0001>
module attributes {stable_mosaic.version = 11 : i64} {
  func.func @_conv1_kernel(%arg0: i32, %arg1: memref<512x9xbf16, #tpu.memory_space<vmem>>, %arg2: memref<9x32xbf16, #tpu.memory_space<vmem>>, %arg3: memref<1x32xf32, #tpu.memory_space<vmem>>, %arg4: memref<512x32xbf16, #tpu.memory_space<vmem>>) attributes {dimension_semantics = [#tpu.dimension_semantics<parallel>], iteration_bounds = array<i64: 3>, scalar_prefetch = 0 : i64, scratch_operands = 0 : i64, tpu.core_type = #tpu.core_type<tc>, window_params = [{transform_indices = @transform_0, window_bounds = array<i64: 512, 9>}, {pipeline_mode = #tpu.pipeline_mode<synchronous>, transform_indices = @transform_1, window_bounds = array<i64: 9, 32>}, {pipeline_mode = #tpu.pipeline_mode<synchronous>, transform_indices = @transform_2, window_bounds = array<i64: 1, 32>}, {transform_indices = @transform_3, window_bounds = array<i64: 512, 32>}]} {
    %c0 = arith.constant 0 : index
    %c0_0 = arith.constant 0 : index
    %0 = vector.load %arg1[%c0, %c0_0] : memref<512x9xbf16, #tpu.memory_space<vmem>>, vector<512x9xbf16>
    %c0_1 = arith.constant 0 : index
    %c0_2 = arith.constant 0 : index
    %1 = vector.load %arg2[%c0_1, %c0_2] : memref<9x32xbf16, #tpu.memory_space<vmem>>, vector<9x32xbf16>
    %cst = arith.constant dense<0.000000e+00> : vector<512x32xf32>
    %2 = tpu.matmul %0, %1, %cst {dimension_numbers = #tpu.dot_dimension_numbers<[1], [0], [0], [1], [0, 0, 1, 1], [], []>} : vector<512x9xbf16>, vector<9x32xbf16>, vector<512x32xf32> -> vector<512x32xf32>
    %c0_3 = arith.constant 0 : index
    %c0_4 = arith.constant 0 : index
    %3 = vector.load %arg3[%c0_3, %c0_4] : memref<1x32xf32, #tpu.memory_space<vmem>>, vector<1x32xf32>
    %4 = vector.broadcast %3 : vector<1x32xf32> to vector<512x32xf32>
    %5 = arith.addf %2, %4 : vector<512x32xf32>
    %cst_5 = arith.constant 0.000000e+00 : f32
    %6 = vector.broadcast %cst_5 : f32 to vector<512x32xf32>
    %7 = arith.maximumf %5, %6 : vector<512x32xf32>
    %8 = arith.truncf %7 : vector<512x32xf32> to vector<512x32xbf16>
    %c0_6 = arith.constant 0 : index
    %c0_7 = arith.constant 0 : index
    %9 = vector.load %arg4[%c0_6, %c0_7] : memref<512x32xbf16, #tpu.memory_space<vmem>>, vector<512x32xbf16>
    tpu.vector_store %arg4[%c0_6, %c0_7], %8 {strides = array<i32>} : memref<512x32xbf16, #tpu.memory_space<vmem>>, vector<512x32xbf16>,
    return
  }
  func.func @transform_0(%arg0: i32) -> (i32, i32) {
    %c0_i32 = arith.constant 0 : i32
    %c0_i32_0 = arith.constant 0 : i32
    return %arg0, %c0_i32 : i32, i32
  }
  func.func @transform_1(%arg0: i32) -> (i32, i32) {
    %c0_i32 = arith.constant 0 : i32
    %c0_i32_0 = arith.constant 0 : i32
    %c0_i32_1 = arith.constant 0 : i32
    return %c0_i32, %c0_i32_0 : i32, i32
  }
  func.func @transform_2(%arg0: i32) -> (i32, i32) {
    %c0_i32 = arith.constant 0 : i32
    %c0_i32_0 = arith.constant 0 : i32
    %c0_i32_1 = arith.constant 0 : i32
    return %c0_i32, %c0_i32_0 : i32, i32
  }
  func.func @transform_3(%arg0: i32) -> (i32, i32) {
    %c0_i32 = arith.constant 0 : i32
    %c0_i32_0 = arith.constant 0 : i32
    return %arg0, %c0_i32 : i32, i32
  }
}

module attributes {stable_mosaic.version = 11 : i64} {
  func.func @_conv2_pool_kernel(%arg0: i32, %arg1: memref<1x26x26x32xbf16, #tpu.memory_space<vmem>>, %arg2: memref<9x32x64xf32, #tpu.memory_space<vmem>>, %arg3: memref<1x64xf32, #tpu.memory_space<vmem>>, %arg4: memref<1x12x12x64xbf16, #tpu.memory_space<vmem>>, %arg5: memref<26x26x32xf32, #tpu.memory_space<vmem>>, %arg6: memref<12x24x64xf32, #tpu.memory_space<vmem>>) attributes {dimension_semantics = [#tpu.dimension_semantics<parallel>], iteration_bounds = array<i64: 2>, scalar_prefetch = 0 : i64, scratch_operands = 2 : i64, tpu.core_type = #tpu.core_type<tc>, window_params = [{transform_indices = @transform_0, window_bounds = array<i64: 1, 26, 26, 32>}, {pipeline_mode = #tpu.pipeline_mode<synchronous>, transform_indices = @transform_1, window_bounds = array<i64: 9, 32, 64>}, {pipeline_mode = #tpu.pipeline_mode<synchronous>, transform_indices = @transform_2, window_bounds = array<i64: 1, 64>}, {transform_indices = @transform_3, window_bounds = array<i64: 1, 12, 12, 64>}]} {
    %c0 = arith.constant 0 : index
    %c0_0 = arith.constant 0 : index
    %c0_1 = arith.constant 0 : index
    %c0_2 = arith.constant 0 : index
    %0 = vector.load %arg1[%c0, %c0_0, %c0_1, %c0_2] : memref<1x26x26x32xbf16, #tpu.memory_space<vmem>>, vector<1x26x26x32xbf16>
    %1 = vector.shape_cast %0 : vector<1x26x26x32xbf16> to vector<26x26x32xbf16>
    %2 = arith.extf %1 : vector<26x26x32xbf16> to vector<26x26x32xf32>
    %c0_3 = arith.constant 0 : index
    %c0_4 = arith.constant 0 : index
    %c0_5 = arith.constant 0 : index
    %3 = vector.load %arg5[%c0_3, %c0_4, %c0_5] : memref<26x26x32xf32, #tpu.memory_space<vmem>>, vector<26x26x32xf32>
    tpu.vector_store %arg5[%c0_3, %c0_4, %c0_5], %2 {strides = array<i32>} : memref<26x26x32xf32, #tpu.memory_space<vmem>>, vector<26x26x32xf32>,
    %cst = arith.constant 0.000000e+00 : f32
    %4 = vector.broadcast %cst : f32 to vector<576x64xf32>
    %c0_6 = arith.constant 0 : index
    %c0_7 = arith.constant 0 : index
    %c0_8 = arith.constant 0 : index
    %5 = vector.load %arg5[%c0_6, %c0_7, %c0_8] : memref<26x26x32xf32, #tpu.memory_space<vmem>>, vector<24x24x32xf32>
    %6 = vector.shape_cast %5 : vector<24x24x32xf32> to vector<576x32xf32>
    %c0_9 = arith.constant 0 : index
    %c0_10 = arith.constant 0 : index
    %c0_11 = arith.constant 0 : index
    %7 = vector.load %arg2[%c0_9, %c0_10, %c0_11] : memref<9x32x64xf32, #tpu.memory_space<vmem>>, vector<1x32x64xf32>
    %8 = vector.shape_cast %7 : vector<1x32x64xf32> to vector<32x64xf32>
    %cst_12 = arith.constant dense<0.000000e+00> : vector<576x64xf32>
    %9 = tpu.matmul %6, %8, %cst_12 {dimension_numbers = #tpu.dot_dimension_numbers<[1], [0], [0], [1], [0, 0, 1, 1], [], []>} : vector<576x32xf32>, vector<32x64xf32>, vector<576x64xf32> -> vector<576x64xf32>
    %10 = arith.addf %4, %9 : vector<576x64xf32>
    %c0_13 = arith.constant 0 : index
    %c1 = arith.constant 1 : index
    %c0_14 = arith.constant 0 : index
    %11 = vector.load %arg5[%c0_13, %c1, %c0_14] : memref<26x26x32xf32, #tpu.memory_space<vmem>>, vector<24x24x32xf32>
    %12 = vector.shape_cast %11 : vector<24x24x32xf32> to vector<576x32xf32>
    %c1_15 = arith.constant 1 : index
    %c0_16 = arith.constant 0 : index
    %c0_17 = arith.constant 0 : index
    %13 = vector.load %arg2[%c1_15, %c0_16, %c0_17] : memref<9x32x64xf32, #tpu.memory_space<vmem>>, vector<1x32x64xf32>
    %14 = vector.shape_cast %13 : vector<1x32x64xf32> to vector<32x64xf32>
    %cst_18 = arith.constant dense<0.000000e+00> : vector<576x64xf32>
    %15 = tpu.matmul %12, %14, %cst_18 {dimension_numbers = #tpu.dot_dimension_numbers<[1], [0], [0], [1], [0, 0, 1, 1], [], []>} : vector<576x32xf32>, vector<32x64xf32>, vector<576x64xf32> -> vector<576x64xf32>
    %16 = arith.addf %10, %15 : vector<576x64xf32>
    %c0_19 = arith.constant 0 : index
    %c2 = arith.constant 2 : index
    %c0_20 = arith.constant 0 : index
    %17 = vector.load %arg5[%c0_19, %c2, %c0_20] : memref<26x26x32xf32, #tpu.memory_space<vmem>>, vector<24x24x32xf32>
    %18 = vector.shape_cast %17 : vector<24x24x32xf32> to vector<576x32xf32>
    %c2_21 = arith.constant 2 : index
    %c0_22 = arith.constant 0 : index
    %c0_23 = arith.constant 0 : index
    %19 = vector.load %arg2[%c2_21, %c0_22, %c0_23] : memref<9x32x64xf32, #tpu.memory_space<vmem>>, vector<1x32x64xf32>
    %20 = vector.shape_cast %19 : vector<1x32x64xf32> to vector<32x64xf32>
    %cst_24 = arith.constant dense<0.000000e+00> : vector<576x64xf32>
    %21 = tpu.matmul %18, %20, %cst_24 {dimension_numbers = #tpu.dot_dimension_numbers<[1], [0], [0], [1], [0, 0, 1, 1], [], []>} : vector<576x32xf32>, vector<32x64xf32>, vector<576x64xf32> -> vector<576x64xf32>
    %22 = arith.addf %16, %21 : vector<576x64xf32>
    %c1_25 = arith.constant 1 : index
    %c0_26 = arith.constant 0 : index
    %c0_27 = arith.constant 0 : index
    %23 = vector.load %arg5[%c1_25, %c0_26, %c0_27] : memref<26x26x32xf32, #tpu.memory_space<vmem>>, vector<24x24x32xf32>
    %24 = vector.shape_cast %23 : vector<24x24x32xf32> to vector<576x32xf32>
    %c3 = arith.constant 3 : index
    %c0_28 = arith.constant 0 : index
    %c0_29 = arith.constant 0 : index
    %25 = vector.load %arg2[%c3, %c0_28, %c0_29] : memref<9x32x64xf32, #tpu.memory_space<vmem>>, vector<1x32x64xf32>
    %26 = vector.shape_cast %25 : vector<1x32x64xf32> to vector<32x64xf32>
    %cst_30 = arith.constant dense<0.000000e+00> : vector<576x64xf32>
    %27 = tpu.matmul %24, %26, %cst_30 {dimension_numbers = #tpu.dot_dimension_numbers<[1], [0], [0], [1], [0, 0, 1, 1], [], []>} : vector<576x32xf32>, vector<32x64xf32>, vector<576x64xf32> -> vector<576x64xf32>
    %28 = arith.addf %22, %27 : vector<576x64xf32>
    %c1_31 = arith.constant 1 : index
    %c1_32 = arith.constant 1 : index
    %c0_33 = arith.constant 0 : index
    %29 = vector.load %arg5[%c1_31, %c1_32, %c0_33] : memref<26x26x32xf32, #tpu.memory_space<vmem>>, vector<24x24x32xf32>
    %30 = vector.shape_cast %29 : vector<24x24x32xf32> to vector<576x32xf32>
    %c4 = arith.constant 4 : index
    %c0_34 = arith.constant 0 : index
    %c0_35 = arith.constant 0 : index
    %31 = vector.load %arg2[%c4, %c0_34, %c0_35] : memref<9x32x64xf32, #tpu.memory_space<vmem>>, vector<1x32x64xf32>
    %32 = vector.shape_cast %31 : vector<1x32x64xf32> to vector<32x64xf32>
    %cst_36 = arith.constant dense<0.000000e+00> : vector<576x64xf32>
    %33 = tpu.matmul %30, %32, %cst_36 {dimension_numbers = #tpu.dot_dimension_numbers<[1], [0], [0], [1], [0, 0, 1, 1], [], []>} : vector<576x32xf32>, vector<32x64xf32>, vector<576x64xf32> -> vector<576x64xf32>
    %34 = arith.addf %28, %33 : vector<576x64xf32>
    %c1_37 = arith.constant 1 : index
    %c2_38 = arith.constant 2 : index
    %c0_39 = arith.constant 0 : index
    %35 = vector.load %arg5[%c1_37, %c2_38, %c0_39] : memref<26x26x32xf32, #tpu.memory_space<vmem>>, vector<24x24x32xf32>
    %36 = vector.shape_cast %35 : vector<24x24x32xf32> to vector<576x32xf32>
    %c5 = arith.constant 5 : index
    %c0_40 = arith.constant 0 : index
    %c0_41 = arith.constant 0 : index
    %37 = vector.load %arg2[%c5, %c0_40, %c0_41] : memref<9x32x64xf32, #tpu.memory_space<vmem>>, vector<1x32x64xf32>
    %38 = vector.shape_cast %37 : vector<1x32x64xf32> to vector<32x64xf32>
    %cst_42 = arith.constant dense<0.000000e+00> : vector<576x64xf32>
    %39 = tpu.matmul %36, %38, %cst_42 {dimension_numbers = #tpu.dot_dimension_numbers<[1], [0], [0], [1], [0, 0, 1, 1], [], []>} : vector<576x32xf32>, vector<32x64xf32>, vector<576x64xf32> -> vector<576x64xf32>
    %40 = arith.addf %34, %39 : vector<576x64xf32>
    %c2_43 = arith.constant 2 : index
    %c0_44 = arith.constant 0 : index
    %c0_45 = arith.constant 0 : index
    %41 = vector.load %arg5[%c2_43, %c0_44, %c0_45] : memref<26x26x32xf32, #tpu.memory_space<vmem>>, vector<24x24x32xf32>
    %42 = vector.shape_cast %41 : vector<24x24x32xf32> to vector<576x32xf32>
    %c6 = arith.constant 6 : index
    %c0_46 = arith.constant 0 : index
    %c0_47 = arith.constant 0 : index
    %43 = vector.load %arg2[%c6, %c0_46, %c0_47] : memref<9x32x64xf32, #tpu.memory_space<vmem>>, vector<1x32x64xf32>
    %44 = vector.shape_cast %43 : vector<1x32x64xf32> to vector<32x64xf32>
    %cst_48 = arith.constant dense<0.000000e+00> : vector<576x64xf32>
    %45 = tpu.matmul %42, %44, %cst_48 {dimension_numbers = #tpu.dot_dimension_numbers<[1], [0], [0], [1], [0, 0, 1, 1], [], []>} : vector<576x32xf32>, vector<32x64xf32>, vector<576x64xf32> -> vector<576x64xf32>
    %46 = arith.addf %40, %45 : vector<576x64xf32>
    %c2_49 = arith.constant 2 : index
    %c1_50 = arith.constant 1 : index
    %c0_51 = arith.constant 0 : index
    %47 = vector.load %arg5[%c2_49, %c1_50, %c0_51] : memref<26x26x32xf32, #tpu.memory_space<vmem>>, vector<24x24x32xf32>
    %48 = vector.shape_cast %47 : vector<24x24x32xf32> to vector<576x32xf32>
    %c7 = arith.constant 7 : index
    %c0_52 = arith.constant 0 : index
    %c0_53 = arith.constant 0 : index
    %49 = vector.load %arg2[%c7, %c0_52, %c0_53] : memref<9x32x64xf32, #tpu.memory_space<vmem>>, vector<1x32x64xf32>
    %50 = vector.shape_cast %49 : vector<1x32x64xf32> to vector<32x64xf32>
    %cst_54 = arith.constant dense<0.000000e+00> : vector<576x64xf32>
    %51 = tpu.matmul %48, %50, %cst_54 {dimension_numbers = #tpu.dot_dimension_numbers<[1], [0], [0], [1], [0, 0, 1, 1], [], []>} : vector<576x32xf32>, vector<32x64xf32>, vector<576x64xf32> -> vector<576x64xf32>
    %52 = arith.addf %46, %51 : vector<576x64xf32>
    %c2_55 = arith.constant 2 : index
    %c2_56 = arith.constant 2 : index
    %c0_57 = arith.constant 0 : index
    %53 = vector.load %arg5[%c2_55, %c2_56, %c0_57] : memref<26x26x32xf32, #tpu.memory_space<vmem>>, vector<24x24x32xf32>
    %54 = vector.shape_cast %53 : vector<24x24x32xf32> to vector<576x32xf32>
    %c8 = arith.constant 8 : index
    %c0_58 = arith.constant 0 : index
    %c0_59 = arith.constant 0 : index
    %55 = vector.load %arg2[%c8, %c0_58, %c0_59] : memref<9x32x64xf32, #tpu.memory_space<vmem>>, vector<1x32x64xf32>
    %56 = vector.shape_cast %55 : vector<1x32x64xf32> to vector<32x64xf32>
    %cst_60 = arith.constant dense<0.000000e+00> : vector<576x64xf32>
    %57 = tpu.matmul %54, %56, %cst_60 {dimension_numbers = #tpu.dot_dimension_numbers<[1], [0], [0], [1], [0, 0, 1, 1], [], []>} : vector<576x32xf32>, vector<32x64xf32>, vector<576x64xf32> -> vector<576x64xf32>
    %58 = arith.addf %52, %57 : vector<576x64xf32>
    %c0_61 = arith.constant 0 : index
    %c0_62 = arith.constant 0 : index
    %59 = vector.load %arg3[%c0_61, %c0_62] : memref<1x64xf32, #tpu.memory_space<vmem>>, vector<1x64xf32>
    %60 = vector.broadcast %59 : vector<1x64xf32> to vector<576x64xf32>
    %61 = arith.addf %58, %60 : vector<576x64xf32>
    %cst_63 = arith.constant 0.000000e+00 : f32
    %62 = vector.broadcast %cst_63 : f32 to vector<576x64xf32>
    %63 = arith.maximumf %61, %62 : vector<576x64xf32>
    %64 = vector.shape_cast %63 : vector<576x64xf32> to vector<24x24x64xf32>
    %65 = vector.shape_cast %64 : vector<24x24x64xf32> to vector<12x2x24x64xf32>
    %cst_64 = arith.constant dense<0xFF800000> : vector<12x24x64xf32>
    %66 = vector.multi_reduction <maximumf>, %65, %cst_64 [1] : vector<12x2x24x64xf32> to vector<12x24x64xf32>
    %c0_65 = arith.constant 0 : index
    %c0_66 = arith.constant 0 : index
    %c0_67 = arith.constant 0 : index
    %67 = vector.load %arg6[%c0_65, %c0_66, %c0_67] : memref<12x24x64xf32, #tpu.memory_space<vmem>>, vector<12x24x64xf32>
    tpu.vector_store %arg6[%c0_65, %c0_66, %c0_67], %66 {strides = array<i32>} : memref<12x24x64xf32, #tpu.memory_space<vmem>>, vector<12x24x64xf32>,
    %c0_68 = arith.constant 0 : index
    %c0_69 = arith.constant 0 : index
    %c0_70 = arith.constant 0 : index
    %68 = tpu.strided_load %arg6[%c0_68, %c0_69, %c0_70] {strides = array<i32: 1, 2, 1>} : memref<12x24x64xf32, #tpu.memory_space<vmem>>, vector<12x12x64xf32>
    %c0_71 = arith.constant 0 : index
    %c1_72 = arith.constant 1 : index
    %c0_73 = arith.constant 0 : index
    %69 = tpu.strided_load %arg6[%c0_71, %c1_72, %c0_73] {strides = array<i32: 1, 2, 1>} : memref<12x24x64xf32, #tpu.memory_space<vmem>>, vector<12x12x64xf32>
    %70 = arith.maximumf %68, %69 : vector<12x12x64xf32>
    %71 = arith.truncf %70 : vector<12x12x64xf32> to vector<12x12x64xbf16>
    %c0_74 = arith.constant 0 : index
    %c0_75 = arith.constant 0 : index
    %c0_76 = arith.constant 0 : index
    %c0_77 = arith.constant 0 : index
    %72 = vector.load %arg4[%c0_74, %c0_75, %c0_76, %c0_77] : memref<1x12x12x64xbf16, #tpu.memory_space<vmem>>, vector<1x12x12x64xbf16>
    %73 = vector.shape_cast %72 : vector<1x12x12x64xbf16> to vector<12x12x64xbf16>
    %74 = vector.shape_cast %71 : vector<12x12x64xbf16> to vector<1x12x12x64xbf16>
    tpu.vector_store %arg4[%c0_74, %c0_75, %c0_76, %c0_77], %74 {strides = array<i32>} : memref<1x12x12x64xbf16, #tpu.memory_space<vmem>>, vector<1x12x12x64xbf16>,
    return
  }
  func.func @transform_0(%arg0: i32) -> (i32, i32, i32, i32) {
    %c0_i32 = arith.constant 0 : i32
    %c0_i32_0 = arith.constant 0 : i32
    %c0_i32_1 = arith.constant 0 : i32
    %c0_i32_2 = arith.constant 0 : i32
    return %arg0, %c0_i32, %c0_i32_0, %c0_i32_1 : i32, i32, i32, i32
  }
  func.func @transform_1(%arg0: i32) -> (i32, i32, i32) {
    %c0_i32 = arith.constant 0 : i32
    %c0_i32_0 = arith.constant 0 : i32
    %c0_i32_1 = arith.constant 0 : i32
    %c0_i32_2 = arith.constant 0 : i32
    return %c0_i32, %c0_i32_0, %c0_i32_1 : i32, i32, i32
  }
  func.func @transform_2(%arg0: i32) -> (i32, i32) {
    %c0_i32 = arith.constant 0 : i32
    %c0_i32_0 = arith.constant 0 : i32
    %c0_i32_1 = arith.constant 0 : i32
    return %c0_i32, %c0_i32_0 : i32, i32
  }
  func.func @transform_3(%arg0: i32) -> (i32, i32, i32, i32) {
    %c0_i32 = arith.constant 0 : i32
    %c0_i32_0 = arith.constant 0 : i32
    %c0_i32_1 = arith.constant 0 : i32
    %c0_i32_2 = arith.constant 0 : i32
    return %arg0, %c0_i32, %c0_i32_0, %c0_i32_1 : i32, i32, i32, i32
  }
}

module attributes {stable_mosaic.version = 11 : i64} {
  func.func @_fc_head_kernel(%arg0: i32, %arg1: i32, %arg2: memref<8x1152xbf16, #tpu.memory_space<vmem>>, %arg3: memref<1152x128xbf16, #tpu.memory_space<vmem>>, %arg4: memref<1x128xf32, #tpu.memory_space<vmem>>, %arg5: memref<128x128xbf16, #tpu.memory_space<vmem>>, %arg6: memref<1x128xf32, #tpu.memory_space<vmem>>, %arg7: memref<8x128xf32, #tpu.memory_space<vmem>>, %arg8: memref<8x128xf32, #tpu.memory_space<vmem>>) attributes {dimension_semantics = [#tpu.dimension_semantics<parallel>, #tpu.dimension_semantics<arbitrary>], iteration_bounds = array<i64: 1, 8>, scalar_prefetch = 0 : i64, scratch_operands = 1 : i64, tpu.core_type = #tpu.core_type<tc>, window_params = [{transform_indices = @transform_0, window_bounds = array<i64: 8, 1152>}, {transform_indices = @transform_1, window_bounds = array<i64: 1152, 128>}, {pipeline_mode = #tpu.pipeline_mode<synchronous>, transform_indices = @transform_2, window_bounds = array<i64: 1, 128>}, {pipeline_mode = #tpu.pipeline_mode<synchronous>, transform_indices = @transform_3, window_bounds = array<i64: 128, 128>}, {pipeline_mode = #tpu.pipeline_mode<synchronous>, transform_indices = @transform_4, window_bounds = array<i64: 1, 128>}, {transform_indices = @transform_5, window_bounds = array<i64: 8, 128>}]} {
    %c0_i32 = arith.constant 0 : i32
    %0 = arith.cmpi eq, %arg1, %c0_i32 : i32
    %1 = arith.extui %0 : i1 to i32
    %c0_i32_0 = arith.constant 0 : i32
    %2 = arith.cmpi ne, %1, %c0_i32_0 : i32
    scf.if %2 {
      %cst_9 = arith.constant 0.000000e+00 : f32
      %12 = vector.broadcast %cst_9 : f32 to vector<8x128xf32>
      %c0_10 = arith.constant 0 : index
      %c0_11 = arith.constant 0 : index
      %13 = vector.load %arg8[%c0_10, %c0_11] : memref<8x128xf32, #tpu.memory_space<vmem>>, vector<8x128xf32>
      tpu.vector_store %arg8[%c0_10, %c0_11], %12 {strides = array<i32>} : memref<8x128xf32, #tpu.memory_space<vmem>>, vector<8x128xf32>,
    } else {
    }
    %c0 = arith.constant 0 : index
    %c0_1 = arith.constant 0 : index
    %3 = vector.load %arg8[%c0, %c0_1] : memref<8x128xf32, #tpu.memory_space<vmem>>, vector<8x128xf32>
    %c0_2 = arith.constant 0 : index
    %c0_3 = arith.constant 0 : index
    %4 = vector.load %arg2[%c0_2, %c0_3] : memref<8x1152xbf16, #tpu.memory_space<vmem>>, vector<8x1152xbf16>
    %c0_4 = arith.constant 0 : index
    %c0_5 = arith.constant 0 : index
    %5 = vector.load %arg3[%c0_4, %c0_5] : memref<1152x128xbf16, #tpu.memory_space<vmem>>, vector<1152x128xbf16>
    %cst = arith.constant dense<0.000000e+00> : vector<8x128xf32>
    %6 = tpu.matmul %4, %5, %cst {dimension_numbers = #tpu.dot_dimension_numbers<[1], [0], [0], [1], [0, 0, 1, 1], [], []>} : vector<8x1152xbf16>, vector<1152x128xbf16>, vector<8x128xf32> -> vector<8x128xf32>
    %7 = arith.addf %3, %6 : vector<8x128xf32>
    %c0_6 = arith.constant 0 : index
    %c0_7 = arith.constant 0 : index
    %8 = vector.load %arg8[%c0_6, %c0_7] : memref<8x128xf32, #tpu.memory_space<vmem>>, vector<8x128xf32>
    tpu.vector_store %arg8[%c0_6, %c0_7], %7 {strides = array<i32>} : memref<8x128xf32, #tpu.memory_space<vmem>>, vector<8x128xf32>,
    %c7_i32 = arith.constant 7 : i32
    %9 = arith.cmpi eq, %arg1, %c7_i32 : i32
    %10 = arith.extui %9 : i1 to i32
    %c0_i32_8 = arith.constant 0 : i32
    %11 = arith.cmpi ne, %10, %c0_i32_8 : i32
    scf.if %11 {
      %c0_9 = arith.constant 0 : index
      %c0_10 = arith.constant 0 : index
      %12 = vector.load %arg8[%c0_9, %c0_10] : memref<8x128xf32, #tpu.memory_space<vmem>>, vector<8x128xf32>
      %c0_11 = arith.constant 0 : index
      %c0_12 = arith.constant 0 : index
      %13 = vector.load %arg4[%c0_11, %c0_12] : memref<1x128xf32, #tpu.memory_space<vmem>>, vector<1x128xf32>
      %14 = vector.broadcast %13 : vector<1x128xf32> to vector<8x128xf32>
      %15 = arith.addf %12, %14 : vector<8x128xf32>
      %cst_13 = arith.constant 0.000000e+00 : f32
      %16 = vector.broadcast %cst_13 : f32 to vector<8x128xf32>
      %17 = arith.maximumf %15, %16 : vector<8x128xf32>
      %18 = arith.truncf %17 : vector<8x128xf32> to vector<8x128xbf16>
      %c0_14 = arith.constant 0 : index
      %c0_15 = arith.constant 0 : index
      %19 = vector.load %arg5[%c0_14, %c0_15] : memref<128x128xbf16, #tpu.memory_space<vmem>>, vector<128x128xbf16>
      %cst_16 = arith.constant dense<0.000000e+00> : vector<8x128xf32>
      %20 = tpu.matmul %18, %19, %cst_16 {dimension_numbers = #tpu.dot_dimension_numbers<[1], [0], [0], [1], [0, 0, 1, 1], [], []>} : vector<8x128xbf16>, vector<128x128xbf16>, vector<8x128xf32> -> vector<8x128xf32>
      %c0_17 = arith.constant 0 : index
      %c0_18 = arith.constant 0 : index
      %21 = vector.load %arg6[%c0_17, %c0_18] : memref<1x128xf32, #tpu.memory_space<vmem>>, vector<1x128xf32>
      %22 = vector.broadcast %21 : vector<1x128xf32> to vector<8x128xf32>
      %23 = arith.addf %20, %22 : vector<8x128xf32>
      %cst_19 = arith.constant dense<0xFF800000> : vector<8xf32>
      %24 = vector.multi_reduction <maximumf>, %23, %cst_19 [1] : vector<8x128xf32> to vector<8xf32>
      %25 = vector.shape_cast %24 : vector<8xf32> to vector<8x1xf32>
      %26 = vector.broadcast %25 : vector<8x1xf32> to vector<8x128xf32>
      %27 = arith.subf %23, %26 : vector<8x128xf32>
      %28 = math.exp %27 : vector<8x128xf32>
      %cst_20 = arith.constant dense<0.000000e+00> : vector<8xf32>
      %29 = vector.multi_reduction <add>, %28, %cst_20 [1] : vector<8x128xf32> to vector<8xf32>
      %30 = vector.shape_cast %29 : vector<8xf32> to vector<8x1xf32>
      %31 = math.log %30 : vector<8x1xf32>
      %32 = vector.broadcast %31 : vector<8x1xf32> to vector<8x128xf32>
      %33 = arith.subf %27, %32 : vector<8x128xf32>
      %c0_21 = arith.constant 0 : index
      %c0_22 = arith.constant 0 : index
      %34 = vector.load %arg7[%c0_21, %c0_22] : memref<8x128xf32, #tpu.memory_space<vmem>>, vector<8x128xf32>
      tpu.vector_store %arg7[%c0_21, %c0_22], %33 {strides = array<i32>} : memref<8x128xf32, #tpu.memory_space<vmem>>, vector<8x128xf32>,
    } else {
    }
    return
  }
  func.func @transform_0(%arg0: i32, %arg1: i32) -> (i32, i32) {
    %c0_i32 = arith.constant 0 : i32
    return %arg0, %arg1 : i32, i32
  }
  func.func @transform_1(%arg0: i32, %arg1: i32) -> (i32, i32) {
    %c0_i32 = arith.constant 0 : i32
    %c0_i32_0 = arith.constant 0 : i32
    return %arg1, %c0_i32 : i32, i32
  }
  func.func @transform_2(%arg0: i32, %arg1: i32) -> (i32, i32) {
    %c0_i32 = arith.constant 0 : i32
    %c0_i32_0 = arith.constant 0 : i32
    %c0_i32_1 = arith.constant 0 : i32
    return %c0_i32, %c0_i32_0 : i32, i32
  }
  func.func @transform_3(%arg0: i32, %arg1: i32) -> (i32, i32) {
    %c0_i32 = arith.constant 0 : i32
    %c0_i32_0 = arith.constant 0 : i32
    %c0_i32_1 = arith.constant 0 : i32
    return %c0_i32, %c0_i32_0 : i32, i32
  }
  func.func @transform_4(%arg0: i32, %arg1: i32) -> (i32, i32) {
    %c0_i32 = arith.constant 0 : i32
    %c0_i32_0 = arith.constant 0 : i32
    %c0_i32_1 = arith.constant 0 : i32
    return %c0_i32, %c0_i32_0 : i32, i32
  }
  func.func @transform_5(%arg0: i32, %arg1: i32) -> (i32, i32) {
    %c0_i32 = arith.constant 0 : i32
    %c0_i32_0 = arith.constant 0 : i32
    return %arg0, %c0_i32 : i32, i32
  }
}

</mosaic_0001>

<bundles_post_ra>
// kernel: net_forward.3
= control target key start
LH: loop header
LB: loop body
LE: loop exit
PB: predicated region body
PF: predicated region fallthrough
CT: control target
= control target key end

     0   :  { %8 = vsyncpa [#allocation3], 0  ;;  %s2135_s0 = inlined_call_operand.vmem [shape: bf16[1536,9], index: 0, kind: input, shape index: {}]   ;;  %s2136_s1 = inlined_call_operand.hbm [shape: bf16[9,32], index: 1, kind: input, shape index: {}]   ;;  %s2137_s2 = inlined_call_operand.hbm [shape: f32[1,32], index: 2, kind: input, shape index: {}]   ;;  %s2138_s3 = inlined_call_operand.vmem [shape: bf16[1536,32], index: 3, kind: output, shape index: {}]  }
   0x1   :  { %9 = vsyncpa [#allocation5], 0  ;;  %s1769_s12 = smov 0  }
   0x2 LB: > { %s1297_s13 = sadd.s32 4294967295, %s1742_s12   ;;  %p1299_p0 = scmp.ge.s32.totalorder %s1742_s12, 1  ;;  %s1742_s12 = sphi %s1769_s12, %s15_s12  }
   0x3   : > { %p114_p1 = scmp.lt.s32.totalorder %s1742_s12, 4  ;;  %s1744_s14 = smov [#allocation2]  }
   0x4   : > { %s126_s15 = sshll.u32 %s1744_s14, 4  ;;  %p1783_p3 = scmp.eq.s32.totalorder %s1297_s13, 0  ;;  %s127_s15 = int_to_ptr.vmem [resolvable:$true] %s126_s15 }
   0x5   : > { %p1777_p2 = pnand %p1299_p0, %p114_p1  ;;  %s1745_s18 = smov [#allocation4]  }
   0x6   : > { %s2143_s17 = scalar_select %p1783_p3, 1, 0 }
   0x7   : > { %s2142_s16 = scalar_select %p1777_p2, 1, 0 }
   0x8   : > { %p1615_p4 = pneg %p1777_p2  ;;  %s140_s19 = sshll.u32 %s1745_s18, 4  ;;  %s1795_s19 = int_to_ptr.vmem [resolvable:$true] %s140_s19 }
   0x9   : > { %s1672_s23 = scalar_lea.hbm %s2136_s1, 128 }
   0xa   : > { %p1791_p5 = pnand %p1783_p3, %p1615_p4  ;;  %p1673_p6 = scmp.ne.s32.totalorder %s2136_s1, %s1672_s23 }
   0xb   : > { %p1679_p10 = scmp.lt.u32.totalorder %s1672_s23, %s2136_s1 }
   0xc   : > { %p1674_p7 = pneg %p1791_p5 }
   0xe   : > { %p1675_p8 = pnand %p1674_p7, %p1673_p6 }
  0x10   : > { %p1676_p9 = pneg %p1675_p8 }
  0x12   : > { %p1681_p11 = pnand %p1679_p10, %p1676_p9 }
  0x14   : > { %1684 = shalt.err (!%p1681_p11)
}
  0x15   : > { %s1685_s28 = scalar_lea.vmem %s127_s15, 128  ;;  %p1693_p1 = scmp.lt.s32.totalorder %s127_s15, %s127_s15 }
  0x16   : > { %p1686_p12 = scmp.ne.s32.totalorder %s127_s15, %s1685_s28  ;;  %p1694_p4 = scmp.lt.s32.totalorder %s1685_s28, %s1685_s28 }
  0x18   : > { %p1688_p13 = pnand %p1686_p12, %p1674_p7  ;;  %p1695_p3 = por %p1694_p4, %p1693_p1 }
  0x1a   : > { %p1689_p0 = pneg %p1688_p13 }
  0x1c   : > { %p1696_p2 = pnand %p1695_p3, %p1689_p0 }
  0x1e   : > { %1699 = shalt.err (!%p1696_p2)
}
  0x1f   : > { %s1746_s29 = smov 64   ;;  %s1747_s30 = smov 4  }
  0x20   : > { %1618 = dma.hbm_to_vmem [thread:$0]  (!%p1791_p5), %s2136_s1, 128, %s127_s15, [#allocation3], %s1746_s29, %s1746_s29, %s1747_s30  }
  0x21   : > { %s1700_s8 = scalar_lea.hbm %s2137_s2, 16 }
  0x22   : > { %p1701_p6 = scmp.ne.s32.totalorder %s2137_s2, %s1700_s8  ;;  %p1707_p8 = scmp.lt.u32.totalorder %s1700_s8, %s2137_s2 }
  0x24   : > { %p1703_p2 = pnand %p1701_p6, %p1674_p7 }
  0x26   : > { %p1704_p3 = pneg %p1703_p2 }
  0x28   : > { %p1709_p9 = pnand %p1707_p8, %p1704_p3 }
  0x2a   : > { %1712 = shalt.err (!%p1709_p9)
}
  0x2b   : > { %s1713_s15 = scalar_lea.vmem %s1795_s19, 16  ;;  %s1720_s18 = scalar_lea.vmem %s1795_s19, 32 }
  0x2c   : > { %p1714_p10 = scmp.ne.s32.totalorder %s1795_s19, %s1713_s15  ;;  %p1721_p13 = scmp.lt.s32.totalorder %s1795_s19, %s1795_s19 }
  0x2d   : > { %p1722_p0 = scmp.lt.s32.totalorder %s1720_s18, %s1713_s15 }
  0x2e   : > { %p1716_p11 = pnand %p1714_p10, %p1674_p7 }
  0x2f   : > { %p1723_p1 = por %p1722_p0, %p1721_p13 }
  0x30   : > { %p1717_p12 = pneg %p1716_p11 }
  0x32   : > { %p1724_p4 = pnand %p1723_p1, %p1717_p12 }
  0x34   : > { %1727 = shalt.err (!%p1724_p4)
}
  0x35   : > { %1621 = dma.hbm_to_vmem [thread:$0]  (!%p1791_p5), %s2137_s2, 16, %s1795_s19, [#allocation5]  }
  0x36   : > { %p2145_p6 = scmp.ne.s32.totalorder %s2142_s16, 0 }
  0x37   : > { %p2146_p7 = scmp.ne.s32.totalorder (!%p2145_p6), %s2143_s17, 0 }
  0x38   : > { %162 = sbr.rel (%p2145_p6) target bundleno = 353 (0x161), region = 32 }
  0x3f   : > { %1733 = dma.done.wait (%p2146_p7), [#allocation3], 128  }
  0x40   : > { %1735 = vsyncadd (%p2146_p7), [#allocation3], 4294967168 }
  0x41   : > { %1737 = dma.done.wait (%p2146_p7), [#allocation5], 16  }
  0x42   : > { %1739 = vsyncadd (%p2146_p7), [#allocation5], 4294967280  ;;  %vm538_vm0 = vcmask 1043456   ;;  %s1306_s20 = sshll.u32 %s1297_s13, 6  ;;  %vm539_vm1 = vcmask 1044480   ;;  %v1748_v0 = vmov 65535  }
  0x43   : > { %p191_p5 = scmp.lt.s32.totalorder %s1306_s20, 191  ;;  %v540_v1 = vsel %vm538_vm0, 4294967295, %v1748_v0  ;;  %vm441_vm2 = vcmask 72704   ;;  %v1639_v3 = vld [vmem:[#allocation2] sm:$0x1f]   ;;  %vm1154_vm3 = vcmask 257024  }
  0x44   : > { %v541_v2 = vsel %vm539_vm1, %v540_v1, 0  ;;  %v1931_v37 = vld [vmem:[#allocation4] ss:$0 sm:$0xff] }
  0x45   : > { %s2148_s20 = smov (!%p191_p5, %s1306_s20), 191  ;;  %v543_v5 = vand.u32 %v1639_v3, %v541_v2 }
  0x46   : > { %s1307_s16 = sshll.u32 %s2148_s20, 2 }
  0x47   : > { %s1865_s17 = scalar_lea.vmem %s2135_s0, %s1307_s16  ;;  %1539 = vmatprep.subr.bf16.mxu0 %v543_v5  ;;  %1605 = vmatprep.subr.bf16.mxu1 %v543_v5  ;;  %s1944_s25 = scalar_lea.vmem %s2138_s3, %s1307_s16 }
  0x48   : > { %v1640_v4 = vld [vmem:[%s1865_s17] sm:$0xff]   ;;  %v1642_v7 = vld [vmem:[%s1865_s17 + $0x8] sm:$0xff]   ;;  %1540 = vmatpush3.bf16.msra.mxu0 %v543_v5  ;;  %1606 = vmatpush3.bf16.msra.mxu1 %v543_v5  ;;  %v1644_v9 = vld [vmem:[%s1865_s17 + $0x10] sm:$0xff]  }
  0x49   : > { %v1641_v6 = vld [vmem:[%s1865_s17 + $0x80] sm:$0xff]   ;;  %1541 = vmatprep.mubr.msk.bf16.mxu0 %vm441_vm2, %v1640_v4  ;;  %v1643_v8 = vld [vmem:[%s1865_s17 + $0x88] sm:$0xff]   ;;  %v1645_v10 = vld [vmem:[%s1865_s17 + $0x90] sm:$0xff]  }
  0x4a   : > { %1573 = vmatprep.mubr.msk.bf16.mxu1 %vm441_vm2, %v1641_v6  ;;  %v1646_v11 = vld [vmem:[%s1865_s17 + $0x18] sm:$0xff]   ;;  %v1648_v13 = vld [vmem:[%s1865_s17 + $0x20] sm:$0xff]   ;;  %v1650_v15 = vld [vmem:[%s1865_s17 + $0x28] sm:$0xff]  }
  0x4b   : > { %1542 = vmatmul.mubr.msk.bf16.vlgmr.msra.gmra.mrb[0].mxu0 %vm441_vm2, %v1642_v7  ;;  %1574 = vmatmul.mubr.msk.bf16.vlgmr.msra.gmra.mrb[0].mxu1 %vm441_vm2, %v1643_v8  ;;  %v1647_v12 = vld [vmem:[%s1865_s17 + $0x98] sm:$0xff]   ;;  %v1649_v14 = vld [vmem:[%s1865_s17 + $0xa0] sm:$0xff]   ;;  %v1651_v16 = vld [vmem:[%s1865_s17 + $0xa8] sm:$0xff]  }
  0x4c   : > { %1545 = vmatprep.mubr.msk.bf16.mxu0 %vm441_vm2, %v1644_v9  ;;  %1577 = vmatprep.mubr.msk.bf16.mxu1 %vm441_vm2, %v1645_v10  ;;  %v1652_v17 = vld [vmem:[%s1865_s17 + $0x30] sm:$0xff]   ;;  %v1654_v19 = vld [vmem:[%s1865_s17 + $0x38] sm:$0xff]   ;;  %v1656_v21 = vld [vmem:[%s1865_s17 + $0x40] sm:$0xff]  }
  0x4d   : > { %v1653_v18 = vld [vmem:[%s1865_s17 + $0xb0] sm:$0xff]   ;;  %v1655_v20 = vld [vmem:[%s1865_s17 + $0xb8] sm:$0xff]   ;;  %v1657_v22 = vld [vmem:[%s1865_s17 + $0xc0] sm:$0xff]  }
  0x4e   : > { %v1658_v23 = vld [vmem:[%s1865_s17 + $0x48] sm:$0xff]   ;;  %v1660_v25 = vld [vmem:[%s1865_s17 + $0x50] sm:$0xff]   ;;  %v1662_v27 = vld [vmem:[%s1865_s17 + $0x58] sm:$0xff]  }
  0x4f   : > { %v1659_v24 = vld [vmem:[%s1865_s17 + $0xc8] sm:$0xff]   ;;  %v1661_v26 = vld [vmem:[%s1865_s17 + $0xd0] sm:$0xff]   ;;  %v1663_v28 = vld [vmem:[%s1865_s17 + $0xd8] sm:$0xff]  }
  0x50   : > { %v1664_v29 = vld [vmem:[%s1865_s17 + $0x60] sm:$0xff]   ;;  %v1666_v31 = vld [vmem:[%s1865_s17 + $0x68] sm:$0xff]   ;;  %v1668_v33 = vld [vmem:[%s1865_s17 + $0x70] sm:$0xff]  }
  0x51   : > { %v1665_v30 = vld [vmem:[%s1865_s17 + $0xe0] sm:$0xff]   ;;  %v1667_v32 = vld [vmem:[%s1865_s17 + $0xe8] sm:$0xff]   ;;  %v1669_v34 = vld [vmem:[%s1865_s17 + $0xf0] sm:$0xff]  }
  0x52   : > { %v1670_v35 = vld [vmem:[%s1865_s17 + $0x78] sm:$0xff]  }
  0x53   : > { %1546 = vmatmul.mubr.msk.bf16.gmra.mrb[4].mxu0 %vm441_vm2, %v1646_v11  ;;  %1578 = vmatmul.mubr.msk.bf16.gmra.mrb[4].mxu1 %vm441_vm2, %v1647_v12  ;;  %v1671_v36 = vld [vmem:[%s1865_s17 + $0xf8] sm:$0xff]  }
  0x54   : > { %1549 = vmatprep.mubr.msk.bf16.mxu0 %vm441_vm2, %v1648_v13  ;;  %1581 = vmatprep.mubr.msk.bf16.mxu1 %vm441_vm2, %v1649_v14 }
  0x5b   : > { %1550 = vmatmul.mubr.msk.bf16.gmra.mrb[8].mxu0 %vm441_vm2, %v1650_v15  ;;  %1582 = vmatmul.mubr.msk.bf16.gmra.mrb[8].mxu1 %vm441_vm2, %v1651_v16 }
  0x5c   : > { %1553 = vmatprep.mubr.msk.bf16.mxu0 %vm441_vm2, %v1652_v17  ;;  %1585 = vmatprep.mubr.msk.bf16.mxu1 %vm441_vm2, %v1653_v18 }
  0x63   : > { %1554 = vmatmul.mubr.msk.bf16.gmra.mrb[12].mxu0 %vm441_vm2, %v1654_v19  ;;  %1586 = vmatmul.mubr.msk.bf16.gmra.mrb[12].mxu1 %vm441_vm2, %v1655_v20 }
  0x64   : > { %1557 = vmatprep.mubr.msk.bf16.mxu0 %vm441_vm2, %v1656_v21  ;;  %1589 = vmatprep.mubr.msk.bf16.mxu1 %vm441_vm2, %v1657_v22 }
  0x6b   : > { %1558 = vmatmul.mubr.msk.bf16.gmra.mrb[16].mxu0 %vm441_vm2, %v1658_v23  ;;  %1590 = vmatmul.mubr.msk.bf16.gmra.mrb[16].mxu1 %vm441_vm2, %v1659_v24 }
  0x6c   : > { %1561 = vmatprep.mubr.msk.bf16.mxu0 %vm441_vm2, %v1660_v25  ;;  %1593 = vmatprep.mubr.msk.bf16.mxu1 %vm441_vm2, %v1661_v26 }
  0x73   : > { %1562 = vmatmul.mubr.msk.bf16.gmra.mrb[20].mxu0 %vm441_vm2, %v1662_v27  ;;  %1594 = vmatmul.mubr.msk.bf16.gmra.mrb[20].mxu1 %vm441_vm2, %v1663_v28 }
  0x74   : > { %1565 = vmatprep.mubr.msk.bf16.mxu0 %vm441_vm2, %v1664_v29  ;;  %1597 = vmatprep.mubr.msk.bf16.mxu1 %vm441_vm2, %v1665_v30 }
  0x7b   : > { %1566 = vmatmul.mubr.msk.bf16.gmra.mrb[24].mxu0 %vm441_vm2, %v1666_v31  ;;  %1598 = vmatmul.mubr.msk.bf16.gmra.mrb[24].mxu1 %vm441_vm2, %v1667_v32 }
  0x7c   : > { %1569 = vmatprep.mubr.msk.bf16.mxu0 %vm441_vm2, %v1668_v33  ;;  %1601 = vmatprep.mubr.msk.bf16.mxu1 %vm441_vm2, %v1669_v34 }
  0x83   : > { %1570 = vmatmul.mubr.msk.bf16.gmra.mrb[28].mxu0 %vm441_vm2, %v1670_v35  ;;  %1602 = vmatmul.mubr.msk.bf16.gmra.mrb[28].mxu1 %vm441_vm2, %v1671_v36 }
 0x11e   : > { %v1543_v38 = vpop.f32.mrb[0].mxu0  ;;  %v1575_v39 = vpop.f32.mrb[0].mxu1 }
 0x11f   : > { %v588_v40 = vadd.f32 %v1543_v38, %v1931_v37  ;;  %v716_v41 = vadd.f32 %v1575_v39, %v1931_v37  ;;  %v579_v42 = vpop.f32.mrb[1].mxu0  ;;  %v707_v43 = vpop.f32.mrb[1].mxu1 }
 0x120   : > { %v580_v44 = vadd.f32 %v1931_v37, %v579_v42  ;;  %v708_v45 = vadd.f32 %v1931_v37, %v707_v43  ;;  %v1544_v46 = vpop.f32.mrb[2].mxu0  ;;  %v1576_v47 = vpop.f32.mrb[2].mxu1 }
 0x121   : > { %v836_v48 = vmax.f32 %v588_v40, 0.0  ;;  %v868_v49 = vmax.f32 %v716_v41, 0.0  ;;  %v591_v50 = vadd.f32 %v1544_v46, %v1931_v37  ;;  %v719_v51 = vadd.f32 %v1576_v47, %v1931_v37  ;;  %v582_v52 = vpop.f32.mrb[3].mxu0  ;;  %v710_v53 = vpop.f32.mrb[3].mxu1 }
 0x122   : > { %v834_v54 = vmax.f32 %v580_v44, 0.0  ;;  %v866_v55 = vmax.f32 %v708_v45, 0.0  ;;  %v583_v56 = vadd.f32 %v1931_v37, %v582_v52  ;;  %v711_v57 = vadd.f32 %v1931_v37, %v710_v53 }
 0x123   : > { %v1444_v58 = vpack.c.bf16 %v836_v48, %v836_v48  ;;  %v1476_v59 = vpack.c.bf16 %v868_v49, %v868_v49  ;;  %v837_v60 = vmax.f32 %v591_v50, 0.0  ;;  %v869_v61 = vmax.f32 %v719_v51, 0.0 }
 0x124   : > { %v1442_v62 = vpack.c.bf16 %v834_v54, %v834_v54  ;;  %v1474_v63 = vpack.c.bf16 %v866_v55, %v866_v55  ;;  %v835_v0 = vmax.f32 %v583_v56, 0.0  ;;  %v867_v1 = vmax.f32 %v711_v57, 0.0 }
 0x125   : > { %1157 = vst.msk [vmem:[%s1944_s25 + $0x8] sm:$0xf] %vm1154_vm3, %v1444_v58  ;;  %1189 = vst.msk [vmem:[%s1944_s25 + $0x88] sm:$0xf] %vm1154_vm3, %v1476_v59  ;;  %v1445_v2 = vpack.c.bf16 %v837_v60, %v837_v60  ;;  %v1477_v3 = vpack.c.bf16 %v869_v61, %v869_v61 }
 0x126   : > { %1155 = vst.msk [vmem:[%s1944_s25] sm:$0xf] %vm1154_vm3, %v1442_v62  ;;  %1187 = vst.msk [vmem:[%s1944_s25 + $0x80] sm:$0xf] %vm1154_vm3, %v1474_v63  ;;  %v1443_v4 = vpack.c.bf16 %v835_v0, %v835_v0  ;;  %v1475_v5 = vpack.c.bf16 %v867_v1, %v867_v1  ;;  %v1547_v6 = vpop.f32.mrb[4].mxu0  ;;  %v1579_v7 = vpop.f32.mrb[4].mxu1 }
 0x127   : > { %1158 = vst.msk [vmem:[%s1944_s25 + $0xc] sm:$0xf] %vm1154_vm3, %v1445_v2  ;;  %1190 = vst.msk [vmem:[%s1944_s25 + $0x8c] sm:$0xf] %vm1154_vm3, %v1477_v3  ;;  %v604_v8 = vadd.f32 %v1547_v6, %v1931_v37  ;;  %v732_v9 = vadd.f32 %v1579_v7, %v1931_v37  ;;  %v595_v10 = vpop.f32.mrb[5].mxu0  ;;  %v723_v11 = vpop.f32.mrb[5].mxu1 }
 0x128   : > { %1156 = vst.msk [vmem:[%s1944_s25 + $0x4] sm:$0xf] %vm1154_vm3, %v1443_v4  ;;  %1188 = vst.msk [vmem:[%s1944_s25 + $0x84] sm:$0xf] %vm1154_vm3, %v1475_v5  ;;  %v596_v12 = vadd.f32 %v1931_v37, %v595_v10  ;;  %v724_v13 = vadd.f32 %v1931_v37, %v723_v11  ;;  %v1548_v14 = vpop.f32.mrb[6].mxu0  ;;  %v1580_v15 = vpop.f32.mrb[6].mxu1 }
 0x129   : > { %v840_v16 = vmax.f32 %v604_v8, 0.0  ;;  %v872_v17 = vmax.f32 %v732_v9, 0.0  ;;  %v607_v18 = vadd.f32 %v1548_v14, %v1931_v37  ;;  %v735_v19 = vadd.f32 %v1580_v15, %v1931_v37  ;;  %v598_v20 = vpop.f32.mrb[7].mxu0  ;;  %v726_v21 = vpop.f32.mrb[7].mxu1 }
 0x12a   : > { %v838_v22 = vmax.f32 %v596_v12, 0.0  ;;  %v870_v23 = vmax.f32 %v724_v13, 0.0  ;;  %v599_v24 = vadd.f32 %v1931_v37, %v598_v20  ;;  %v727_v25 = vadd.f32 %v1931_v37, %v726_v21 }
 0x12b   : > { %v1448_v26 = vpack.c.bf16 %v840_v16, %v840_v16  ;;  %v1480_v27 = vpack.c.bf16 %v872_v17, %v872_v17  ;;  %v841_v28 = vmax.f32 %v607_v18, 0.0  ;;  %v873_v29 = vmax.f32 %v735_v19, 0.0 }
 0x12c   : > { %v1446_v30 = vpack.c.bf16 %v838_v22, %v838_v22  ;;  %v1478_v31 = vpack.c.bf16 %v870_v23, %v870_v23  ;;  %v839_v32 = vmax.f32 %v599_v24, 0.0  ;;  %v871_v33 = vmax.f32 %v727_v25, 0.0 }
 0x12d   : > { %1161 = vst.msk [vmem:[%s1944_s25 + $0x18] sm:$0xf] %vm1154_vm3, %v1448_v26  ;;  %1193 = vst.msk [vmem:[%s1944_s25 + $0x98] sm:$0xf] %vm1154_vm3, %v1480_v27  ;;  %v1449_v34 = vpack.c.bf16 %v841_v28, %v841_v28  ;;  %v1481_v35 = vpack.c.bf16 %v873_v29, %v873_v29 }
 0x12e   : > { %1159 = vst.msk [vmem:[%s1944_s25 + $0x10] sm:$0xf] %vm1154_vm3, %v1446_v30  ;;  %1191 = vst.msk [vmem:[%s1944_s25 + $0x90] sm:$0xf] %vm1154_vm3, %v1478_v31  ;;  %v1447_v36 = vpack.c.bf16 %v839_v32, %v839_v32  ;;  %v1479_v38 = vpack.c.bf16 %v871_v33, %v871_v33  ;;  %v1551_v39 = vpop.f32.mrb[8].mxu0  ;;  %v1583_v40 = vpop.f32.mrb[8].mxu1 }
 0x12f   : > { %1162 = vst.msk [vmem:[%s1944_s25 + $0x1c] sm:$0xf] %vm1154_vm3, %v1449_v34  ;;  %1194 = vst.msk [vmem:[%s1944_s25 + $0x9c] sm:$0xf] %vm1154_vm3, %v1481_v35  ;;  %v620_v41 = vadd.f32 %v1551_v39, %v1931_v37  ;;  %v748_v42 = vadd.f32 %v1583_v40, %v1931_v37  ;;  %v611_v43 = vpop.f32.mrb[9].mxu0  ;;  %v739_v44 = vpop.f32.mrb[9].mxu1 }
 0x130   : > { %1160 = vst.msk [vmem:[%s1944_s25 + $0x14] sm:$0xf] %vm1154_vm3, %v1447_v36  ;;  %1192 = vst.msk [vmem:[%s1944_s25 + $0x94] sm:$0xf] %vm1154_vm3, %v1479_v38  ;;  %v612_v45 = vadd.f32 %v1931_v37, %v611_v43  ;;  %v740_v46 = vadd.f32 %v1931_v37, %v739_v44  ;;  %v1552_v47 = vpop.f32.mrb[10].mxu0  ;;  %v1584_v48 = vpop.f32.mrb[10].mxu1 }
 0x131   : > { %v844_v49 = vmax.f32 %v620_v41, 0.0  ;;  %v876_v50 = vmax.f32 %v748_v42, 0.0  ;;  %v623_v51 = vadd.f32 %v1552_v47, %v1931_v37  ;;  %v751_v52 = vadd.f32 %v1584_v48, %v1931_v37  ;;  %v614_v53 = vpop.f32.mrb[11].mxu0  ;;  %v742_v54 = vpop.f32.mrb[11].mxu1 }
 0x132   : > { %v842_v55 = vmax.f32 %v612_v45, 0.0  ;;  %v874_v56 = vmax.f32 %v740_v46, 0.0  ;;  %v615_v57 = vadd.f32 %v1931_v37, %v614_v53  ;;  %v743_v58 = vadd.f32 %v1931_v37, %v742_v54 }
 0x133   : > { %v1452_v59 = vpack.c.bf16 %v844_v49, %v844_v49  ;;  %v1484_v60 = vpack.c.bf16 %v876_v50, %v876_v50  ;;  %v845_v61 = vmax.f32 %v623_v51, 0.0  ;;  %v877_v62 = vmax.f32 %v751_v52, 0.0 }
 0x134   : > { %v1450_v63 = vpack.c.bf16 %v842_v55, %v842_v55  ;;  %v1482_v0 = vpack.c.bf16 %v874_v56, %v874_v56  ;;  %v843_v1 = vmax.f32 %v615_v57, 0.0  ;;  %v875_v2 = vmax.f32 %v743_v58, 0.0 }
 0x135   : > { %1165 = vst.msk [vmem:[%s1944_s25 + $0x28] sm:$0xf] %vm1154_vm3, %v1452_v59  ;;  %1197 = vst.msk [vmem:[%s1944_s25 + $0xa8] sm:$0xf] %vm1154_vm3, %v1484_v60  ;;  %v1453_v3 = vpack.c.bf16 %v845_v61, %v845_v61  ;;  %v1485_v4 = vpack.c.bf16 %v877_v62, %v877_v62 }
 0x136   : > { %1163 = vst.msk [vmem:[%s1944_s25 + $0x20] sm:$0xf] %vm1154_vm3, %v1450_v63  ;;  %1195 = vst.msk [vmem:[%s1944_s25 + $0xa0] sm:$0xf] %vm1154_vm3, %v1482_v0  ;;  %v1451_v5 = vpack.c.bf16 %v843_v1, %v843_v1  ;;  %v1483_v6 = vpack.c.bf16 %v875_v2, %v875_v2  ;;  %v1555_v7 = vpop.f32.mrb[12].mxu0  ;;  %v1587_v8 = vpop.f32.mrb[12].mxu1 }
 0x137   : > { %1166 = vst.msk [vmem:[%s1944_s25 + $0x2c] sm:$0xf] %vm1154_vm3, %v1453_v3  ;;  %1198 = vst.msk [vmem:[%s1944_s25 + $0xac] sm:$0xf] %vm1154_vm3, %v1485_v4  ;;  %v636_v9 = vadd.f32 %v1555_v7, %v1931_v37  ;;  %v764_v10 = vadd.f32 %v1587_v8, %v1931_v37  ;;  %v627_v11 = vpop.f32.mrb[13].mxu0  ;;  %v755_v12 = vpop.f32.mrb[13].mxu1 }
 0x138   : > { %1164 = vst.msk [vmem:[%s1944_s25 + $0x24] sm:$0xf] %vm1154_vm3, %v1451_v5  ;;  %1196 = vst.msk [vmem:[%s1944_s25 + $0xa4] sm:$0xf] %vm1154_vm3, %v1483_v6  ;;  %v628_v13 = vadd.f32 %v1931_v37, %v627_v11  ;;  %v756_v14 = vadd.f32 %v1931_v37, %v755_v12  ;;  %v1556_v15 = vpop.f32.mrb[14].mxu0  ;;  %v1588_v16 = vpop.f32.mrb[14].mxu1 }
 0x139   : > { %v848_v17 = vmax.f32 %v636_v9, 0.0  ;;  %v880_v18 = vmax.f32 %v764_v10, 0.0  ;;  %v639_v19 = vadd.f32 %v1556_v15, %v1931_v37  ;;  %v767_v20 = vadd.f32 %v1588_v16, %v1931_v37  ;;  %v630_v21 = vpop.f32.mrb[15].mxu0  ;;  %v758_v22 = vpop.f32.mrb[15].mxu1 }
 0x13a   : > { %v846_v23 = vmax.f32 %v628_v13, 0.0  ;;  %v878_v24 = vmax.f32 %v756_v14, 0.0  ;;  %v631_v25 = vadd.f32 %v1931_v37, %v630_v21  ;;  %v759_v26 = vadd.f32 %v1931_v37, %v758_v22 }
 0x13b   : > { %v1456_v27 = vpack.c.bf16 %v848_v17, %v848_v17  ;;  %v1488_v28 = vpack.c.bf16 %v880_v18, %v880_v18  ;;  %v849_v29 = vmax.f32 %v639_v19, 0.0  ;;  %v881_v30 = vmax.f32 %v767_v20, 0.0 }
 0x13c   : > { %v1454_v31 = vpack.c.bf16 %v846_v23, %v846_v23  ;;  %v1486_v32 = vpack.c.bf16 %v878_v24, %v878_v24  ;;  %v847_v33 = vmax.f32 %v631_v25, 0.0  ;;  %v879_v34 = vmax.f32 %v759_v26, 0.0 }
 0x13d   : > { %1169 = vst.msk [vmem:[%s1944_s25 + $0x38] sm:$0xf] %vm1154_vm3, %v1456_v27  ;;  %1201 = vst.msk [vmem:[%s1944_s25 + $0xb8] sm:$0xf] %vm1154_vm3, %v1488_v28  ;;  %v1457_v35 = vpack.c.bf16 %v849_v29, %v849_v29  ;;  %v1489_v36 = vpack.c.bf16 %v881_v30, %v881_v30 }
 0x13e   : > { %1167 = vst.msk [vmem:[%s1944_s25 + $0x30] sm:$0xf] %vm1154_vm3, %v1454_v31  ;;  %1199 = vst.msk [vmem:[%s1944_s25 + $0xb0] sm:$0xf] %vm1154_vm3, %v1486_v32  ;;  %v1455_v38 = vpack.c.bf16 %v847_v33, %v847_v33  ;;  %v1487_v39 = vpack.c.bf16 %v879_v34, %v879_v34  ;;  %v1559_v40 = vpop.f32.mrb[16].mxu0  ;;  %v1591_v41 = vpop.f32.mrb[16].mxu1 }
 0x13f   : > { %1170 = vst.msk [vmem:[%s1944_s25 + $0x3c] sm:$0xf] %vm1154_vm3, %v1457_v35  ;;  %1202 = vst.msk [vmem:[%s1944_s25 + $0xbc] sm:$0xf] %vm1154_vm3, %v1489_v36  ;;  %v652_v42 = vadd.f32 %v1559_v40, %v1931_v37  ;;  %v780_v43 = vadd.f32 %v1591_v41, %v1931_v37  ;;  %v643_v44 = vpop.f32.mrb[17].mxu0  ;;  %v771_v45 = vpop.f32.mrb[17].mxu1 }
 0x140   : > { %1168 = vst.msk [vmem:[%s1944_s25 + $0x34] sm:$0xf] %vm1154_vm3, %v1455_v38  ;;  %1200 = vst.msk [vmem:[%s1944_s25 + $0xb4] sm:$0xf] %vm1154_vm3, %v1487_v39  ;;  %v644_v46 = vadd.f32 %v1931_v37, %v643_v44  ;;  %v772_v47 = vadd.f32 %v1931_v37, %v771_v45  ;;  %v1560_v48 = vpop.f32.mrb[18].mxu0  ;;  %v1592_v49 = vpop.f32.mrb[18].mxu1 }
 0x141   : > { %v852_v50 = vmax.f32 %v652_v42, 0.0  ;;  %v884_v51 = vmax.f32 %v780_v43, 0.0  ;;  %v655_v52 = vadd.f32 %v1560_v48, %v1931_v37  ;;  %v783_v53 = vadd.f32 %v1592_v49, %v1931_v37  ;;  %v646_v54 = vpop.f32.mrb[19].mxu0  ;;  %v774_v55 = vpop.f32.mrb[19].mxu1 }
 0x142   : > { %v850_v56 = vmax.f32 %v644_v46, 0.0  ;;  %v882_v57 = vmax.f32 %v772_v47, 0.0  ;;  %v647_v58 = vadd.f32 %v1931_v37, %v646_v54  ;;  %v775_v59 = vadd.f32 %v1931_v37, %v774_v55 }
 0x143   : > { %v1460_v60 = vpack.c.bf16 %v852_v50, %v852_v50  ;;  %v1492_v61 = vpack.c.bf16 %v884_v51, %v884_v51  ;;  %v853_v62 = vmax.f32 %v655_v52, 0.0  ;;  %v885_v63 = vmax.f32 %v783_v53, 0.0 }
 0x144   : > { %v1458_v0 = vpack.c.bf16 %v850_v56, %v850_v56  ;;  %v1490_v1 = vpack.c.bf16 %v882_v57, %v882_v57  ;;  %v851_v2 = vmax.f32 %v647_v58, 0.0  ;;  %v883_v3 = vmax.f32 %v775_v59, 0.0 }
 0x145   : > { %1173 = vst.msk [vmem:[%s1944_s25 + $0x48] sm:$0xf] %vm1154_vm3, %v1460_v60  ;;  %1205 = vst.msk [vmem:[%s1944_s25 + $0xc8] sm:$0xf] %vm1154_vm3, %v1492_v61  ;;  %v1461_v4 = vpack.c.bf16 %v853_v62, %v853_v62  ;;  %v1493_v5 = vpack.c.bf16 %v885_v63, %v885_v63 }
 0x146   : > { %1171 = vst.msk [vmem:[%s1944_s25 + $0x40] sm:$0xf] %vm1154_vm3, %v1458_v0  ;;  %1203 = vst.msk [vmem:[%s1944_s25 + $0xc0] sm:$0xf] %vm1154_vm3, %v1490_v1  ;;  %v1459_v6 = vpack.c.bf16 %v851_v2, %v851_v2  ;;  %v1491_v7 = vpack.c.bf16 %v883_v3, %v883_v3  ;;  %v1563_v8 = vpop.f32.mrb[20].mxu0  ;;  %v1595_v9 = vpop.f32.mrb[20].mxu1 }
 0x147   : > { %1174 = vst.msk [vmem:[%s1944_s25 + $0x4c] sm:$0xf] %vm1154_vm3, %v1461_v4  ;;  %1206 = vst.msk [vmem:[%s1944_s25 + $0xcc] sm:$0xf] %vm1154_vm3, %v1493_v5  ;;  %v668_v10 = vadd.f32 %v1563_v8, %v1931_v37  ;;  %v796_v11 = vadd.f32 %v1595_v9, %v1931_v37  ;;  %v659_v12 = vpop.f32.mrb[21].mxu0  ;;  %v787_v13 = vpop.f32.mrb[21].mxu1 }
 0x148   : > { %1172 = vst.msk [vmem:[%s1944_s25 + $0x44] sm:$0xf] %vm1154_vm3, %v1459_v6  ;;  %1204 = vst.msk [vmem:[%s1944_s25 + $0xc4] sm:$0xf] %vm1154_vm3, %v1491_v7  ;;  %v660_v14 = vadd.f32 %v1931_v37, %v659_v12  ;;  %v788_v15 = vadd.f32 %v1931_v37, %v787_v13  ;;  %v1564_v16 = vpop.f32.mrb[22].mxu0  ;;  %v1596_v17 = vpop.f32.mrb[22].mxu1 }
 0x149   : > { %v856_v18 = vmax.f32 %v668_v10, 0.0  ;;  %v888_v19 = vmax.f32 %v796_v11, 0.0  ;;  %v671_v20 = vadd.f32 %v1564_v16, %v1931_v37  ;;  %v799_v21 = vadd.f32 %v1596_v17, %v1931_v37  ;;  %v662_v22 = vpop.f32.mrb[23].mxu0  ;;  %v790_v23 = vpop.f32.mrb[23].mxu1 }
 0x14a   : > { %v854_v24 = vmax.f32 %v660_v14, 0.0  ;;  %v886_v25 = vmax.f32 %v788_v15, 0.0  ;;  %v663_v26 = vadd.f32 %v1931_v37, %v662_v22  ;;  %v791_v27 = vadd.f32 %v1931_v37, %v790_v23 }
 0x14b   : > { %v1464_v28 = vpack.c.bf16 %v856_v18, %v856_v18  ;;  %v1496_v29 = vpack.c.bf16 %v888_v19, %v888_v19  ;;  %v857_v30 = vmax.f32 %v671_v20, 0.0  ;;  %v889_v31 = vmax.f32 %v799_v21, 0.0 }
 0x14c   : > { %v1462_v32 = vpack.c.bf16 %v854_v24, %v854_v24  ;;  %v1494_v33 = vpack.c.bf16 %v886_v25, %v886_v25  ;;  %v855_v34 = vmax.f32 %v663_v26, 0.0  ;;  %v887_v35 = vmax.f32 %v791_v27, 0.0 }
 0x14d   : > { %1177 = vst.msk [vmem:[%s1944_s25 + $0x58] sm:$0xf] %vm1154_vm3, %v1464_v28  ;;  %1209 = vst.msk [vmem:[%s1944_s25 + $0xd8] sm:$0xf] %vm1154_vm3, %v1496_v29  ;;  %v1465_v36 = vpack.c.bf16 %v857_v30, %v857_v30  ;;  %v1497_v38 = vpack.c.bf16 %v889_v31, %v889_v31 }
 0x14e   : > { %1175 = vst.msk [vmem:[%s1944_s25 + $0x50] sm:$0xf] %vm1154_vm3, %v1462_v32  ;;  %1207 = vst.msk [vmem:[%s1944_s25 + $0xd0] sm:$0xf] %vm1154_vm3, %v1494_v33  ;;  %v1463_v39 = vpack.c.bf16 %v855_v34, %v855_v34  ;;  %v1495_v40 = vpack.c.bf16 %v887_v35, %v887_v35  ;;  %v1567_v41 = vpop.f32.mrb[24].mxu0  ;;  %v1599_v42 = vpop.f32.mrb[24].mxu1 }
 0x14f   : > { %1178 = vst.msk [vmem:[%s1944_s25 + $0x5c] sm:$0xf] %vm1154_vm3, %v1465_v36  ;;  %1210 = vst.msk [vmem:[%s1944_s25 + $0xdc] sm:$0xf] %vm1154_vm3, %v1497_v38  ;;  %v684_v43 = vadd.f32 %v1567_v41, %v1931_v37  ;;  %v812_v44 = vadd.f32 %v1599_v42, %v1931_v37  ;;  %v675_v45 = vpop.f32.mrb[25].mxu0  ;;  %v803_v46 = vpop.f32.mrb[25].mxu1 }
 0x150   : > { %1176 = vst.msk [vmem:[%s1944_s25 + $0x54] sm:$0xf] %vm1154_vm3, %v1463_v39  ;;  %1208 = vst.msk [vmem:[%s1944_s25 + $0xd4] sm:$0xf] %vm1154_vm3, %v1495_v40  ;;  %v676_v47 = vadd.f32 %v1931_v37, %v675_v45  ;;  %v804_v48 = vadd.f32 %v1931_v37, %v803_v46  ;;  %v1568_v49 = vpop.f32.mrb[26].mxu0  ;;  %v1600_v50 = vpop.f32.mrb[26].mxu1 }
 0x151   : > { %v860_v51 = vmax.f32 %v684_v43, 0.0  ;;  %v892_v52 = vmax.f32 %v812_v44, 0.0  ;;  %v687_v53 = vadd.f32 %v1568_v49, %v1931_v37  ;;  %v815_v54 = vadd.f32 %v1600_v50, %v1931_v37  ;;  %v678_v55 = vpop.f32.mrb[27].mxu0  ;;  %v806_v56 = vpop.f32.mrb[27].mxu1 }
 0x152   : > { %v858_v57 = vmax.f32 %v676_v47, 0.0  ;;  %v890_v58 = vmax.f32 %v804_v48, 0.0  ;;  %v679_v59 = vadd.f32 %v1931_v37, %v678_v55  ;;  %v807_v60 = vadd.f32 %v1931_v37, %v806_v56 }
 0x153   : > { %v1468_v61 = vpack.c.bf16 %v860_v51, %v860_v51  ;;  %v1500_v62 = vpack.c.bf16 %v892_v52, %v892_v52  ;;  %v861_v63 = vmax.f32 %v687_v53, 0.0  ;;  %v893_v0 = vmax.f32 %v815_v54, 0.0 }
 0x154   : > { %v1466_v1 = vpack.c.bf16 %v858_v57, %v858_v57  ;;  %v1498_v2 = vpack.c.bf16 %v890_v58, %v890_v58  ;;  %v859_v3 = vmax.f32 %v679_v59, 0.0  ;;  %v891_v4 = vmax.f32 %v807_v60, 0.0 }
 0x155   : > { %1181 = vst.msk [vmem:[%s1944_s25 + $0x68] sm:$0xf] %vm1154_vm3, %v1468_v61  ;;  %1213 = vst.msk [vmem:[%s1944_s25 + $0xe8] sm:$0xf] %vm1154_vm3, %v1500_v62  ;;  %v1469_v5 = vpack.c.bf16 %v861_v63, %v861_v63  ;;  %v1501_v6 = vpack.c.bf16 %v893_v0, %v893_v0 }
 0x156   : > { %1179 = vst.msk [vmem:[%s1944_s25 + $0x60] sm:$0xf] %vm1154_vm3, %v1466_v1  ;;  %1211 = vst.msk [vmem:[%s1944_s25 + $0xe0] sm:$0xf] %vm1154_vm3, %v1498_v2  ;;  %v1467_v7 = vpack.c.bf16 %v859_v3, %v859_v3  ;;  %v1499_v8 = vpack.c.bf16 %v891_v4, %v891_v4  ;;  %v1571_v9 = vpop.f32.mrb[28].mxu0  ;;  %v1603_v10 = vpop.f32.mrb[28].mxu1 }
 0x157   : > { %1182 = vst.msk [vmem:[%s1944_s25 + $0x6c] sm:$0xf] %vm1154_vm3, %v1469_v5  ;;  %1214 = vst.msk [vmem:[%s1944_s25 + $0xec] sm:$0xf] %vm1154_vm3, %v1501_v6  ;;  %v700_v11 = vadd.f32 %v1571_v9, %v1931_v37  ;;  %v828_v12 = vadd.f32 %v1603_v10, %v1931_v37  ;;  %v691_v13 = vpop.f32.mrb[29].mxu0  ;;  %v819_v14 = vpop.f32.mrb[29].mxu1 }
 0x158   : > { %1180 = vst.msk [vmem:[%s1944_s25 + $0x64] sm:$0xf] %vm1154_vm3, %v1467_v7  ;;  %1212 = vst.msk [vmem:[%s1944_s25 + $0xe4] sm:$0xf] %vm1154_vm3, %v1499_v8  ;;  %v692_v15 = vadd.f32 %v1931_v37, %v691_v13  ;;  %v820_v16 = vadd.f32 %v1931_v37, %v819_v14  ;;  %v1572_v17 = vpop.f32.mrb[30].mxu0  ;;  %v1604_v18 = vpop.f32.mrb[30].mxu1 }
 0x159   : > { %v864_v19 = vmax.f32 %v700_v11, 0.0  ;;  %v896_v20 = vmax.f32 %v828_v12, 0.0  ;;  %v703_v21 = vadd.f32 %v1572_v17, %v1931_v37  ;;  %v831_v22 = vadd.f32 %v1604_v18, %v1931_v37  ;;  %v694_v23 = vpop.f32.mrb[31].mxu0  ;;  %v822_v24 = vpop.f32.mrb[31].mxu1 }
 0x15a   : > { %v862_v25 = vmax.f32 %v692_v15, 0.0  ;;  %v894_v26 = vmax.f32 %v820_v16, 0.0  ;;  %v695_v27 = vadd.f32 %v1931_v37, %v694_v23  ;;  %v823_v28 = vadd.f32 %v1931_v37, %v822_v24 }
 0x15b   : > { %v1472_v29 = vpack.c.bf16 %v864_v19, %v864_v19  ;;  %v1504_v30 = vpack.c.bf16 %v896_v20, %v896_v20  ;;  %v865_v31 = vmax.f32 %v703_v21, 0.0  ;;  %v897_v32 = vmax.f32 %v831_v22, 0.0 }
 0x15c   : > { %v1470_v33 = vpack.c.bf16 %v862_v25, %v862_v25  ;;  %v1502_v34 = vpack.c.bf16 %v894_v26, %v894_v26  ;;  %v863_v35 = vmax.f32 %v695_v27, 0.0  ;;  %v895_v36 = vmax.f32 %v823_v28, 0.0 }
 0x15d   : > { %1185 = vst.msk [vmem:[%s1944_s25 + $0x78] sm:$0xf] %vm1154_vm3, %v1472_v29  ;;  %1217 = vst.msk [vmem:[%s1944_s25 + $0xf8] sm:$0xf] %vm1154_vm3, %v1504_v30  ;;  %v1473_v38 = vpack.c.bf16 %v865_v31, %v865_v31  ;;  %v1505_v39 = vpack.c.bf16 %v897_v32, %v897_v32 }
 0x15e   : > { %1183 = vst.msk [vmem:[%s1944_s25 + $0x70] sm:$0xf] %vm1154_vm3, %v1470_v33  ;;  %1215 = vst.msk [vmem:[%s1944_s25 + $0xf0] sm:$0xf] %vm1154_vm3, %v1502_v34  ;;  %v1471_v37 = vpack.c.bf16 %v863_v35, %v863_v35  ;;  %v1503_v40 = vpack.c.bf16 %v895_v36, %v895_v36 }
 0x15f   : > { %1186 = vst.msk [vmem:[%s1944_s25 + $0x7c] sm:$0xf] %vm1154_vm3, %v1473_v38  ;;  %1218 = vst.msk [vmem:[%s1944_s25 + $0xfc] sm:$0xf] %vm1154_vm3, %v1505_v39 }
 0x160   : > { %1184 = vst.msk [vmem:[%s1944_s25 + $0x74] sm:$0xf] %vm1154_vm3, %v1471_v37  ;;  %1216 = vst.msk [vmem:[%s1944_s25 + $0xf4] sm:$0xf] %vm1154_vm3, %v1503_v40 }
 0x161 PF: > { %s15_s12 = sadd.s32 1, %s1742_s12  }
 0x162   : > { %p12_p2 = scmp.ge.s32.totalorder %s15_s12, 5  }
 0x164   :  { %14 = sbr.rel (!%p12_p2) target bundleno = 2 (0x2), region = 71 }
 0x16b   :  { %1241 = vsyncpa [#allocation3], 1 }
 0x16c   :  { %1243 = vsyncpa [#allocation3 + $0x1], 1 }
 0x16d   :  { %1244 = vsyncpa [#allocation5], 1 }

// kernel: net_forward.5
= control target key start
LH: loop header
LB: loop body
LE: loop exit
PB: predicated region body
PF: predicated region fallthrough
CT: control target
= control target key end

     0   :  { %s1738_s18 = smov 0   ;;  %s1740_s19 = smov 0   ;;  %s1891_s0 = inlined_call_operand.vmem [shape: bf16[8,9216], index: 0, kind: input, shape index: {}]   ;;  %s1892_s1 = inlined_call_operand.vmem [shape: bf16[9216,128], index: 1, kind: input, shape index: {}]   ;;  %s1893_s2 = inlined_call_operand.vmem [shape: f32[1,128], index: 2, kind: input, shape index: {}]   ;;  %s1894_s3 = inlined_call_operand.vmem [shape: bf16[128,128], index: 3, kind: input, shape index: {}]   ;;  %s1895_s4 = inlined_call_operand.vmem [shape: f32[1,128], index: 4, kind: input, shape index: {}]   ;;  %s1896_s5 = inlined_call_operand.vmem [shape: f32[8,128], index: 5, kind: output, shape index: {}]  }
   0x1   :  { %s1742_s20 = smov 0  }
   0x2 LB: > { %s24_s21 = sadd.s32 1, %s1697_s19  ;;  %p1312_p0 = scmp.ge.s32.totalorder %s1701_s20, 1  ;;  %s1701_s20 = sphi %s1742_s20, %s15_s20   ;;  %s1697_s19 = sphi %s1740_s19, %s1898_s19   ;;  %s1693_s18 = sphi %s1738_s18, %s1897_s18  }
   0x3   : > { %p25_p1 = scmp.ge.s32.totalorder %s24_s21, 8  ;;  %p217_p2 = scmp.lt.s32.totalorder %s1701_s20, 9 }
   0x5   : > { %s1900_s21 = smov (%p25_p1, %s24_s21), 0  ;;  %p218_p3 = pnand %p1312_p0, %p217_p2 }
   0x6   : > { %s253_s22 = smul.u32 (!%p218_p3), 9, %s1693_s18  ;;  %p1315_p6 = scmp.ne.s32.totalorder (!%p218_p3), %s1693_s18, 0 }
   0x7   : > { %221 = sbr.rel (%p218_p3) target bundleno = 881 (0x371), region = 40 }
   0x8   : > { %s263_s23 = smul.u32 (!%p218_p3), 144, %s1693_s18  ;;  %p256_p4 = scmp.lt.s32.totalorder (!%p218_p3), %s253_s22, 71 }
   0xa   : > { %p264_p5 = scmp.lt.s32.totalorder (!%p218_p3), %s263_s23, 1151 }
   0xe   : > { %s1902_s22 = smov (!%p256_p4, %s253_s22), 71  ;;  %s1904_s23 = smov (!%p264_p5, %s263_s23), 1151 }
   0xf   : > { %s1313_s24 = sshll.u32 %s1902_s22, 2  ;;  %s1314_s28 = sshll.u32 %s1904_s23, 2  ;;  %v1703_v0 = vmov (!%p1315_p6), 0.0  }
  0x10   : > { %s1763_s27 = scalar_lea.vmem %s1891_s0, %s1313_s24  ;;  %s1768_s6 = scalar_lea.vmem %s1892_s1, %s1314_s28  ;;  %278 = vst [vmem:[#allocation2] sm:$0xff] (!%p1315_p6), %v1703_v0 }
  0x11   : > { %277 = sbr.rel (%p1315_p6) target bundleno = 24 (0x18), region = 44 }
  0x18 PF: > { %v1586_v1 = vld [vmem:[%s1768_s6 + $0x40] sm:$0xff]   ;;  %v1590_v5 = vld [vmem:[%s1768_s6 + $0x48] sm:$0xff]   ;;  %v1594_v9 = vld [vmem:[%s1768_s6 + $0x50] sm:$0xff]   ;;  %vm1705_vm0 = vmmov 0   ;;  %p1397_p7 = scmp.ne.s32.totalorder %s1693_s18, 7 }
  0x19   : > { %v1587_v2 = vld [vmem:[%s1768_s6 + $0xc0] sm:$0xff]   ;;  %1411 = vmatprep.subr.bf16.mxu0 %v1586_v1  ;;  %v1591_v6 = vld [vmem:[%s1768_s6 + $0xc8] sm:$0xff]   ;;  %v1595_v10 = vld [vmem:[%s1768_s6 + $0xd0] sm:$0xff]   ;;  %vm1707_vm1 = vmmov (!%p1397_p7), 0  }
  0x1a   : > { %v1588_v3 = vld [vmem:[%s1768_s6] sm:$0xff]   ;;  %1433 = vmatprep.subr.bf16.mxu1 %v1587_v2  ;;  %v1592_v7 = vld [vmem:[%s1768_s6 + $0x8] sm:$0xff]   ;;  %v1596_v11 = vld [vmem:[%s1768_s6 + $0x10] sm:$0xff]  }
  0x1b   : > { %v1589_v4 = vld [vmem:[%s1768_s6 + $0x80] sm:$0xff]   ;;  %1412 = vmatpush3.bf16.msra.mxu0 %v1588_v3  ;;  %v1593_v8 = vld [vmem:[%s1768_s6 + $0x88] sm:$0xff]   ;;  %v1597_v12 = vld [vmem:[%s1768_s6 + $0x90] sm:$0xff]  }
  0x1c   : > { %1434 = vmatpush3.bf16.msra.mxu1 %v1589_v4  ;;  %1413 = vmatprep.subr.bf16.mxu0 %v1590_v5  ;;  %v1598_v13 = vld [vmem:[%s1768_s6 + $0x58] sm:$0xff]   ;;  %v1602_v17 = vld [vmem:[%s1768_s6 + $0x60] sm:$0xff]   ;;  %v1606_v21 = vld [vmem:[%s1768_s6 + $0x68] sm:$0xff]  }
  0x1d   : > { %1435 = vmatprep.subr.bf16.mxu1 %v1591_v6  ;;  %v1599_v14 = vld [vmem:[%s1768_s6 + $0xd8] sm:$0xff]   ;;  %v1603_v18 = vld [vmem:[%s1768_s6 + $0xe0] sm:$0xff]   ;;  %v1607_v22 = vld [vmem:[%s1768_s6 + $0xe8] sm:$0xff]  }
  0x1e   : > { %v1600_v15 = vld [vmem:[%s1768_s6 + $0x18] sm:$0xff]   ;;  %v1604_v19 = vld [vmem:[%s1768_s6 + $0x20] sm:$0xff]   ;;  %v1608_v23 = vld [vmem:[%s1768_s6 + $0x28] sm:$0xff]  }
  0x1f   : > { %1414 = vmatpush3.bf16.msra.mxu0 %v1592_v7  ;;  %v1601_v16 = vld [vmem:[%s1768_s6 + $0x98] sm:$0xff]   ;;  %v1605_v20 = vld [vmem:[%s1768_s6 + $0xa0] sm:$0xff]   ;;  %v1609_v24 = vld [vmem:[%s1768_s6 + $0xa8] sm:$0xff]  }
  0x20   : > { %1436 = vmatpush3.bf16.msra.mxu1 %v1593_v8  ;;  %1415 = vmatprep.subr.bf16.mxu0 %v1594_v9  ;;  %v1610_v25 = vld [vmem:[%s1768_s6 + $0x70] sm:$0xff]   ;;  %v1614_v29 = vld [vmem:[%s1768_s6 + $0x78] sm:$0xff]   ;;  %v280_v33 = vld [vmem:[%s1763_s27] sm:$0xff] }
  0x21   : > { %1437 = vmatprep.subr.bf16.mxu1 %v1595_v10  ;;  %v1611_v26 = vld [vmem:[%s1768_s6 + $0xf0] sm:$0xff]   ;;  %v1615_v30 = vld [vmem:[%s1768_s6 + $0xf8] sm:$0xff]   ;;  %v281_v34 = vld [vmem:[%s1763_s27 + $0x8] sm:$0xff]  ;;  %v1316_v35 = vcombine.low %v280_v33, %v280_v33  ;;  %v1317_v36 = vcombine.high %v280_v33, %v280_v33 }
  0x22   : > { %v1612_v27 = vld [vmem:[%s1768_s6 + $0x30] sm:$0xff]   ;;  %v1616_v31 = vld [vmem:[%s1768_s6 + $0x38] sm:$0xff]   ;;  %v1318_v37 = vcombine.low %v281_v34, %v281_v34  ;;  %v1319_v38 = vcombine.high %v281_v34, %v281_v34  ;;  %v1622_v39 = vld [vmem:[%s1768_s6 + $0x140] sm:$0xff]  }
  0x23   : > { %1416 = vmatpush3.bf16.msra.mxu0 %v1596_v11  ;;  %v1613_v28 = vld [vmem:[%s1768_s6 + $0xb0] sm:$0xff]   ;;  %v1617_v32 = vld [vmem:[%s1768_s6 + $0xb8] sm:$0xff]   ;;  %v1623_v40 = vld [vmem:[%s1768_s6 + $0x100] sm:$0xff]   ;;  %925 = vmatprep.mubr.bf16.mxu0 %v1317_v36 }
  0x24   : > { %1438 = vmatpush3.bf16.msra.mxu1 %v1597_v12  ;;  %1417 = vmatprep.subr.bf16.mxu0 %v1598_v13  ;;  %v1624_v41 = vld [vmem:[%s1768_s6 + $0x1c0] sm:$0xff]   ;;  %v1626_v43 = vld [vmem:[%s1768_s6 + $0x148] sm:$0xff]   ;;  %v1630_v47 = vld [vmem:[%s1768_s6 + $0x150] sm:$0xff]  }
  0x25   : > { %1439 = vmatprep.subr.bf16.mxu1 %v1599_v14  ;;  %965 = vmatprep.mubr.bf16.mxu1 %v1319_v38  ;;  %v1625_v42 = vld [vmem:[%s1768_s6 + $0x180] sm:$0xff]   ;;  %v1627_v44 = vld [vmem:[%s1768_s6 + $0x108] sm:$0xff]   ;;  %v1631_v48 = vld [vmem:[%s1768_s6 + $0x110] sm:$0xff]   ;;  %v1704_v14 = vmov 0.0  }
  0x26   : > { %v1628_v45 = vld [vmem:[%s1768_s6 + $0x1c8] sm:$0xff]   ;;  %v1632_v49 = vld [vmem:[%s1768_s6 + $0x1d0] sm:$0xff]   ;;  %v1634_v51 = vld [vmem:[%s1768_s6 + $0x158] sm:$0xff]  }
  0x27   : > { %1418 = vmatpush3.bf16.msra.mxu0 %v1600_v15  ;;  %v1629_v46 = vld [vmem:[%s1768_s6 + $0x188] sm:$0xff]   ;;  %v1633_v50 = vld [vmem:[%s1768_s6 + $0x190] sm:$0xff]   ;;  %v1635_v52 = vld [vmem:[%s1768_s6 + $0x118] sm:$0xff]  }
  0x28   : > { %1440 = vmatpush3.bf16.msra.mxu1 %v1601_v16  ;;  %1419 = vmatprep.subr.bf16.mxu0 %v1602_v17  ;;  %v1636_v53 = vld [vmem:[%s1768_s6 + $0x1d8] sm:$0xff]   ;;  %v1638_v55 = vld [vmem:[%s1768_s6 + $0x160] sm:$0xff]   ;;  %v1642_v59 = vld [vmem:[%s1768_s6 + $0x168] sm:$0xff]  }
  0x29   : > { %1441 = vmatprep.subr.bf16.mxu1 %v1603_v18  ;;  %v1637_v54 = vld [vmem:[%s1768_s6 + $0x198] sm:$0xff]   ;;  %v1639_v56 = vld [vmem:[%s1768_s6 + $0x120] sm:$0xff]   ;;  %v1643_v60 = vld [vmem:[%s1768_s6 + $0x128] sm:$0xff]  }
  0x2a   : > { %v1640_v57 = vld [vmem:[%s1768_s6 + $0x1e0] sm:$0xff]   ;;  %v1644_v61 = vld [vmem:[%s1768_s6 + $0x1e8] sm:$0xff]   ;;  %v1646_v63 = vld [vmem:[%s1768_s6 + $0x170] sm:$0xff]  }
  0x2b   : > { %1420 = vmatpush3.bf16.msra.mxu0 %v1604_v19  ;;  %v1641_v58 = vld [vmem:[%s1768_s6 + $0x1a0] sm:$0xff]   ;;  %v1645_v62 = vld [vmem:[%s1768_s6 + $0x1a8] sm:$0xff]   ;;  %v1647_v0 = vld [vmem:[%s1768_s6 + $0x130] sm:$0xff]  }
  0x2c   : > { %1442 = vmatpush3.bf16.msra.mxu1 %v1605_v20  ;;  %1421 = vmatprep.subr.bf16.mxu0 %v1606_v21  ;;  %v1648_v1 = vld [vmem:[%s1768_s6 + $0x1f0] sm:$0xff]   ;;  %v1650_v3 = vld [vmem:[%s1768_s6 + $0x178] sm:$0xff]   ;;  %v1658_v13 = vld [vmem:[%s1768_s6 + $0x200] sm:$0xff]  }
  0x2d   : > { %1443 = vmatprep.subr.bf16.mxu1 %v1607_v22  ;;  %v1649_v2 = vld [vmem:[%s1768_s6 + $0x1b0] sm:$0xff]   ;;  %v1651_v4 = vld [vmem:[%s1768_s6 + $0x138] sm:$0xff]   ;;  %v1659_v15 = vld [vmem:[%s1768_s6 + $0x208] sm:$0xff]  }
  0x2e   : > { %v1652_v5 = vld [vmem:[%s1768_s6 + $0x1f8] sm:$0xff]   ;;  %v282_v6 = vld [vmem:[%s1763_s27 + $0x10] sm:$0xff]  ;;  %v1662_v18 = vld [vmem:[%s1768_s6 + $0x220] sm:$0xff]  }
  0x2f   : > { %1422 = vmatpush3.bf16.msra.mxu0 %v1608_v23  ;;  %v1321_v7 = vcombine.high %v282_v6, %v282_v6  ;;  %v1655_v8 = vld [vmem:[%s1768_s6 + $0x1b8] sm:$0xff]   ;;  %v1320_v9 = vcombine.low %v282_v6, %v282_v6  ;;  %v1660_v16 = vld [vmem:[%s1768_s6 + $0x210] sm:$0xff]   ;;  %v1663_v19 = vld [vmem:[%s1768_s6 + $0x228] sm:$0xff]  }
  0x30   : > { %1444 = vmatpush3.bf16.msra.mxu1 %v1609_v24  ;;  %1423 = vmatprep.subr.bf16.mxu0 %v1610_v25  ;;  %v283_v10 = vld [vmem:[%s1763_s27 + $0x18] sm:$0xff]  ;;  %v1664_v20 = vld [vmem:[%s1768_s6 + $0x230] sm:$0xff]   ;;  %v1666_v22 = vld [vmem:[%s1763_s27 + $0x20] ss:$0 sps:$4 sm:$0xff]  }
  0x31   : > { %1445 = vmatprep.subr.bf16.mxu1 %v1611_v26  ;;  %v1322_v11 = vcombine.low %v283_v10, %v283_v10  ;;  %v1323_v12 = vcombine.high %v283_v10, %v283_v10  ;;  %v1661_v17 = vld [vmem:[%s1768_s6 + $0x218] sm:$0xff]  }
  0x32   : > { %v1665_v21 = vld [vmem:[%s1768_s6 + $0x238] sm:$0xff]  }
  0x33   : > { %1424 = vmatpush3.bf16.msra.mxu0 %v1612_v27 }
  0x34   : > { %1446 = vmatpush3.bf16.msra.mxu1 %v1613_v28  ;;  %1425 = vmatprep.subr.bf16.mxu0 %v1614_v29 }
  0x35   : > { %1447 = vmatprep.subr.bf16.mxu1 %v1615_v30 }
  0x37   : > { %1426 = vmatpush3.bf16.msra.mxu0 %v1616_v31 }
  0x38   : > { %1448 = vmatpush3.bf16.msra.mxu1 %v1617_v32  ;;  %1455 = vmatprep.subr.bf16.mxu0 %v1622_v39 }
  0x39   : > { %1477 = vmatprep.subr.bf16.mxu1 %v1624_v41 }
  0x3a   : > { %926 = vmatmul.mubr.bf16.vlgmr.msra.gmra.mrb[0].mxu0 %v1316_v35 }
  0x3b   : > { %966 = vmatmul.mubr.bf16.vlgmr.msra.gmra.mrb[0].mxu1 %v1318_v37  ;;  %1456 = vmatpush3.bf16.msra.mxu0 %v1623_v40 }
  0x3c   : > { %1478 = vmatpush3.bf16.msra.mxu1 %v1625_v42  ;;  %1457 = vmatprep.subr.bf16.mxu0 %v1626_v43 }
  0x3d   : > { %1479 = vmatprep.subr.bf16.mxu1 %v1628_v45  ;;  %1005 = vmatprep.mubr.bf16.mxu0 %v1321_v7 }
  0x3e   : > { %1045 = vmatprep.mubr.bf16.mxu1 %v1323_v12 }
  0x3f   : > { %1458 = vmatpush3.bf16.msra.mxu0 %v1627_v44 }
  0x40   : > { %1480 = vmatpush3.bf16.msra.mxu1 %v1629_v46  ;;  %1459 = vmatprep.subr.bf16.mxu0 %v1630_v47  ;;  %v279_v46 = vld [vmem:[#allocation2] sm:$0xff] }
  0x41   : > { %1481 = vmatprep.subr.bf16.mxu1 %v1632_v49 }
  0x43   : > { %1460 = vmatpush3.bf16.msra.mxu0 %v1631_v48 }
  0x44   : > { %1482 = vmatpush3.bf16.msra.mxu1 %v1633_v50  ;;  %1461 = vmatprep.subr.bf16.mxu0 %v1634_v51 }
  0x45   : > { %1483 = vmatprep.subr.bf16.mxu1 %v1636_v53  ;;  %v1667_v53 = vld [vmem:[%s1894_s3] sm:$0xff] (!%p1397_p7)  }
  0x47   : > { %1462 = vmatpush3.bf16.msra.mxu0 %v1635_v52 }
  0x48   : > { %1484 = vmatpush3.bf16.msra.mxu1 %v1637_v54  ;;  %1463 = vmatprep.subr.bf16.mxu0 %v1638_v55  ;;  %v1706_v54 = vmov (!%p1397_p7), 0.0   ;;  %v1668_v55 = vld [vmem:[%s1894_s3 + $0x8] sm:$0xff] (!%p1397_p7)  }
  0x49   : > { %1485 = vmatprep.subr.bf16.mxu1 %v1640_v57  ;;  %v1670_v57 = vld [vmem:[%s1894_s3 + $0x18] sm:$0xff] (!%p1397_p7)  }
  0x4b   : > { %1464 = vmatpush3.bf16.msra.mxu0 %v1639_v56  ;;  %v1669_v56 = vld [vmem:[%s1894_s3 + $0x10] sm:$0xff] (!%p1397_p7)  }
  0x4c   : > { %1486 = vmatpush3.bf16.msra.mxu1 %v1641_v58  ;;  %1465 = vmatprep.subr.bf16.mxu0 %v1642_v59  ;;  %v1671_v58 = vld [vmem:[%s1894_s3 + $0x20] sm:$0xff] (!%p1397_p7)   ;;  %v1672_v59 = vld [vmem:[%s1894_s3 + $0x28] sm:$0xff] (!%p1397_p7)  }
  0x4d   : > { %1487 = vmatprep.subr.bf16.mxu1 %v1644_v61  ;;  %v1398_v61 = vld [vmem:[%s1893_s2] ss:$0 sm:$0xff] (!%p1397_p7) }
  0x4f   : > { %1466 = vmatpush3.bf16.msra.mxu0 %v1643_v60 }
  0x50   : > { %1488 = vmatpush3.bf16.msra.mxu1 %v1645_v62  ;;  %1467 = vmatprep.subr.bf16.mxu0 %v1646_v63  ;;  %v1673_v63 = vld [vmem:[%s1894_s3 + $0x30] sm:$0xff] (!%p1397_p7)  }
  0x51   : > { %1489 = vmatprep.subr.bf16.mxu1 %v1648_v1  ;;  %v1674_v1 = vld [vmem:[%s1894_s3 + $0x38] sm:$0xff] (!%p1397_p7)  }
  0x53   : > { %1468 = vmatpush3.bf16.msra.mxu0 %v1647_v0 }
  0x54   : > { %1490 = vmatpush3.bf16.msra.mxu1 %v1649_v2  ;;  %1469 = vmatprep.subr.bf16.mxu0 %v1650_v3  ;;  %v1399_v3 = vld [vmem:[%s1895_s4] ss:$0 sm:$0xff] (!%p1397_p7) }
  0x55   : > { %1491 = vmatprep.subr.bf16.mxu1 %v1652_v5 }
  0x57   : > { %1470 = vmatpush3.bf16.msra.mxu0 %v1651_v4 }
  0x58   : > { %1492 = vmatpush3.bf16.msra.mxu1 %v1655_v8  ;;  %1517 = vmatprep.subr.bf16.mxu0 %v1704_v14 }
  0x5a   : > { %1006 = vmatmul.mubr.bf16.vlgmr.msra.gmra.mrb[4].mxu0 %v1320_v9 }
  0x5b   : > { %1518 = vmatpush3.bf16.msra.mxu0 %v1658_v13  ;;  %1046 = vmatmul.mubr.bf16.vlgmr.msra.gmra.mrb[4].mxu1 %v1322_v11 }
  0x5c   : > { %1519 = vmatprep.subr.bf16.mxu0 %v1704_v14  ;;  %1533 = vmatprep.mubr.msk.bf16.mxu0 %vm1705_vm0, %v1704_v14 }
  0x5f   : > { %1520 = vmatpush3.bf16.msra.mxu0 %v1659_v15 }
  0x60   : > { %1521 = vmatprep.subr.bf16.mxu0 %v1704_v14 }
  0x63   : > { %1522 = vmatpush3.bf16.msra.mxu0 %v1660_v16 }
  0x64   : > { %1523 = vmatprep.subr.bf16.mxu0 %v1704_v14 }
  0x67   : > { %1524 = vmatpush3.bf16.msra.mxu0 %v1661_v17 }
  0x68   : > { %1525 = vmatprep.subr.bf16.mxu0 %v1704_v14 }
  0x6b   : > { %1526 = vmatpush3.bf16.msra.mxu0 %v1662_v18 }
  0x6c   : > { %1527 = vmatprep.subr.bf16.mxu0 %v1704_v14 }
  0x6f   : > { %1528 = vmatpush3.bf16.msra.mxu0 %v1663_v19 }
  0x70   : > { %1529 = vmatprep.subr.bf16.mxu0 %v1704_v14 }
  0x73   : > { %1530 = vmatpush3.bf16.msra.mxu0 %v1664_v20 }
  0x74   : > { %1531 = vmatprep.subr.bf16.mxu0 %v1704_v14 }
  0x77   : > { %1532 = vmatpush3.bf16.msra.mxu0 %v1665_v21 }
  0x78   : > { %1537 = vmatprep.subr.bf16.mxu0 (!%p1397_p7), %v1706_v54 }
  0x7a   : > { %1534 = vmatmul.mubr.bf16.vlgmr.msra.gmra.mrb[8].mxu0 %v1666_v22 }
  0x7b   : > { %1538 = vmatpush3.bf16.msra.mxu0 (!%p1397_p7), %v1667_v53  ;;  %1553 = vmatprep.mubr.msk.bf16.mxu0 (!%p1397_p7), %vm1707_vm1, %v1706_v54 }
  0x7c   : > { %1539 = vmatprep.subr.bf16.mxu0 (!%p1397_p7), %v1706_v54 }
  0x7f   : > { %1540 = vmatpush3.bf16.msra.mxu0 (!%p1397_p7), %v1668_v55 }
  0x80   : > { %1541 = vmatprep.subr.bf16.mxu0 (!%p1397_p7), %v1706_v54 }
  0x83   : > { %1542 = vmatpush3.bf16.msra.mxu0 (!%p1397_p7), %v1669_v56 }
  0x84   : > { %1543 = vmatprep.subr.bf16.mxu0 (!%p1397_p7), %v1706_v54 }
  0x87   : > { %1544 = vmatpush3.bf16.msra.mxu0 (!%p1397_p7), %v1670_v57 }
  0x88   : > { %1545 = vmatprep.subr.bf16.mxu0 (!%p1397_p7), %v1706_v54 }
  0x8b   : > { %1546 = vmatpush3.bf16.msra.mxu0 (!%p1397_p7), %v1671_v58 }
  0x8c   : > { %1547 = vmatprep.subr.bf16.mxu0 (!%p1397_p7), %v1706_v54 }
  0x8f   : > { %1548 = vmatpush3.bf16.msra.mxu0 (!%p1397_p7), %v1672_v59 }
  0x90   : > { %1549 = vmatprep.subr.bf16.mxu0 (!%p1397_p7), %v1706_v54 }
  0x93   : > { %1550 = vmatpush3.bf16.msra.mxu0 (!%p1397_p7), %v1673_v63 }
  0x94   : > { %1551 = vmatprep.subr.bf16.mxu0 (!%p1397_p7), %v1706_v54 }
  0x97   : > { %1552 = vmatpush3.bf16.msra.mxu0 (!%p1397_p7), %v1674_v1 }
 0x10d   : > { %v1427_v23 = vpop.f32.mrb[0].mxu0 }
 0x10e   : > { %v1449_v24 = vpop.f32.mrb[0].mxu1  ;;  %v1428_v25 = vpop.f32.mrb[1].mxu0 }
 0x10f   : > { %v1450_v26 = vpop.f32.mrb[1].mxu1  ;;  %v1429_v27 = vadd.f32 %v1428_v25, %v1427_v23  ;;  %v1430_v29 = vpop.f32.mrb[2].mxu0 }
 0x110   : > { %v1451_v28 = vadd.f32 %v1450_v26, %v1449_v24  ;;  %v1452_v30 = vpop.f32.mrb[2].mxu1  ;;  %v1431_v31 = vpop.f32.mrb[3].mxu0 }
 0x111   : > { %v1453_v32 = vpop.f32.mrb[3].mxu1 }
 0x112   : > { %v968_v33 = vadd.f32 %v1451_v28, %v1429_v27 }
 0x12d   : > { %v1471_v34 = vpop.f32.mrb[4].mxu0 }
 0x12e   : > { %v1472_v35 = vpop.f32.mrb[5].mxu0  ;;  %v1493_v36 = vpop.f32.mrb[4].mxu1 }
 0x12f   : > { %v1473_v37 = vadd.f32 %v1472_v35, %v1471_v34  ;;  %v1474_v38 = vpop.f32.mrb[6].mxu0  ;;  %v1494_v39 = vpop.f32.mrb[5].mxu1 }
 0x130   : > { %v1475_v40 = vpop.f32.mrb[7].mxu0  ;;  %v1495_v41 = vadd.f32 %v1494_v39, %v1493_v36  ;;  %v1496_v42 = vpop.f32.mrb[6].mxu1 }
 0x131   : > { %v1008_v43 = vadd.f32 %v1473_v37, %v968_v33  ;;  %v1497_v44 = vpop.f32.mrb[7].mxu1 }
 0x133   : > { %v1048_v45 = vadd.f32 %v1495_v41, %v1008_v43 }
 0x14c   : > { %1098 = sbr.rel (%p1397_p7) target bundleno = 881 (0x371), region = 48 }
 0x14d   : > { %v1087_v47 = vpop.f32.mrb[8].mxu0 }
 0x14e   : > { %v1088_v48 = vadd.f32 %v1087_v47, %v1048_v45  ;;  %v1535_v49 = vpop.f32.mrb[9].mxu0 }
 0x14f   : > { %v1090_v50 = vpop.f32.mrb[10].mxu0 }
 0x150   : > { %v1093_v51 = vadd.f32 %v1088_v48, %v279_v46  ;;  %v1536_v52 = vpop.f32.mrb[11].mxu0 }
 0x152   : > { %1094 = vst [vmem:[#allocation2] sm:$0xff] %v1093_v51 }
 0x159   : > { %v1099_v60 = vld [vmem:[#allocation2] sm:$0xff] }
 0x15a   : > { %v1107_v62 = vadd.f32 %v1398_v61, %v1099_v60 }
 0x15c   : > { %v1108_v0 = vmax.f32 %v1107_v62, 0.0 }
 0x15e   : > { %v1109_v2 = vpack.c.bf16 %v1108_v0, %v1108_v0 }
 0x160   : > { %1554 = vmatmul.mubr.bf16.vlgmr.msra.gmra.mrb[0].mxu0 %v1109_v2 }
 0x233   : > { %v1215_v4 = vpop.f32.mrb[0].mxu0 }
 0x234   : > { %v1216_v5 = vadd.f32 %v1399_v3, %v1215_v4  ;;  %v1555_v6 = vpop.f32.mrb[1].mxu0 }
 0x235   : > { %v1218_v7 = vpop.f32.mrb[2].mxu0 }
 0x236   : > { %1221 = vmax.xlane.f32.xlu0 %v1216_v5  ;;  %v1556_v8 = vpop.f32.mrb[3].mxu0 }
 0x2c3   : > { %v1222_v9 = vpop.xlane.xlu0 %1221 }
 0x2c4   : > { %v1223_v10 = vsub.f32 %v1216_v5, %v1222_v9 }
 0x2c6   : > { %v1224_v11 = vmul.f32 1.442695, %v1223_v10 }
 0x2c8   : > { %1675 = vpow2.f32 %v1224_v11 }
 0x2d2   : > { %v1676_v12 = vpop.eup %1675 }
 0x2d3   : > { %1226 = vadd.xlane.f32.xlu0 %v1676_v12 }
 0x360   : > { %v1227_v13 = vpop.xlane.xlu0 %1226 }
 0x361   : > { %1677 = vlog2.f32 %v1227_v13 }
 0x36b   : > { %v1678_v14 = vpop.eup %1677 }
 0x36c   : > { %v1229_v15 = vmul.f32 0.6931472, %v1678_v14 }
 0x36e   : > { %v1230_v16 = vsub.f32 %v1223_v10, %v1229_v15 }
 0x370   : > { %1231 = vst [vmem:[%s1896_s5] sm:$0xff] %v1230_v16 }
 0x371 PF: > { %s15_s20 = sadd.s32 1, %s1701_s20   ;;  %s1897_s18 = smov %s1697_s19 }
 0x372   : > { %p12_p8 = scmp.ge.s32.totalorder %s15_s20, 10   ;;  %s1898_s19 = smov %s1900_s21 }
 0x374   :  { %14 = sbr.rel (!%p12_p8) target bundleno = 2 (0x2), region = 81 }

// kernel: net_forward.4
= control target key start
LH: loop header
LB: loop body
LE: loop exit
PB: predicated region body
PF: predicated region fallthrough
CT: control target
= control target key end

     0   :  { %s11330_s12 = smov 0   ;;  %s13338_s0 = inlined_call_operand.vmem [shape: bf16[2,26,26,32], index: 0, kind: input, shape index: {}]   ;;  %s13339_s1 = inlined_call_operand.vmem [shape: f32[9,32,64], index: 1, kind: input, shape index: {}]   ;;  %s13340_s2 = inlined_call_operand.vmem [shape: f32[1,64], index: 2, kind: input, shape index: {}]   ;;  %s13341_s3 = inlined_call_operand.vmem [shape: bf16[2,12,12,64], index: 3, kind: output, shape index: {}]  }
   0x1 LB: > { %s8044_s13 = sadd.s32 4294967295, %s11308_s12   ;;  %p8048_p0 = scmp.ge.s32.totalorder %s11308_s12, 1  ;;  %s11308_s12 = sphi %s11330_s12, %s13_s12  }
   0x2   : > { %p137_p1 = scmp.lt.s32.totalorder %s11308_s12, 3 }
   0x4   : > { %p138_p2 = pnand %p8048_p0, %p137_p1 }
   0x6   : > { %141 = sbr.rel (%p138_p2) target bundleno = 916 (0x394), region = 32 }
   0xd   : > { %v8051_v0 = vld [vmem:[%s13339_s1 + $0x20] sm:$0xff]  ;;  %v8052_v1 = vld [vmem:[%s13339_s1 + $0x28] sm:$0xff]  ;;  %p161_p3 = scmp.lt.s32.totalorder %s8044_s13, 1  ;;  %v8053_v5 = vld [vmem:[%s13339_s1 + $0x30] sm:$0xff]  ;;  %vm379_vm0 = vcmask 261120   ;;  %vm383_vm1 = vcmask 254976  }
   0xe   : > { %v8351_v2 = vld [vmem:[%s13339_s1 + $0x80] sm:$0xff]  ;;  %v10639_v3 = vpack.c.bf16 %v8052_v1, %v8051_v0  ;;  %v8352_v4 = vld [vmem:[%s13339_s1 + $0x88] sm:$0xff]  ;;  %v8054_v6 = vld [vmem:[%s13339_s1 + $0x38] sm:$0xff]  ;;  %vm7603_vm2 = vcmask 523264   ;;  %vm7965_vm3 = vcmask 517120   ;;  %vm7963_vm4 = vcmask 519168  }
   0xf   : > { %v11356_v7 = vpack.c.bf16 %v8352_v4, %v8351_v2  ;;  %v10643_v8 = vpack.c.bf16 %v8054_v6, %v8053_v5  ;;  %v8353_v9 = vld [vmem:[%s13339_s1 + $0x90] sm:$0xff]  ;;  %v8354_v10 = vld [vmem:[%s13339_s1 + $0x98] sm:$0xff]  ;;  %s13431_s13 = smov (!%p161_p3, %s8044_s13), 1  ;;  %v557_v11 = vld [vmem:[%s13339_s1] sm:$0xff] }
  0x10   : > { %10640 = vmatprep.subr.bf16.mxu1 %v10639_v3  ;;  %v11369_v12 = vpack.c.bf16 %v8354_v10, %v8353_v9  ;;  %v558_v13 = vld [vmem:[%s13339_s1 + $0x8] sm:$0xff]  ;;  %v8427_v14 = vld [vmem:[%s13339_s1 + $0xa0] sm:$0xff]  ;;  %s11291_s11 = smul.u32 416, %s13431_s13  ;;  %v8429_v16 = vld [vmem:[%s13339_s1 + $0xb0] sm:$0xff] }
  0x11   : > { %v8428_v15 = vld [vmem:[%s13339_s1 + $0xa8] sm:$0xff]  ;;  %10672 = vmatprep.subr.bf16.mxu0 %v11356_v7  ;;  %10642 = vmatpush3.bf16.msra.mxu1 %v10639_v3  ;;  %v8430_v17 = vld [vmem:[%s13339_s1 + $0xb8] sm:$0xff]  ;;  %v559_v18 = vld [vmem:[%s13339_s1 + $0x10] sm:$0xff]  ;;  %v11392_v19 = vpack.c.bf16 %v558_v13, %v557_v11  ;;  %s11292_s17 = smul.u32 96, %s13431_s13 }
  0x12   : > { %13372 = vst [vmem:[#allocation4_spill] sm:$0xff] %v11369_v12  ;;  %10674 = vmatpush3.bf16.msra.mxu0 %v11356_v7  ;;  %10644 = vmatprep.subr.bf16.mxu1 %v10643_v8  ;;  %v560_v20 = vld [vmem:[%s13339_s1 + $0x18] sm:$0xff]  ;;  %s11401_s24 = scalar_lea.vmem %s13338_s0, %s11291_s11  ;;  %v11403_v21 = vpack.c.bf16 %v8428_v15, %v8427_v14  ;;  %v11408_v25 = vpack.c.bf16 %v8430_v17, %v8429_v16 }
  0x13   : > { %10676 = vmatprep.subr.bf16.mxu0 %v11369_v12  ;;  %v8783_v22 = vld [vmem:[%s11401_s24] sm:$0xff]   ;;  %v8886_v23 = vld [vmem:[%s11401_s24 + $0x10] sm:$0xff]   ;;  %v173_v24 = vld [vmem:[%s11401_s24 + $0x8] ss:$16 sps:$4 sm:$0xff]   ;;  %v11410_v26 = vpack.c.bf16 %v560_v20, %v559_v18  ;;  %s13109_s19 = scalar_lea.vmem %s13341_s3, %s11292_s17 }
  0x14   : > { %v8784_v27 = vunpack.c.l.bf16 %v8783_v22  ;;  %v8785_v28 = vunpack.c.h.bf16 %v8783_v22  ;;  %v8788_v29 = vunpack.c.l.bf16 %v8886_v23  ;;  %v8789_v30 = vunpack.c.h.bf16 %v8886_v23  ;;  %v174_v31 = vld [vmem:[%s11401_s24 + $0xc] sm:$0x1]  ;;  %v178_v32 = vld [vmem:[%s11401_s24 + $0x1c] sm:$0x1]  ;;  %v8887_v33 = vld [vmem:[%s11401_s24 + $0x20] sm:$0xff]  }
  0x15   : > { %10646 = vmatpush3.bf16.msra.mxu1 %v10643_v8  ;;  %v277_v34 = vunpack.c.l.bf16 %v173_v24  ;;  %v281_v35 = vunpack.c.h.bf16 %v173_v24  ;;  %v278_v36 = vunpack.c.l.bf16 %v174_v31  ;;  %v282_v37 = vunpack.c.l.bf16 %v178_v32  ;;  %v181_v38 = vld [vmem:[%s11401_s24 + $0x28] ss:$16 sps:$4 sm:$0xff]   ;;  %v182_v39 = vld [vmem:[%s11401_s24 + $0x2c] sm:$0x1]  ;;  %v8888_v40 = vld [vmem:[%s11401_s24 + $0x30] sm:$0xff]  }
  0x16   : > { %10678 = vmatpush3.bf16.msra.mxu0 %v11369_v12  ;;  %10648 = vmatprep.subr.bf16.mxu1 %v11392_v19  ;;  %380 = vst.msk [vmem:[#allocation2] sm:$0xff] %vm379_vm0, %v8784_v27  ;;  %381 = vst.msk [vmem:[#allocation2 + $0x8] sm:$0xff] %vm379_vm0, %v8785_v28  ;;  %v8792_v41 = vunpack.c.l.bf16 %v8887_v33  ;;  %v8793_v42 = vunpack.c.h.bf16 %v8887_v33  ;;  %v285_v43 = vunpack.c.l.bf16 %v181_v38  ;;  %v286_v44 = vunpack.c.l.bf16 %v182_v39  ;;  %v186_v45 = vld [vmem:[%s11401_s24 + $0x3c] sm:$0x1]  ;;  %v8889_v46 = vld [vmem:[%s11401_s24 + $0x40] sm:$0xff]  }
  0x17   : > { %385 = vst.msk [vmem:[#allocation2 + $0x20] sm:$0xff] %vm379_vm0, %v8788_v29  ;;  %386 = vst.msk [vmem:[#allocation2 + $0x28] sm:$0xff] %vm379_vm0, %v8789_v30  ;;  %10680 = vmatprep.subr.bf16.mxu0 %v11403_v21  ;;  %v189_v47 = vld [vmem:[%s11401_s24 + $0x48] ss:$16 sps:$4 sm:$0xff]   ;;  %v8796_v48 = vunpack.c.l.bf16 %v8888_v40  ;;  %v8797_v49 = vunpack.c.h.bf16 %v8888_v40  ;;  %v289_v50 = vunpack.c.h.bf16 %v181_v38  ;;  %v290_v51 = vunpack.c.l.bf16 %v186_v45  ;;  %v190_v52 = vld [vmem:[%s11401_s24 + $0x4c] sm:$0x1] }
  0x18   : > { %382 = vst.msk [vmem:[#allocation2 + $0x10] sm:$0xff] %vm379_vm0, %v277_v34  ;;  %387 = vst.msk [vmem:[#allocation2 + $0x30] sm:$0xff] %vm379_vm0, %v281_v35  ;;  %v8890_v53 = vld [vmem:[%s11401_s24 + $0x50] sm:$0xff]   ;;  %v194_v54 = vld [vmem:[%s11401_s24 + $0x5c] sm:$0x1]  ;;  %v8800_v55 = vunpack.c.l.bf16 %v8889_v46  ;;  %v8801_v56 = vunpack.c.h.bf16 %v8889_v46  ;;  %v293_v57 = vunpack.c.l.bf16 %v189_v47  ;;  %v294_v58 = vunpack.c.l.bf16 %v190_v52 }
  0x19   : > { %384 = vst.msk [vmem:[#allocation2 + $0x18] sm:$0x3] %vm383_vm1, %v278_v36  ;;  %388 = vst.msk [vmem:[#allocation2 + $0x38] sm:$0x3] %vm383_vm1, %v282_v37  ;;  %v8891_v59 = vld [vmem:[%s11401_s24 + $0x60] sm:$0xff]   ;;  %v8804_v62 = vunpack.c.l.bf16 %v8890_v53  ;;  %v8805_v63 = vunpack.c.h.bf16 %v8890_v53  ;;  %v297_v0 = vunpack.c.h.bf16 %v189_v47  ;;  %v298_v1 = vunpack.c.l.bf16 %v194_v54  ;;  %v8892_v2 = vld [vmem:[%s11401_s24 + $0x70] sm:$0xff]  }
  0x1a   : > { %389 = vst.msk [vmem:[#allocation2 + $0x40] sm:$0xff] %vm379_vm0, %v8792_v41  ;;  %390 = vst.msk [vmem:[#allocation2 + $0x48] sm:$0xff] %vm379_vm0, %v8793_v42  ;;  %v197_v60 = vld [vmem:[%s11401_s24 + $0x68] ss:$16 sps:$4 sm:$0xff]   ;;  %v198_v61 = vld [vmem:[%s11401_s24 + $0x6c] sm:$0x1]  ;;  %v8808_v5 = vunpack.c.l.bf16 %v8891_v59  ;;  %v8809_v6 = vunpack.c.h.bf16 %v8891_v59  ;;  %v8812_v14 = vunpack.c.l.bf16 %v8892_v2  ;;  %v8813_v15 = vunpack.c.h.bf16 %v8892_v2 }
  0x1b   : > { %391 = vst.msk [vmem:[#allocation2 + $0x50] sm:$0xff] %vm379_vm0, %v285_v43  ;;  %393 = vst.msk [vmem:[#allocation2 + $0x60] sm:$0xff] %vm379_vm0, %v8796_v48  ;;  %v202_v3 = vld [vmem:[%s11401_s24 + $0x7c] sm:$0x1]  ;;  %v8893_v4 = vld [vmem:[%s11401_s24 + $0x80] sm:$0xff]   ;;  %v301_v8 = vunpack.c.l.bf16 %v197_v60  ;;  %v302_v9 = vunpack.c.l.bf16 %v198_v61  ;;  %v305_v16 = vunpack.c.h.bf16 %v197_v60 }
  0x1c   : > { %392 = vst.msk [vmem:[#allocation2 + $0x58] sm:$0x3] %vm383_vm1, %v286_v44  ;;  %396 = vst.msk [vmem:[#allocation2 + $0x78] sm:$0x3] %vm383_vm1, %v290_v51  ;;  %v205_v10 = vld [vmem:[%s11401_s24 + $0x88] ss:$16 sps:$4 sm:$0xff]   ;;  %v306_v17 = vunpack.c.l.bf16 %v202_v3  ;;  %v8816_v23 = vunpack.c.l.bf16 %v8893_v4  ;;  %v8817_v24 = vunpack.c.h.bf16 %v8893_v4 }
  0x1d   : > { %394 = vst.msk [vmem:[#allocation2 + $0x68] sm:$0xff] %vm379_vm0, %v8797_v49  ;;  %395 = vst.msk [vmem:[#allocation2 + $0x70] sm:$0xff] %vm379_vm0, %v289_v50  ;;  %v206_v11 = vld [vmem:[%s11401_s24 + $0x8c] sm:$0x1]  ;;  %v8894_v13 = vld [vmem:[%s11401_s24 + $0x90] sm:$0xff]   ;;  %v309_v27 = vunpack.c.l.bf16 %v205_v10  ;;  %v313_v36 = vunpack.c.h.bf16 %v205_v10 }
  0x1e   : > { %397 = vst.msk [vmem:[#allocation2 + $0x80] sm:$0xff] %vm379_vm0, %v8800_v55  ;;  %398 = vst.msk [vmem:[#allocation2 + $0x88] sm:$0xff] %vm379_vm0, %v8801_v56  ;;  %v210_v18 = vld [vmem:[%s11401_s24 + $0x9c] sm:$0x1]  ;;  %v8895_v20 = vld [vmem:[%s11401_s24 + $0xa0] sm:$0xff]   ;;  %v310_v28 = vunpack.c.l.bf16 %v206_v11  ;;  %v8820_v34 = vunpack.c.l.bf16 %v8894_v13  ;;  %v8821_v35 = vunpack.c.h.bf16 %v8894_v13 }
  0x1f   : > { %399 = vst.msk [vmem:[#allocation2 + $0x90] sm:$0xff] %vm379_vm0, %v293_v57  ;;  %401 = vst.msk [vmem:[#allocation2 + $0xa0] sm:$0xff] %vm379_vm0, %v8804_v62  ;;  %v11463_v22 = vld [vmem:[%s11401_s24 + $0xa8] ss:$16 sps:$4 sm:$0xff]   ;;  %v214_v29 = vld [vmem:[%s11401_s24 + $0xac] sm:$0x1]  ;;  %v314_v37 = vunpack.c.l.bf16 %v210_v18  ;;  %v8824_v42 = vunpack.c.l.bf16 %v8895_v20  ;;  %v8825_v43 = vunpack.c.h.bf16 %v8895_v20 }
  0x20   : > { %400 = vst.msk [vmem:[#allocation2 + $0x98] sm:$0x3] %vm383_vm1, %v294_v58  ;;  %404 = vst.msk [vmem:[#allocation2 + $0xb8] sm:$0x3] %vm383_vm1, %v298_v1  ;;  %v8896_v30 = vld [vmem:[%s11401_s24 + $0xb0] sm:$0xff]   ;;  %v561_v32 = vld [vmem:[#allocation2 + $0x1] sm:$0xff]  ;;  %v317_v44 = vunpack.c.l.bf16 %v11463_v22  ;;  %v318_v45 = vunpack.c.l.bf16 %v214_v29  ;;  %v321_v49 = vunpack.c.h.bf16 %v11463_v22 }
  0x21   : > { %402 = vst.msk [vmem:[#allocation2 + $0xa8] sm:$0xff] %vm379_vm0, %v8805_v63  ;;  %403 = vst.msk [vmem:[#allocation2 + $0xb0] sm:$0xff] %vm379_vm0, %v297_v0  ;;  %v218_v31 = vld [vmem:[%s11401_s24 + $0xbc] sm:$0x1]  ;;  %v3501_v33 = vld [vmem:[#allocation2 + $0x21] sm:$0xff]  ;;  %9603 = vmatprep.mubr.msk.f32.mxu1 %vm379_vm0, %v561_v32  ;;  %v8828_v47 = vunpack.c.l.bf16 %v8896_v30  ;;  %v8829_v48 = vunpack.c.h.bf16 %v8896_v30 }
  0x22   : > { %405 = vst.msk [vmem:[#allocation2 + $0xc0] sm:$0xff] %vm379_vm0, %v8808_v5  ;;  %406 = vst.msk [vmem:[#allocation2 + $0xc8] sm:$0xff] %vm379_vm0, %v8809_v6  ;;  %v8897_v38 = vld [vmem:[%s11401_s24 + $0xc0] sm:$0xff]   ;;  %10067 = vmatprep.mubr.msk.f32.mxu0 %vm379_vm0, %v3501_v33  ;;  %v562_v39 = vld [vmem:[#allocation2 + $0x9] sm:$0xff]  ;;  %v322_v50 = vunpack.c.l.bf16 %v218_v31 }
  0x23   : > { %407 = vst.msk [vmem:[#allocation2 + $0xd0] sm:$0xff] %vm379_vm0, %v301_v8  ;;  %409 = vst.msk [vmem:[#allocation2 + $0xe0] sm:$0xff] %vm379_vm0, %v8812_v14  ;;  %v3502_v40 = vld [vmem:[#allocation2 + $0x29] sm:$0xff]  ;;  %v563_v41 = vld [vmem:[#allocation2 + $0x11] sm:$0xff]  ;;  %9604 = vmatmul.mubr.msk.f32.vlgmr.msra.gmra.mrb[0].mxu1 %vm379_vm0, %v562_v39  ;;  %v8832_v54 = vunpack.c.l.bf16 %v8897_v38  ;;  %v8833_v55 = vunpack.c.h.bf16 %v8897_v38 }
  0x24   : > { %408 = vst.msk [vmem:[#allocation2 + $0xd8] sm:$0x3] %vm383_vm1, %v302_v9  ;;  %412 = vst.msk [vmem:[#allocation2 + $0xf8] sm:$0x3] %vm383_vm1, %v306_v17  ;;  %10068 = vmatmul.mubr.msk.f32.vlgmr.msra.gmra.mrb[0].mxu0 %vm379_vm0, %v3502_v40  ;;  %v3503_v46 = vld [vmem:[#allocation2 + $0x31] sm:$0xff]  ;;  %v8503_v51 = vld [vmem:[%s13339_s1 + $0xc0] sm:$0xff]  ;;  %10650 = vmatpush3.bf16.msra.mxu1 %v11392_v19 }
  0x25   : > { %410 = vst.msk [vmem:[#allocation2 + $0xe8] sm:$0xff] %vm379_vm0, %v8813_v15  ;;  %411 = vst.msk [vmem:[#allocation2 + $0xf0] sm:$0xff] %vm379_vm0, %v305_v16  ;;  %v8504_v52 = vld [vmem:[%s13339_s1 + $0xc8] sm:$0xff]  ;;  %10682 = vmatpush3.bf16.msra.mxu0 %v11403_v21  ;;  %9606 = vmatprep.mubr.msk.f32.mxu1 %vm379_vm0, %v563_v41  ;;  %v3506_v21 = vld [vmem:[#allocation2 + $0x51] sm:$0xff] }
  0x26   : > { %413 = vst.msk [vmem:[#allocation2 + $0x100] sm:$0xff] %vm379_vm0, %v8816_v23  ;;  %414 = vst.msk [vmem:[#allocation2 + $0x108] sm:$0xff] %vm379_vm0, %v8817_v24  ;;  %v3504_v53 = vld [vmem:[#allocation2 + $0x41] sm:$0xff]  ;;  %10070 = vmatprep.mubr.msk.f32.mxu0 %vm379_vm0, %v3503_v46  ;;  %v3505_v56 = vld [vmem:[#allocation2 + $0x49] sm:$0xff]  ;;  %10684 = vmatprep.subr.bf16.mxu0 %v11408_v25  ;;  %v11513_v19 = vpack.c.bf16 %v8504_v52, %v8503_v51 }
  0x27   : > { %415 = vst.msk [vmem:[#allocation2 + $0x110] sm:$0xff] %vm379_vm0, %v309_v27  ;;  %417 = vst.msk [vmem:[#allocation2 + $0x120] sm:$0xff] %vm379_vm0, %v8820_v34  ;;  %10652 = vmatprep.subr.bf16.mxu1 %v11410_v26  ;;  %9607 = vmatmul.mubr.msk.f32.gmra.mrb[2].mxu1 %vm379_vm0, %v3501_v33  ;;  %v3507_v57 = vld [vmem:[#allocation2 + $0x61] sm:$0xff]  ;;  %v3508_v58 = vld [vmem:[#allocation2 + $0x69] sm:$0xff] }
  0x28   : > { %416 = vst.msk [vmem:[#allocation2 + $0x118] sm:$0x3] %vm383_vm1, %v310_v28  ;;  %420 = vst.msk [vmem:[#allocation2 + $0x138] sm:$0x3] %vm383_vm1, %v314_v37  ;;  %10071 = vmatmul.mubr.msk.f32.gmra.mrb[2].mxu0 %vm379_vm0, %v3504_v53  ;;  %9609 = vmatprep.mubr.msk.f32.mxu1 %vm379_vm0, %v3502_v40  ;;  %v3509_v59 = vld [vmem:[#allocation2 + $0x71] sm:$0xff]  ;;  %v3510_v0 = vld [vmem:[#allocation2 + $0x81] sm:$0xff] }
  0x29   : > { %418 = vst.msk [vmem:[#allocation2 + $0x128] sm:$0xff] %vm379_vm0, %v8821_v35  ;;  %419 = vst.msk [vmem:[#allocation2 + $0x130] sm:$0xff] %vm379_vm0, %v313_v36  ;;  %10073 = vmatprep.mubr.msk.f32.mxu0 %vm379_vm0, %v3505_v56  ;;  %10686 = vmatpush3.bf16.msra.mxu0 %v11408_v25  ;;  %v221_v60 = vld [vmem:[%s11401_s24 + $0xc8] ss:$16 sps:$4 sm:$0xff]   ;;  %v222_v62 = vld [vmem:[%s11401_s24 + $0xcc] sm:$0x1] }
  0x2a   : > { %421 = vst.msk [vmem:[#allocation2 + $0x140] sm:$0xff] %vm379_vm0, %v8824_v42  ;;  %422 = vst.msk [vmem:[#allocation2 + $0x148] sm:$0xff] %vm379_vm0, %v8825_v43  ;;  %10654 = vmatpush3.bf16.msra.mxu1 %v11410_v26  ;;  %10688 = vmatprep.subr.bf16.mxu0 %v11513_v19  ;;  %v325_v61 = vunpack.c.l.bf16 %v221_v60  ;;  %v329_v25 = vunpack.c.h.bf16 %v221_v60  ;;  %v326_v26 = vunpack.c.l.bf16 %v222_v62  ;;  %v8898_v63 = vld [vmem:[%s11401_s24 + $0xd0] sm:$0xff]   ;;  %v226_v3 = vld [vmem:[%s11401_s24 + $0xdc] sm:$0x1] }
  0x2b   : > { %423 = vst.msk [vmem:[#allocation2 + $0x150] sm:$0xff] %vm379_vm0, %v317_v44  ;;  %425 = vst.msk [vmem:[#allocation2 + $0x160] sm:$0xff] %vm379_vm0, %v8828_v47  ;;  %9610 = vmatmul.mubr.msk.f32.gmra.mrb[4].mxu1 %vm379_vm0, %v3503_v46  ;;  %v8836_v1 = vunpack.c.l.bf16 %v8898_v63  ;;  %v8837_v2 = vunpack.c.h.bf16 %v8898_v63  ;;  %v11536_v4 = vld [vmem:[#allocation2 + $0x89] sm:$0xff]  ;;  %v330_v5 = vunpack.c.l.bf16 %v226_v3  ;;  %v8899_v6 = vld [vmem:[%s11401_s24 + $0xe0] sm:$0xff]  }
  0x2c   : > { %424 = vst.msk [vmem:[#allocation2 + $0x158] sm:$0x3] %vm383_vm1, %v318_v45  ;;  %428 = vst.msk [vmem:[#allocation2 + $0x178] sm:$0x3] %vm383_vm1, %v322_v50  ;;  %10074 = vmatmul.mubr.msk.f32.gmra.mrb[4].mxu0 %vm379_vm0, %v3506_v21  ;;  %9612 = vmatprep.mubr.msk.f32.mxu1 %vm379_vm0, %v3504_v53  ;;  %v229_v8 = vld [vmem:[%s11401_s24 + $0xe8] ss:$16 sps:$4 sm:$0xff]   ;;  %v8840_v9 = vunpack.c.l.bf16 %v8899_v6  ;;  %v8841_v10 = vunpack.c.h.bf16 %v8899_v6 }
  0x2d   : > { %426 = vst.msk [vmem:[#allocation2 + $0x168] sm:$0xff] %vm379_vm0, %v8829_v48  ;;  %427 = vst.msk [vmem:[#allocation2 + $0x170] sm:$0xff] %vm379_vm0, %v321_v49  ;;  %10076 = vmatprep.mubr.msk.f32.mxu0 %vm379_vm0, %v3507_v57  ;;  %v333_v11 = vunpack.c.l.bf16 %v229_v8  ;;  %v230_v13 = vld [vmem:[%s11401_s24 + $0xec] sm:$0x1]  ;;  %v337_v14 = vunpack.c.h.bf16 %v229_v8  ;;  %v8900_v16 = vld [vmem:[%s11401_s24 + $0xf0] sm:$0xff]  }
  0x2e   : > { %429 = vst.msk [vmem:[#allocation2 + $0x180] sm:$0xff] %vm379_vm0, %v8832_v54  ;;  %430 = vst.msk [vmem:[#allocation2 + $0x188] sm:$0xff] %vm379_vm0, %v8833_v55  ;;  %v334_v15 = vunpack.c.l.bf16 %v230_v13  ;;  %v3512_v17 = vld [vmem:[#allocation2 + $0x91] sm:$0xff]  ;;  %v8844_v18 = vunpack.c.l.bf16 %v8900_v16  ;;  %v8845_v20 = vunpack.c.h.bf16 %v8900_v16  ;;  %v234_v22 = vld [vmem:[%s11401_s24 + $0xfc] sm:$0x1] }
  0x2f   : > { %9613 = vmatmul.mubr.msk.f32.gmra.mrb[6].mxu1 %vm379_vm0, %v3505_v56  ;;  %431 = vst.msk [vmem:[#allocation2 + $0x190] sm:$0xff] %vm379_vm0, %v325_v61  ;;  %435 = vst.msk [vmem:[#allocation2 + $0x1b0] sm:$0xff] %vm379_vm0, %v329_v25  ;;  %v8901_v23 = vld [vmem:[%s11401_s24 + $0x100] sm:$0xff]   ;;  %v338_v27 = vunpack.c.l.bf16 %v234_v22  ;;  %v237_v30 = vld [vmem:[%s11401_s24 + $0x108] ss:$16 sps:$4 sm:$0xff]  }
  0x30   : > { %10077 = vmatmul.mubr.msk.f32.gmra.mrb[6].mxu0 %vm379_vm0, %v3508_v58  ;;  %9615 = vmatprep.mubr.msk.f32.mxu1 %vm379_vm0, %v3506_v21  ;;  %432 = vst.msk [vmem:[#allocation2 + $0x198] sm:$0x3] %vm383_vm1, %v326_v26  ;;  %436 = vst.msk [vmem:[#allocation2 + $0x1b8] sm:$0x3] %vm383_vm1, %v330_v5  ;;  %v3513_v24 = vld [vmem:[#allocation2 + $0xa1] sm:$0xff]  ;;  %v8848_v28 = vunpack.c.l.bf16 %v8901_v23  ;;  %v8849_v29 = vunpack.c.h.bf16 %v8901_v23  ;;  %v341_v31 = vunpack.c.l.bf16 %v237_v30  ;;  %v8902_v33 = vld [vmem:[%s11401_s24 + $0x110] sm:$0xff]   ;;  %v345_v34 = vunpack.c.h.bf16 %v237_v30 }
  0x31   : > { %10079 = vmatprep.mubr.msk.f32.mxu0 %vm379_vm0, %v3509_v59  ;;  %433 = vst.msk [vmem:[#allocation2 + $0x1a0] sm:$0xff] %vm379_vm0, %v8836_v1  ;;  %434 = vst.msk [vmem:[#allocation2 + $0x1a8] sm:$0xff] %vm379_vm0, %v8837_v2  ;;  %v238_v32 = vld [vmem:[%s11401_s24 + $0x10c] sm:$0x1]  ;;  %v8852_v36 = vunpack.c.l.bf16 %v8902_v33  ;;  %v8853_v37 = vunpack.c.h.bf16 %v8902_v33  ;;  %v242_v39 = vld [vmem:[%s11401_s24 + $0x11c] sm:$0x1] }
  0x32   : > { %437 = vst.msk [vmem:[#allocation2 + $0x1c0] sm:$0xff] %vm379_vm0, %v8840_v9  ;;  %438 = vst.msk [vmem:[#allocation2 + $0x1c8] sm:$0xff] %vm379_vm0, %v8841_v10  ;;  %v342_v35 = vunpack.c.l.bf16 %v238_v32  ;;  %v3514_v38 = vld [vmem:[#allocation2 + $0xa9] sm:$0xff]  ;;  %v3515_v40 = vld [vmem:[#allocation2 + $0xb1] sm:$0xff]  ;;  %v346_v41 = vunpack.c.l.bf16 %v242_v39 }
  0x33   : > { %9616 = vmatmul.mubr.msk.f32.gmra.mrb[8].mxu1 %vm379_vm0, %v3507_v57  ;;  %439 = vst.msk [vmem:[#allocation2 + $0x1d0] sm:$0xff] %vm379_vm0, %v333_v11  ;;  %443 = vst.msk [vmem:[#allocation2 + $0x1f0] sm:$0xff] %vm379_vm0, %v337_v14  ;;  %v8903_v42 = vld [vmem:[%s11401_s24 + $0x120] sm:$0xff]   ;;  %v245_v45 = vld [vmem:[%s11401_s24 + $0x128] ss:$16 sps:$4 sm:$0xff]  }
  0x34   : > { %10080 = vmatmul.mubr.msk.f32.gmra.mrb[8].mxu0 %vm379_vm0, %v3510_v0  ;;  %9618 = vmatprep.mubr.msk.f32.mxu1 %vm379_vm0, %v3508_v58  ;;  %440 = vst.msk [vmem:[#allocation2 + $0x1d8] sm:$0x3] %vm383_vm1, %v334_v15  ;;  %444 = vst.msk [vmem:[#allocation2 + $0x1f8] sm:$0x3] %vm383_vm1, %v338_v27  ;;  %v8856_v43 = vunpack.c.l.bf16 %v8903_v42  ;;  %v8857_v44 = vunpack.c.h.bf16 %v8903_v42  ;;  %v349_v46 = vunpack.c.l.bf16 %v245_v45  ;;  %v353_v47 = vunpack.c.h.bf16 %v245_v45  ;;  %v3516_v48 = vld [vmem:[#allocation2 + $0xc1] sm:$0xff]  ;;  %v3517_v50 = vld [vmem:[#allocation2 + $0xc9] sm:$0xff] }
  0x35   : > { %10082 = vmatprep.mubr.msk.f32.mxu0 %vm379_vm0, %v11536_v4  ;;  %441 = vst.msk [vmem:[#allocation2 + $0x1e0] sm:$0xff] %vm379_vm0, %v8844_v18  ;;  %442 = vst.msk [vmem:[#allocation2 + $0x1e8] sm:$0xff] %vm379_vm0, %v8845_v20  ;;  %v246_v49 = vld [vmem:[%s11401_s24 + $0x12c] sm:$0x1]  ;;  %v8904_v52 = vld [vmem:[%s11401_s24 + $0x130] sm:$0xff]  }
  0x36   : > { %445 = vst.msk [vmem:[#allocation2 + $0x200] sm:$0xff] %vm379_vm0, %v8848_v28  ;;  %446 = vst.msk [vmem:[#allocation2 + $0x208] sm:$0xff] %vm379_vm0, %v8849_v29  ;;  %v350_v51 = vunpack.c.l.bf16 %v246_v49  ;;  %v8860_v53 = vunpack.c.l.bf16 %v8904_v52  ;;  %v8861_v54 = vunpack.c.h.bf16 %v8904_v52  ;;  %v250_v55 = vld [vmem:[%s11401_s24 + $0x13c] sm:$0x1]  ;;  %v3518_v56 = vld [vmem:[#allocation2 + $0xd1] sm:$0xff] }
  0x37   : > { %9619 = vmatmul.mubr.msk.f32.gmra.mrb[10].mxu1 %vm379_vm0, %v3509_v59  ;;  %447 = vst.msk [vmem:[#allocation2 + $0x210] sm:$0xff] %vm379_vm0, %v341_v31  ;;  %451 = vst.msk [vmem:[#allocation2 + $0x230] sm:$0xff] %vm379_vm0, %v345_v34  ;;  %v354_v21 = vunpack.c.l.bf16 %v250_v55  ;;  %v3519_v57 = vld [vmem:[#allocation2 + $0xe1] sm:$0xff]  ;;  %v254_v25 = vld [vmem:[%s11401_s24 + $0x14c] sm:$0x1] }
  0x38   : > { %10083 = vmatmul.mubr.msk.f32.gmra.mrb[10].mxu0 %vm379_vm0, %v3512_v17  ;;  %9621 = vmatprep.mubr.msk.f32.mxu1 %vm379_vm0, %v3510_v0  ;;  %448 = vst.msk [vmem:[#allocation2 + $0x218] sm:$0x3] %vm383_vm1, %v342_v35  ;;  %452 = vst.msk [vmem:[#allocation2 + $0x238] sm:$0x3] %vm383_vm1, %v346_v41  ;;  %v8905_v58 = vld [vmem:[%s11401_s24 + $0x140] sm:$0xff]   ;;  %v3520_v63 = vld [vmem:[#allocation2 + $0xe9] sm:$0xff]  ;;  %v358_v0 = vunpack.c.l.bf16 %v254_v25 }
  0x39   : > { %10085 = vmatprep.mubr.msk.f32.mxu0 %vm379_vm0, %v3513_v24  ;;  %449 = vst.msk [vmem:[#allocation2 + $0x220] sm:$0xff] %vm379_vm0, %v8852_v36  ;;  %450 = vst.msk [vmem:[#allocation2 + $0x228] sm:$0xff] %vm379_vm0, %v8853_v37  ;;  %v8864_v59 = vunpack.c.l.bf16 %v8905_v58  ;;  %v8865_v60 = vunpack.c.h.bf16 %v8905_v58  ;;  %v253_v61 = vld [vmem:[%s11401_s24 + $0x148] ss:$16 sps:$4 sm:$0xff]   ;;  %v8906_v1 = vld [vmem:[%s11401_s24 + $0x150] sm:$0xff]  }
  0x3a   : > { %453 = vst.msk [vmem:[#allocation2 + $0x240] sm:$0xff] %vm379_vm0, %v8856_v43  ;;  %454 = vst.msk [vmem:[#allocation2 + $0x248] sm:$0xff] %vm379_vm0, %v8857_v44  ;;  %v357_v62 = vunpack.c.l.bf16 %v253_v61  ;;  %v361_v26 = vunpack.c.h.bf16 %v253_v61  ;;  %v3521_v2 = vld [vmem:[#allocation2 + $0xf1] sm:$0xff]  ;;  %v8868_v3 = vunpack.c.l.bf16 %v8906_v1  ;;  %v258_v5 = vld [vmem:[%s11401_s24 + $0x15c] sm:$0x1] }
  0x3b   : > { %9622 = vmatmul.mubr.msk.f32.gmra.mrb[12].mxu1 %vm379_vm0, %v11536_v4  ;;  %455 = vst.msk [vmem:[#allocation2 + $0x250] sm:$0xff] %vm379_vm0, %v349_v46  ;;  %459 = vst.msk [vmem:[#allocation2 + $0x270] sm:$0xff] %vm379_vm0, %v353_v47  ;;  %v8869_v4 = vunpack.c.h.bf16 %v8906_v1  ;;  %v362_v6 = vunpack.c.l.bf16 %v258_v5  ;;  %v8907_v8 = vld [vmem:[%s11401_s24 + $0x160] sm:$0xff]   ;;  %v261_v11 = vld [vmem:[%s11401_s24 + $0x168] ss:$16 sps:$4 sm:$0xff]  }
  0x3c   : > { %10086 = vmatmul.mubr.msk.f32.gmra.mrb[12].mxu0 %vm379_vm0, %v3514_v38  ;;  %9624 = vmatprep.mubr.msk.f32.mxu1 %vm379_vm0, %v3512_v17  ;;  %456 = vst.msk [vmem:[#allocation2 + $0x258] sm:$0x3] %vm383_vm1, %v350_v51  ;;  %460 = vst.msk [vmem:[#allocation2 + $0x278] sm:$0x3] %vm383_vm1, %v354_v21  ;;  %v8872_v9 = vunpack.c.l.bf16 %v8907_v8  ;;  %v8873_v10 = vunpack.c.h.bf16 %v8907_v8  ;;  %v3522_v13 = vld [vmem:[#allocation2 + $0x101] sm:$0xff]  ;;  %v365_v14 = vunpack.c.l.bf16 %v261_v11  ;;  %v369_v16 = vunpack.c.h.bf16 %v261_v11  ;;  %v3523_v17 = vld [vmem:[#allocation2 + $0x109] sm:$0xff] }
  0x3d   : > { %10088 = vmatprep.mubr.msk.f32.mxu0 %vm379_vm0, %v3515_v40  ;;  %457 = vst.msk [vmem:[#allocation2 + $0x260] sm:$0xff] %vm379_vm0, %v8860_v53  ;;  %458 = vst.msk [vmem:[#allocation2 + $0x268] sm:$0xff] %vm379_vm0, %v8861_v54  ;;  %v262_v15 = vld [vmem:[%s11401_s24 + $0x16c] sm:$0x1]  ;;  %v8908_v20 = vld [vmem:[%s11401_s24 + $0x170] sm:$0xff]  }
  0x3e   : > { %461 = vst.msk [vmem:[#allocation2 + $0x280] sm:$0xff] %vm379_vm0, %v8864_v59  ;;  %462 = vst.msk [vmem:[#allocation2 + $0x288] sm:$0xff] %vm379_vm0, %v8865_v60  ;;  %v366_v18 = vunpack.c.l.bf16 %v262_v15  ;;  %v8876_v22 = vunpack.c.l.bf16 %v8908_v20  ;;  %v8877_v23 = vunpack.c.h.bf16 %v8908_v20  ;;  %v8199_v28 = vld [vmem:[%s13339_s1 + $0x40] sm:$0xff]  ;;  %v3524_v29 = vld [vmem:[#allocation2 + $0x111] sm:$0xff] }
  0x3f   : > { %9625 = vmatmul.mubr.msk.f32.gmra.mrb[14].mxu1 %vm379_vm0, %v3513_v24  ;;  %463 = vst.msk [vmem:[#allocation2 + $0x290] sm:$0xff] %vm379_vm0, %v357_v62  ;;  %467 = vst.msk [vmem:[#allocation2 + $0x2b0] sm:$0xff] %vm379_vm0, %v361_v26  ;;  %v266_v24 = vld [vmem:[%s11401_s24 + $0x17c] sm:$0x1]  ;;  %v8200_v30 = vld [vmem:[%s13339_s1 + $0x48] sm:$0xff] }
  0x40   : > { %10089 = vmatmul.mubr.msk.f32.gmra.mrb[14].mxu0 %vm379_vm0, %v3516_v48  ;;  %9627 = vmatprep.mubr.msk.f32.mxu1 %vm379_vm0, %v3514_v38  ;;  %464 = vst.msk [vmem:[#allocation2 + $0x298] sm:$0x3] %vm383_vm1, %v358_v0  ;;  %468 = vst.msk [vmem:[#allocation2 + $0x2b8] sm:$0x3] %vm383_vm1, %v362_v6  ;;  %v370_v27 = vunpack.c.l.bf16 %v266_v24  ;;  %v3525_v31 = vld [vmem:[#allocation2 + $0x121] sm:$0xff]  ;;  %v11643_v32 = vpack.c.bf16 %v8200_v30, %v8199_v28  ;;  %v3526_v33 = vld [vmem:[#allocation2 + $0x129] sm:$0xff] }
  0x41   : > { %10091 = vmatprep.mubr.msk.f32.mxu0 %vm379_vm0, %v3517_v50  ;;  %465 = vst.msk [vmem:[#allocation2 + $0x2a0] sm:$0xff] %vm379_vm0, %v8868_v3  ;;  %466 = vst.msk [vmem:[#allocation2 + $0x2a8] sm:$0xff] %vm379_vm0, %v8869_v4  ;;  %v3527_v34 = vld [vmem:[#allocation2 + $0x131] sm:$0xff]  ;;  %v3528_v35 = vld [vmem:[#allocation2 + $0x141] sm:$0xff] }
  0x42   : > { %469 = vst.msk [vmem:[#allocation2 + $0x2c0] sm:$0xff] %vm379_vm0, %v8872_v9  ;;  %470 = vst.msk [vmem:[#allocation2 + $0x2c8] sm:$0xff] %vm379_vm0, %v8873_v10  ;;  %10656 = vmatprep.subr.bf16.mxu1 %v11643_v32  ;;  %v3529_v36 = vld [vmem:[#allocation2 + $0x149] sm:$0xff]  ;;  %v3530_v37 = vld [vmem:[#allocation2 + $0x151] sm:$0xff] }
  0x43   : > { %9628 = vmatmul.mubr.msk.f32.gmra.mrb[16].mxu1 %vm379_vm0, %v3515_v40  ;;  %471 = vst.msk [vmem:[#allocation2 + $0x2d0] sm:$0xff] %vm379_vm0, %v365_v14  ;;  %475 = vst.msk [vmem:[#allocation2 + $0x2f0] sm:$0xff] %vm379_vm0, %v369_v16  ;;  %v3531_v38 = vld [vmem:[#allocation2 + $0x161] sm:$0xff]  ;;  %v3532_v39 = vld [vmem:[#allocation2 + $0x169] sm:$0xff] }
  0x44   : > { %10092 = vmatmul.mubr.msk.f32.gmra.mrb[16].mxu0 %vm379_vm0, %v3518_v56  ;;  %9630 = vmatprep.mubr.msk.f32.mxu1 %vm379_vm0, %v3516_v48  ;;  %472 = vst.msk [vmem:[#allocation2 + $0x2d8] sm:$0x3] %vm383_vm1, %v366_v18  ;;  %476 = vst.msk [vmem:[#allocation2 + $0x2f8] sm:$0x3] %vm383_vm1, %v370_v27  ;;  %v3533_v40 = vld [vmem:[#allocation2 + $0x171] sm:$0xff]  ;;  %v3534_v41 = vld [vmem:[#allocation2 + $0x181] sm:$0xff] }
  0x45   : > { %10094 = vmatprep.mubr.msk.f32.mxu0 %vm379_vm0, %v3519_v57  ;;  %473 = vst.msk [vmem:[#allocation2 + $0x2e0] sm:$0xff] %vm379_vm0, %v8876_v22  ;;  %474 = vst.msk [vmem:[#allocation2 + $0x2e8] sm:$0xff] %vm379_vm0, %v8877_v23  ;;  %v3535_v42 = vld [vmem:[#allocation2 + $0x189] sm:$0xff]  ;;  %v3536_v43 = vld [vmem:[#allocation2 + $0x191] sm:$0xff] }
  0x46   : > { %v4291_v44 = vld [vmem:[#allocation2 + $0x22] sm:$0xff]  ;;  %v8505_v45 = vld [vmem:[%s13339_s1 + $0xd0] sm:$0xff]  ;;  %v8506_v46 = vld [vmem:[%s13339_s1 + $0xd8] sm:$0xff] }
  0x47   : > { %9631 = vmatmul.mubr.msk.f32.gmra.mrb[18].mxu1 %vm379_vm0, %v3517_v50  ;;  %v4292_v47 = vld [vmem:[#allocation2 + $0x2a] sm:$0xff]  ;;  %v8909_v48 = vld [vmem:[%s11401_s24 + $0x180] sm:$0xff]   ;;  %v10691_v49 = vpack.c.bf16 %v8506_v46, %v8505_v45  ;;  %v4293_v52 = vld [vmem:[#allocation2 + $0x32] sm:$0xff] }
  0x48   : > { %10095 = vmatmul.mubr.msk.f32.gmra.mrb[18].mxu0 %vm379_vm0, %v3520_v63  ;;  %9633 = vmatprep.mubr.msk.f32.mxu1 %vm379_vm0, %v3518_v56  ;;  %v8880_v50 = vunpack.c.l.bf16 %v8909_v48  ;;  %v8881_v51 = vunpack.c.h.bf16 %v8909_v48  ;;  %v11686_v53 = vld [vmem:[%s11401_s24 + $0x188] ss:$16 sps:$4 sm:$0xff]   ;;  %v270_v21 = vld [vmem:[%s11401_s24 + $0x18c] sm:$0x1]  ;;  %v8579_v3 = vld [vmem:[%s13339_s1 + $0xe0] sm:$0xff] }
  0x49   : > { %10097 = vmatprep.mubr.msk.f32.mxu0 %vm379_vm0, %v3521_v2  ;;  %v600_v54 = vld [vmem:[#allocation2 + $0x1a1] sm:$0xff]  ;;  %v373_v56 = vunpack.c.l.bf16 %v11686_v53  ;;  %v4295_v58 = vld [vmem:[#allocation2 + $0x4a] sm:$0xff]  ;;  %v374_v59 = vunpack.c.l.bf16 %v270_v21  ;;  %v4296_v60 = vld [vmem:[#allocation2 + $0x52] sm:$0xff] }
  0x4a   : > { %477 = vst.msk [vmem:[#allocation2 + $0x300] sm:$0xff] %vm379_vm0, %v8880_v50  ;;  %478 = vst.msk [vmem:[#allocation2 + $0x308] sm:$0xff] %vm379_vm0, %v8881_v51  ;;  %v4294_v55 = vld [vmem:[#allocation2 + $0x42] sm:$0xff]  ;;  %v4298_v26 = vld [vmem:[#allocation2 + $0x6a] sm:$0xff] }
  0x4b   : > { %9634 = vmatmul.mubr.msk.f32.gmra.mrb[20].mxu1 %vm379_vm0, %v3519_v57  ;;  %v601_v57 = vld [vmem:[#allocation2 + $0x1a9] sm:$0xff]  ;;  %479 = vst.msk [vmem:[#allocation2 + $0x310] sm:$0xff] %vm379_vm0, %v373_v56  ;;  %v603_v61 = vld [vmem:[#allocation2 + $0x1c1] sm:$0xff]  ;;  %v4299_v0 = vld [vmem:[#allocation2 + $0x72] sm:$0xff] }
  0x4c   : > { %10098 = vmatmul.mubr.msk.f32.gmra.mrb[20].mxu0 %vm379_vm0, %v3522_v13  ;;  %9636 = vmatprep.mubr.msk.f32.mxu1 %vm379_vm0, %v3520_v63  ;;  %480 = vst.msk [vmem:[#allocation2 + $0x318] sm:$0x3] %vm383_vm1, %v374_v59  ;;  %v4297_v62 = vld [vmem:[#allocation2 + $0x62] sm:$0xff]  ;;  %v605_v63 = vld [vmem:[#allocation2 + $0x1d1] sm:$0xff] }
  0x4d   : > { %10100 = vmatprep.mubr.msk.f32.mxu0 %vm379_vm0, %v3523_v17  ;;  %v604_v25 = vld [vmem:[#allocation2 + $0x1c9] sm:$0xff]  ;;  %v606_v1 = vld [vmem:[#allocation2 + $0x1e1] sm:$0xff]  ;;  %v608_v9 = vld [vmem:[#allocation2 + $0x1f1] sm:$0xff] }
  0x4e   : > { %v607_v4 = vld [vmem:[#allocation2 + $0x1e9] sm:$0xff]  ;;  %v4302_v10 = vld [vmem:[#allocation2 + $0x92] sm:$0xff]  ;;  %v609_v11 = vld [vmem:[#allocation2 + $0x201] sm:$0xff] }
  0x4f   : > { %9637 = vmatmul.mubr.msk.f32.gmra.mrb[22].mxu1 %vm379_vm0, %v3521_v2  ;;  %v4300_v2 = vld [vmem:[#allocation2 + $0x82] sm:$0xff]  ;;  %v4301_v5 = vld [vmem:[#allocation2 + $0x8a] sm:$0xff]  ;;  %v4308_v27 = vld [vmem:[#allocation2 + $0xd2] sm:$0xff] }
  0x50   : > { %10101 = vmatmul.mubr.msk.f32.gmra.mrb[22].mxu0 %vm379_vm0, %v3524_v29  ;;  %9639 = vmatprep.mubr.msk.f32.mxu1 %vm379_vm0, %v3522_v13  ;;  %v8580_v6 = vld [vmem:[%s13339_s1 + $0xe8] sm:$0xff]  ;;  %v611_v16 = vld [vmem:[#allocation2 + $0x211] sm:$0xff] }
  0x51   : > { %10103 = vmatprep.mubr.msk.f32.mxu0 %vm379_vm0, %v3525_v31  ;;  %v11713_v8 = vpack.c.bf16 %v8580_v6, %v8579_v3  ;;  %v4303_v13 = vld [vmem:[#allocation2 + $0xa2] sm:$0xff]  ;;  %v4304_v15 = vld [vmem:[#allocation2 + $0xaa] sm:$0xff]  ;;  %v4317_v46 = vld [vmem:[#allocation2 + $0x132] sm:$0xff] }
  0x52   : > { %v610_v14 = vld [vmem:[#allocation2 + $0x209] sm:$0xff]  ;;  %v612_v18 = vld [vmem:[#allocation2 + $0x221] sm:$0xff]  ;;  %v614_v24 = vld [vmem:[#allocation2 + $0x231] sm:$0xff] }
  0x53   : > { %9640 = vmatmul.mubr.msk.f32.gmra.mrb[24].mxu1 %vm379_vm0, %v3523_v17  ;;  %v4305_v17 = vld [vmem:[#allocation2 + $0xb2] sm:$0xff]  ;;  %v4306_v20 = vld [vmem:[#allocation2 + $0xc2] sm:$0xff]  ;;  %v4307_v23 = vld [vmem:[#allocation2 + $0xca] sm:$0xff] }
  0x54   : > { %10104 = vmatmul.mubr.msk.f32.gmra.mrb[24].mxu0 %vm379_vm0, %v3526_v33  ;;  %9642 = vmatprep.mubr.msk.f32.mxu1 %vm379_vm0, %v3524_v29  ;;  %v613_v22 = vld [vmem:[#allocation2 + $0x229] sm:$0xff]  ;;  %v615_v28 = vld [vmem:[#allocation2 + $0x241] sm:$0xff]  ;;  %v623_v45 = vld [vmem:[#allocation2 + $0x291] sm:$0xff] }
  0x55   : > { %10106 = vmatprep.mubr.msk.f32.mxu0 %vm379_vm0, %v3527_v34  ;;  %v4309_v29 = vld [vmem:[#allocation2 + $0xe2] sm:$0xff]  ;;  %v11754_v50 = vld [vmem:[#allocation2 + $0x14a] sm:$0xff]  ;;  %v11810_v6 = vld [vmem:[#allocation2 + $0x1b2] sm:$0xff] }
  0x56   : > { %v616_v30 = vld [vmem:[#allocation2 + $0x249] sm:$0xff]  ;;  %v626_v51 = vld [vmem:[#allocation2 + $0x2b1] sm:$0xff]  ;;  %v630_v59 = vld [vmem:[#allocation2 + $0x2e1] sm:$0xff] }
  0x57   : > { %9643 = vmatmul.mubr.msk.f32.gmra.mrb[26].mxu1 %vm379_vm0, %v3525_v31  ;;  %v4310_v31 = vld [vmem:[#allocation2 + $0xea] sm:$0xff]  ;;  %v11752_v48 = vld [vmem:[#allocation2 + $0x142] sm:$0xff] }
  0x58   : > { %10107 = vmatmul.mubr.msk.f32.gmra.mrb[26].mxu0 %vm379_vm0, %v3528_v35  ;;  %9645 = vmatprep.mubr.msk.f32.mxu1 %vm379_vm0, %v3526_v33  ;;  %v617_v33 = vld [vmem:[#allocation2 + $0x251] sm:$0xff]  ;;  %v628_v56 = vld [vmem:[#allocation2 + $0x2c9] sm:$0xff] }
  0x59   : > { %10109 = vmatprep.mubr.msk.f32.mxu0 %vm379_vm0, %v3529_v36  ;;  %v11772_v21 = vld [vmem:[#allocation2 + $0x16a] sm:$0xff] }
  0x5a   : > { %v11808_v3 = vld [vmem:[#allocation2 + $0x1aa] sm:$0xff] }
  0x5b   : > { %9646 = vmatmul.mubr.msk.f32.gmra.mrb[28].mxu1 %vm379_vm0, %v3527_v34  ;;  %v4311_v34 = vld [vmem:[#allocation2 + $0xf2] sm:$0xff]  ;;  %v12015_v12 = vld [vmem:[#allocation2 + $0x128] sm:$0xff] }
  0x5c   : > { %10110 = vmatmul.mubr.msk.f32.gmra.mrb[28].mxu0 %vm379_vm0, %v3530_v37  ;;  %9648 = vmatprep.mubr.msk.f32.mxu1 %vm379_vm0, %v3528_v35  ;;  %v618_v35 = vld [vmem:[#allocation2 + $0x261] sm:$0xff] }
  0x5d   : > { %10112 = vmatprep.mubr.msk.f32.mxu0 %vm379_vm0, %v3531_v38 }
  0x5f   : > { %9649 = vmatmul.mubr.msk.f32.gmra.mrb[30].mxu1 %vm379_vm0, %v3529_v36  ;;  %v4312_v36 = vld [vmem:[#allocation2 + $0x102] sm:$0xff] }
  0x60   : > { %10113 = vmatmul.mubr.msk.f32.gmra.mrb[30].mxu0 %vm379_vm0, %v3532_v39  ;;  %9651 = vmatprep.mubr.msk.f32.mxu1 %vm379_vm0, %v3530_v37  ;;  %v619_v37 = vld [vmem:[#allocation2 + $0x269] sm:$0xff] }
  0x61   : > { %10115 = vmatprep.mubr.msk.f32.mxu0 %vm379_vm0, %v3533_v40 }
  0x63   : > { %9652 = vmatmul.mubr.msk.f32.gmra.mrb[32].mxu1 %vm379_vm0, %v3531_v38  ;;  %v4313_v38 = vld [vmem:[#allocation2 + $0x10a] sm:$0xff] }
  0x64   : > { %10116 = vmatmul.mubr.msk.f32.gmra.mrb[32].mxu0 %vm379_vm0, %v3534_v41  ;;  %9654 = vmatprep.mubr.msk.f32.mxu1 %vm379_vm0, %v3532_v39  ;;  %v620_v39 = vld [vmem:[#allocation2 + $0x271] sm:$0xff] }
  0x65   : > { %10118 = vmatprep.mubr.msk.f32.mxu0 %vm379_vm0, %v3535_v42 }
  0x67   : > { %9655 = vmatmul.mubr.msk.f32.gmra.mrb[34].mxu1 %vm379_vm0, %v3533_v40  ;;  %v4314_v40 = vld [vmem:[#allocation2 + $0x112] sm:$0xff] }
  0x68   : > { %10119 = vmatmul.mubr.msk.f32.gmra.mrb[34].mxu0 %vm379_vm0, %v3536_v43  ;;  %9657 = vmatprep.mubr.msk.f32.mxu1 %vm379_vm0, %v3534_v41  ;;  %v621_v41 = vld [vmem:[#allocation2 + $0x281] sm:$0xff] }
  0x69   : > { %10183 = vmatprep.mubr.msk.f32.mxu0 %vm379_vm0, %v4291_v44  ;;  %v4316_v44 = vld [vmem:[#allocation2 + $0x12a] sm:$0xff] }
  0x6b   : > { %9658 = vmatmul.mubr.msk.f32.gmra.mrb[36].mxu1 %vm379_vm0, %v3535_v42  ;;  %v4315_v42 = vld [vmem:[#allocation2 + $0x122] sm:$0xff] }
  0x6c   : > { %10184 = vmatmul.mubr.msk.f32.vlgmr.msra.gmra.mrb[0].mxu0 %vm379_vm0, %v4292_v47  ;;  %9660 = vmatprep.mubr.msk.f32.mxu1 %vm379_vm0, %v3536_v43  ;;  %v622_v43 = vld [vmem:[#allocation2 + $0x289] sm:$0xff]  ;;  %v624_v47 = vld [vmem:[#allocation2 + $0x2a1] sm:$0xff] }
  0x6d   : > { %10690 = vmatpush3.bf16.msra.mxu0 %v11513_v19  ;;  %10186 = vmatprep.mubr.msk.f32.mxu0 %vm379_vm0, %v4293_v52  ;;  %v602_v19 = vld [vmem:[#allocation2 + $0x1b1] sm:$0xff] }
  0x6e   : > { %10692 = vmatprep.subr.bf16.mxu0 %v10691_v49  ;;  %v11762_v52 = vld [vmem:[#allocation2 + $0x152] sm:$0xff] }
  0x6f   : > { %9661 = vmatmul.mubr.msk.f32.gmra.mrb[38].mxu1 %vm379_vm0, %v600_v54  ;;  %v627_v54 = vld [vmem:[#allocation2 + $0x2c1] sm:$0xff] }
  0x70   : > { %10187 = vmatmul.mubr.msk.f32.gmra.mrb[2].mxu0 %vm379_vm0, %v4294_v55  ;;  %9663 = vmatprep.mubr.msk.f32.mxu1 %vm379_vm0, %v601_v57  ;;  %v11764_v55 = vld [vmem:[#allocation2 + $0x162] sm:$0xff]  ;;  %v629_v57 = vld [vmem:[#allocation2 + $0x2d1] sm:$0xff] }
  0x71   : > { %10189 = vmatprep.mubr.msk.f32.mxu0 %vm379_vm0, %v4295_v58  ;;  %10694 = vmatpush3.bf16.msra.mxu0 %v10691_v49  ;;  %v625_v49 = vld [vmem:[#allocation2 + $0x2a9] sm:$0xff]  ;;  %v11774_v58 = vld [vmem:[#allocation2 + $0x172] sm:$0xff] }
  0x72   : > { %10696 = vmatprep.subr.bf16.mxu0 %v11713_v8 }
  0x73   : > { %9664 = vmatmul.mubr.msk.f32.gmra.mrb[40].mxu1 %vm379_vm0, %v602_v19  ;;  %v11782_v19 = vld [vmem:[#allocation2 + $0x182] sm:$0xff] }
  0x74   : > { %10190 = vmatmul.mubr.msk.f32.gmra.mrb[4].mxu0 %vm379_vm0, %v4296_v60  ;;  %9666 = vmatprep.mubr.msk.f32.mxu1 %vm379_vm0, %v603_v61  ;;  %v631_v60 = vld [vmem:[#allocation2 + $0x2e9] sm:$0xff] }
  0x75   : > { %10192 = vmatprep.mubr.msk.f32.mxu0 %vm379_vm0, %v4297_v62  ;;  %v11784_v61 = vld [vmem:[#allocation2 + $0x18a] sm:$0xff] }
  0x76   : > { %v632_v62 = vld [vmem:[#allocation2 + $0x2f1] sm:$0xff] }
  0x77   : > { %9667 = vmatmul.mubr.msk.f32.gmra.mrb[42].mxu1 %vm379_vm0, %v604_v25  ;;  %v11792_v25 = vld [vmem:[#allocation2 + $0x192] sm:$0xff] }
  0x78   : > { %10193 = vmatmul.mubr.msk.f32.gmra.mrb[6].mxu0 %vm379_vm0, %v4298_v26  ;;  %9669 = vmatprep.mubr.msk.f32.mxu1 %vm379_vm0, %v605_v63  ;;  %v485_v26 = vld [vmem:[#allocation2] sm:$0xff] }
  0x79   : > { %10195 = vmatprep.mubr.msk.f32.mxu0 %vm379_vm0, %v4299_v0  ;;  %v11794_v63 = vld [vmem:[#allocation2 + $0x1a2] sm:$0xff]  ;;  %v8201_v0 = vld [vmem:[%s13339_s1 + $0x50] sm:$0xff] }
  0x7b   : > { %9670 = vmatmul.mubr.msk.f32.gmra.mrb[44].mxu1 %vm379_vm0, %v606_v1  ;;  %v8202_v1 = vld [vmem:[%s13339_s1 + $0x58] sm:$0xff] }
  0x7c   : > { %10196 = vmatmul.mubr.msk.f32.gmra.mrb[8].mxu0 %vm379_vm0, %v4300_v2  ;;  %9672 = vmatprep.mubr.msk.f32.mxu1 %vm379_vm0, %v607_v4  ;;  %v486_v2 = vld [vmem:[#allocation2 + $0x8] sm:$0xff]  ;;  %v487_v4 = vld [vmem:[#allocation2 + $0x10] sm:$0xff] }
  0x7d   : > { %10198 = vmatprep.mubr.msk.f32.mxu0 %vm379_vm0, %v4301_v5  ;;  %v10659_v5 = vpack.c.bf16 %v8202_v1, %v8201_v0  ;;  %v11979_v0 = vld [vmem:[#allocation2 + $0xf0] sm:$0xff] }
  0x7e   : > { %v11981_v1 = vld [vmem:[#allocation2 + $0x292] sm:$0xff] }
  0x7f   : > { %9673 = vmatmul.mubr.msk.f32.gmra.mrb[46].mxu1 %vm379_vm0, %v608_v9  ;;  %v488_v9 = vld [vmem:[#allocation2 + $0x20] sm:$0xff]  ;;  %13384 = vst [vmem:[#allocation16_spill] sm:$0xff] %v11981_v1 }
  0x80   : > { %10199 = vmatmul.mubr.msk.f32.gmra.mrb[10].mxu0 %vm379_vm0, %v4302_v10  ;;  %9675 = vmatprep.mubr.msk.f32.mxu1 %vm379_vm0, %v609_v11  ;;  %v11817_v10 = vld [vmem:[#allocation2 + $0x1c2] sm:$0xff] }
  0x81   : > { %10201 = vmatprep.mubr.msk.f32.mxu0 %vm379_vm0, %v4303_v13  ;;  %v489_v11 = vld [vmem:[#allocation2 + $0x28] sm:$0xff] }
  0x82   : > { %v11821_v13 = vld [vmem:[#allocation2 + $0x1ca] sm:$0xff] }
  0x83   : > { %9676 = vmatmul.mubr.msk.f32.gmra.mrb[48].mxu1 %vm379_vm0, %v610_v14  ;;  %v11829_v14 = vld [vmem:[#allocation2 + $0x1d2] sm:$0xff] }
  0x84   : > { %10202 = vmatmul.mubr.msk.f32.gmra.mrb[12].mxu0 %vm379_vm0, %v4304_v15  ;;  %9678 = vmatprep.mubr.msk.f32.mxu1 %vm379_vm0, %v611_v16  ;;  %v11831_v15 = vld [vmem:[#allocation2 + $0x40] sm:$0xff] }
  0x85   : > { %10204 = vmatprep.mubr.msk.f32.mxu0 %vm379_vm0, %v4305_v17  ;;  %v11833_v16 = vld [vmem:[#allocation2 + $0x1e2] sm:$0xff] }
  0x86   : > { %v11842_v17 = vld [vmem:[#allocation2 + $0x48] sm:$0xff] }
  0x87   : > { %9679 = vmatmul.mubr.msk.f32.gmra.mrb[50].mxu1 %vm379_vm0, %v612_v18  ;;  %v11844_v18 = vld [vmem:[#allocation2 + $0x1ea] sm:$0xff] }
  0x88   : > { %10205 = vmatmul.mubr.msk.f32.gmra.mrb[14].mxu0 %vm379_vm0, %v4306_v20  ;;  %9681 = vmatprep.mubr.msk.f32.mxu1 %vm379_vm0, %v613_v22  ;;  %v11846_v20 = vld [vmem:[#allocation2 + $0x50] sm:$0xff] }
  0x89   : > { %10207 = vmatprep.mubr.msk.f32.mxu0 %vm379_vm0, %v4307_v23  ;;  %v11848_v22 = vld [vmem:[#allocation2 + $0x1f2] sm:$0xff]  ;;  %v11854_v23 = vld [vmem:[#allocation2 + $0x60] sm:$0xff] }
  0x8b   : > { %9682 = vmatmul.mubr.msk.f32.gmra.mrb[52].mxu1 %vm379_vm0, %v614_v24  ;;  %v11860_v24 = vld [vmem:[#allocation2 + $0x202] sm:$0xff] }
  0x8c   : > { %10208 = vmatmul.mubr.msk.f32.gmra.mrb[16].mxu0 %vm379_vm0, %v4308_v27  ;;  %9684 = vmatprep.mubr.msk.f32.mxu1 %vm379_vm0, %v615_v28  ;;  %v8275_v27 = vld [vmem:[%s13339_s1 + $0x60] sm:$0xff]  ;;  %v8276_v28 = vld [vmem:[%s13339_s1 + $0x68] sm:$0xff] }
  0x8d   : > { %10210 = vmatprep.mubr.msk.f32.mxu0 %vm379_vm0, %v4309_v29  ;;  %v11868_v29 = vld [vmem:[#allocation2 + $0x68] sm:$0xff] }
  0x8f   : > { %9685 = vmatmul.mubr.msk.f32.gmra.mrb[54].mxu1 %vm379_vm0, %v616_v30  ;;  %v11870_v30 = vld [vmem:[#allocation2 + $0x20a] sm:$0xff] }
  0x90   : > { %10211 = vmatmul.mubr.msk.f32.gmra.mrb[18].mxu0 %vm379_vm0, %v4310_v31  ;;  %9687 = vmatprep.mubr.msk.f32.mxu1 %vm379_vm0, %v617_v33  ;;  %v11872_v31 = vpack.c.bf16 %v8276_v28, %v8275_v27  ;;  %v11882_v33 = vld [vmem:[#allocation2 + $0x70] sm:$0xff]  ;;  %v12011_v27 = vld [vmem:[#allocation2 + $0x120] sm:$0xff] }
  0x91   : > { %10213 = vmatprep.mubr.msk.f32.mxu0 %vm379_vm0, %v4311_v34  ;;  %v11884_v34 = vld [vmem:[#allocation2 + $0x212] sm:$0xff]  ;;  %v12013_v28 = vld [vmem:[#allocation2 + $0x2c2] sm:$0xff] }
  0x92   : > { %13388 = vst [vmem:[#allocation20_spill] sm:$0xff] %v12013_v28 }
  0x93   : > { %9688 = vmatmul.mubr.msk.f32.gmra.mrb[56].mxu1 %vm379_vm0, %v618_v35  ;;  %v11886_v35 = vld [vmem:[#allocation2 + $0x80] sm:$0xff] }
  0x94   : > { %10214 = vmatmul.mubr.msk.f32.gmra.mrb[20].mxu0 %vm379_vm0, %v4312_v36  ;;  %9690 = vmatprep.mubr.msk.f32.mxu1 %vm379_vm0, %v619_v37  ;;  %v11888_v36 = vld [vmem:[#allocation2 + $0x222] sm:$0xff] }
  0x95   : > { %10216 = vmatprep.mubr.msk.f32.mxu0 %vm379_vm0, %v4313_v38  ;;  %13373 = vst [vmem:[#allocation5_spill] sm:$0xff] %v11888_v36  ;;  %v11899_v37 = vld [vmem:[#allocation2 + $0x88] sm:$0xff] }
  0x96   : > { %v11901_v38 = vld [vmem:[#allocation2 + $0x22a] sm:$0xff] }
  0x97   : > { %9691 = vmatmul.mubr.msk.f32.gmra.mrb[58].mxu1 %vm379_vm0, %v620_v39  ;;  %13374 = vst [vmem:[#allocation6_spill] sm:$0xff] %v11901_v38  ;;  %v11903_v39 = vld [vmem:[#allocation2 + $0x90] sm:$0xff] }
  0x98   : > { %10217 = vmatmul.mubr.msk.f32.gmra.mrb[22].mxu0 %vm379_vm0, %v4314_v40  ;;  %9693 = vmatprep.mubr.msk.f32.mxu1 %vm379_vm0, %v621_v41  ;;  %v11905_v40 = vld [vmem:[#allocation2 + $0x232] sm:$0xff]  ;;  %v11915_v41 = vld [vmem:[#allocation2 + $0xa0] sm:$0xff] }
  0x99   : > { %10219 = vmatprep.mubr.msk.f32.mxu0 %vm379_vm0, %v4315_v42  ;;  %13375 = vst [vmem:[#allocation7_spill] sm:$0xff] %v11905_v40  ;;  %v11917_v42 = vld [vmem:[#allocation2 + $0x242] sm:$0xff] }
  0x9a   : > { %13376 = vst [vmem:[#allocation8_spill] sm:$0xff] %v11917_v42 }
  0x9b   : > { %9694 = vmatmul.mubr.msk.f32.gmra.mrb[60].mxu1 %vm379_vm0, %v622_v43  ;;  %v11919_v43 = vld [vmem:[#allocation2 + $0xa8] sm:$0xff] }
  0x9c   : > { %10220 = vmatmul.mubr.msk.f32.gmra.mrb[24].mxu0 %vm379_vm0, %v4316_v44  ;;  %9696 = vmatprep.mubr.msk.f32.mxu1 %vm379_vm0, %v623_v45  ;;  %v11921_v44 = vld [vmem:[#allocation2 + $0x24a] sm:$0xff] }
  0x9d   : > { %10222 = vmatprep.mubr.msk.f32.mxu0 %vm379_vm0, %v4317_v46  ;;  %13377 = vst [vmem:[#allocation9_spill] sm:$0xff] %v11921_v44  ;;  %v11931_v45 = vld [vmem:[#allocation2 + $0xb0] sm:$0xff] }
  0x9e   : > { %v11933_v46 = vld [vmem:[#allocation2 + $0x252] sm:$0xff] }
  0x9f   : > { %9697 = vmatmul.mubr.msk.f32.gmra.mrb[62].mxu1 %vm379_vm0, %v624_v47  ;;  %13378 = vst [vmem:[#allocation10_spill] sm:$0xff] %v11933_v46  ;;  %v11935_v47 = vld [vmem:[#allocation2 + $0xc0] sm:$0xff] }
  0xa0   : > { %10223 = vmatmul.mubr.msk.f32.gmra.mrb[26].mxu0 %vm379_vm0, %v11752_v48  ;;  %9699 = vmatprep.mubr.msk.f32.mxu1 %vm379_vm0, %v625_v49  ;;  %v11937_v49 = vld [vmem:[#allocation2 + $0x262] sm:$0xff] }
  0xa1   : > { %10225 = vmatprep.mubr.msk.f32.mxu0 %vm379_vm0, %v11754_v50  ;;  %13379 = vst [vmem:[#allocation11_spill] sm:$0xff] %v11937_v49 }
  0xa3   : > { %9700 = vmatmul.mubr.msk.f32.gmra.mrb[64].mxu1 %vm379_vm0, %v626_v51  ;;  %v11947_v51 = vld [vmem:[#allocation2 + $0xc8] sm:$0xff] }
  0xa4   : > { %10226 = vmatmul.mubr.msk.f32.gmra.mrb[28].mxu0 %vm379_vm0, %v11762_v52  ;;  %9702 = vmatprep.mubr.msk.f32.mxu1 %vm379_vm0, %v627_v54  ;;  %v11949_v54 = vld [vmem:[#allocation2 + $0x26a] sm:$0xff] }
  0xa5   : > { %10228 = vmatprep.mubr.msk.f32.mxu0 %vm379_vm0, %v11764_v55  ;;  %13380 = vst [vmem:[#allocation12_spill] sm:$0xff] %v11949_v54 }
  0xa7   : > { %9703 = vmatmul.mubr.msk.f32.gmra.mrb[66].mxu1 %vm379_vm0, %v628_v56  ;;  %v11951_v56 = vld [vmem:[#allocation2 + $0xd0] sm:$0xff] }
  0xa8   : > { %10229 = vmatmul.mubr.msk.f32.gmra.mrb[30].mxu0 %vm379_vm0, %v11772_v21  ;;  %9705 = vmatprep.mubr.msk.f32.mxu1 %vm379_vm0, %v629_v57  ;;  %v11953_v57 = vld [vmem:[#allocation2 + $0x272] sm:$0xff] }
  0xa9   : > { %10231 = vmatprep.mubr.msk.f32.mxu0 %vm379_vm0, %v11774_v58  ;;  %13381 = vst [vmem:[#allocation13_spill] sm:$0xff] %v11953_v57 }
  0xab   : > { %9706 = vmatmul.mubr.msk.f32.gmra.mrb[68].mxu1 %vm379_vm0, %v630_v59  ;;  %v11963_v59 = vld [vmem:[#allocation2 + $0xe0] sm:$0xff] }
  0xac   : > { %10232 = vmatmul.mubr.msk.f32.gmra.mrb[32].mxu0 %vm379_vm0, %v11782_v19  ;;  %9708 = vmatprep.mubr.msk.f32.mxu1 %vm379_vm0, %v631_v60  ;;  %v11965_v60 = vld [vmem:[#allocation2 + $0x282] sm:$0xff] }
  0xad   : > { %10234 = vmatprep.mubr.msk.f32.mxu0 %vm379_vm0, %v11784_v61  ;;  %13382 = vst [vmem:[#allocation14_spill] sm:$0xff] %v11965_v60 }
  0xaf   : > { %9709 = vmatmul.mubr.msk.f32.gmra.mrb[70].mxu1 %vm379_vm0, %v632_v62  ;;  %v11967_v62 = vld [vmem:[#allocation2 + $0xe8] sm:$0xff] }
  0xb0   : > { %10235 = vmatmul.mubr.msk.f32.gmra.mrb[34].mxu0 %vm379_vm0, %v11792_v25  ;;  %9719 = vmatprep.mubr.msk.f32.mxu1 %vm379_vm0, %v485_v26  ;;  %v11969_v26 = vld [vmem:[#allocation2 + $0x28a] sm:$0xff] }
  0xb1   : > { %10237 = vmatprep.mubr.msk.f32.mxu0 %vm379_vm0, %v11794_v63  ;;  %13383 = vst [vmem:[#allocation15_spill] sm:$0xff] %v11969_v26 }
  0xb3   : > { %9720 = vmatmul.mubr.msk.f32.vlgmr.msra.gmra.mrb[0].mxu1 %vm379_vm0, %v486_v2  ;;  %v11983_v2 = vld [vmem:[#allocation2 + $0x100] sm:$0xff] }
  0xb4   : > { %10238 = vmatmul.mubr.msk.f32.gmra.mrb[36].mxu0 %vm379_vm0, %v11808_v3  ;;  %10658 = vmatpush3.bf16.msra.mxu1 %v11643_v32  ;;  %v490_v32 = vld [vmem:[#allocation2 + $0x30] sm:$0xff] }
  0xb5   : > { %9722 = vmatprep.mubr.msk.f32.mxu1 %vm379_vm0, %v487_v4  ;;  %10240 = vmatprep.mubr.msk.f32.mxu0 %vm379_vm0, %v11810_v6  ;;  %v11985_v4 = vld [vmem:[#allocation2 + $0x2a2] sm:$0xff] }
  0xb6   : > { %10660 = vmatprep.subr.bf16.mxu1 %v10659_v5  ;;  %13385 = vst [vmem:[#allocation17_spill] sm:$0xff] %v11985_v4 }
  0xb7   : > { %9723 = vmatmul.mubr.msk.f32.gmra.mrb[2].mxu1 %vm379_vm0, %v488_v9  ;;  %v11997_v9 = vld [vmem:[#allocation2 + $0x2aa] sm:$0xff] }
  0xb8   : > { %10241 = vmatmul.mubr.msk.f32.gmra.mrb[38].mxu0 %vm379_vm0, %v11817_v10  ;;  %9725 = vmatprep.mubr.msk.f32.mxu1 %vm379_vm0, %v489_v11  ;;  %13386 = vst [vmem:[#allocation18_spill] sm:$0xff] %v11997_v9  ;;  %v11999_v11 = vld [vmem:[#allocation2 + $0x110] sm:$0xff] }
  0xb9   : > { %10243 = vmatprep.mubr.msk.f32.mxu0 %vm379_vm0, %v11821_v13  ;;  %10662 = vmatpush3.bf16.msra.mxu1 %v10659_v5  ;;  %v11995_v5 = vld [vmem:[#allocation2 + $0x108] sm:$0xff] }
  0xba   : > { %10664 = vmatprep.subr.bf16.mxu1 %v11872_v31 }
  0xbb   : > { %9726 = vmatmul.mubr.msk.f32.gmra.mrb[4].mxu1 %vm379_vm0, %v490_v32  ;;  %v12001_v32 = vld [vmem:[#allocation2 + $0x2b2] sm:$0xff] }
  0xbc   : > { %10244 = vmatmul.mubr.msk.f32.gmra.mrb[40].mxu0 %vm379_vm0, %v11829_v14  ;;  %9728 = vmatprep.mubr.msk.f32.mxu1 %vm379_vm0, %v11831_v15  ;;  %13387 = vst [vmem:[#allocation19_spill] sm:$0xff] %v12001_v32 }
  0xbd   : > { %10246 = vmatprep.mubr.msk.f32.mxu0 %vm379_vm0, %v11833_v16 }
  0xbf   : > { %9729 = vmatmul.mubr.msk.f32.gmra.mrb[6].mxu1 %vm379_vm0, %v11842_v17 }
  0xc0   : > { %10247 = vmatmul.mubr.msk.f32.gmra.mrb[42].mxu0 %vm379_vm0, %v11844_v18  ;;  %9731 = vmatprep.mubr.msk.f32.mxu1 %vm379_vm0, %v11846_v20 }
  0xc1   : > { %10249 = vmatprep.mubr.msk.f32.mxu0 %vm379_vm0, %v11848_v22 }
  0xc3   : > { %9732 = vmatmul.mubr.msk.f32.gmra.mrb[8].mxu1 %vm379_vm0, %v11854_v23 }
  0xc4   : > { %10250 = vmatmul.mubr.msk.f32.gmra.mrb[44].mxu0 %vm379_vm0, %v11860_v24  ;;  %9734 = vmatprep.mubr.msk.f32.mxu1 %vm379_vm0, %v11868_v29 }
  0xc5   : > { %10252 = vmatprep.mubr.msk.f32.mxu0 %vm379_vm0, %v11870_v30 }
  0xc7   : > { %9735 = vmatmul.mubr.msk.f32.gmra.mrb[10].mxu1 %vm379_vm0, %v11882_v33 }
  0xc8   : > { %10253 = vmatmul.mubr.msk.f32.gmra.mrb[46].mxu0 %vm379_vm0, %v11884_v34  ;;  %9737 = vmatprep.mubr.msk.f32.mxu1 %vm379_vm0, %v11886_v35 }
  0xc9   : > { %10255 = vmatprep.mubr.msk.f32.mxu0 %vm379_vm0, %v11888_v36 }
  0xcb   : > { %9738 = vmatmul.mubr.msk.f32.gmra.mrb[12].mxu1 %vm379_vm0, %v11899_v37 }
  0xcc   : > { %10256 = vmatmul.mubr.msk.f32.gmra.mrb[48].mxu0 %vm379_vm0, %v11901_v38  ;;  %9740 = vmatprep.mubr.msk.f32.mxu1 %vm379_vm0, %v11903_v39 }
  0xcd   : > { %10258 = vmatprep.mubr.msk.f32.mxu0 %vm379_vm0, %v11905_v40  ;;  %v12089_v40 = vld [vmem:[#allocation2 + $0x190] sm:$0xff] }
  0xcf   : > { %9741 = vmatmul.mubr.msk.f32.gmra.mrb[14].mxu1 %vm379_vm0, %v11915_v41 }
  0xd0   : > { %10259 = vmatmul.mubr.msk.f32.gmra.mrb[50].mxu0 %vm379_vm0, %v11917_v42  ;;  %9743 = vmatprep.mubr.msk.f32.mxu1 %vm379_vm0, %v11919_v43  ;;  %v8582_v42 = vld [vmem:[%s13339_s1 + $0xf8] sm:$0xff] }
  0xd1   : > { %10261 = vmatprep.mubr.msk.f32.mxu0 %vm379_vm0, %v11921_v44  ;;  %v8581_v44 = vld [vmem:[%s13339_s1 + $0xf0] sm:$0xff] }
  0xd2   : > { %v10699_v38 = vpack.c.bf16 %v8582_v42, %v8581_v44  ;;  %v12103_v42 = vld [vmem:[#allocation2 + $0x1a8] sm:$0xff]  ;;  %v377_v44 = vunpack.c.h.bf16 %v11686_v53 }
  0xd3   : > { %9744 = vmatmul.mubr.msk.f32.gmra.mrb[16].mxu1 %vm379_vm0, %v11931_v45  ;;  %v12128_v53 = vld [vmem:[#allocation2 + $0x1c8] sm:$0xff] }
  0xd4   : > { %10262 = vmatmul.mubr.msk.f32.gmra.mrb[52].mxu0 %vm379_vm0, %v11933_v46  ;;  %9746 = vmatprep.mubr.msk.f32.mxu1 %vm379_vm0, %v11935_v47  ;;  %v12071_v46 = vld [vmem:[#allocation2 + $0x180] sm:$0xff]  ;;  %483 = vst.msk [vmem:[#allocation2 + $0x330] sm:$0xff] %vm379_vm0, %v377_v44 }
  0xd5   : > { %10264 = vmatprep.mubr.msk.f32.mxu0 %vm379_vm0, %v11937_v49  ;;  %v4361_v49 = vld [vmem:[#allocation2 + $0x30a] sm:$0xff]  ;;  %v1923_v44 = vld [vmem:[#allocation2 + $0x22] sm:$0xff] }
  0xd7   : > { %9747 = vmatmul.mubr.msk.f32.gmra.mrb[18].mxu1 %vm379_vm0, %v11947_v51 }
  0xd8   : > { %10265 = vmatmul.mubr.msk.f32.gmra.mrb[54].mxu0 %vm379_vm0, %v11949_v54  ;;  %9749 = vmatprep.mubr.msk.f32.mxu1 %vm379_vm0, %v11951_v56  ;;  %v12061_v54 = vld [vmem:[#allocation2 + $0x168] sm:$0xff] }
  0xd9   : > { %10267 = vmatprep.mubr.msk.f32.mxu0 %vm379_vm0, %v11953_v57  ;;  %v12049_v57 = vld [vmem:[#allocation2 + $0x2f2] sm:$0xff] }
  0xda   : > { %13393 = vst [vmem:[#allocation25_spill] sm:$0xff] %v12049_v57 }
  0xdb   : > { %9750 = vmatmul.mubr.msk.f32.gmra.mrb[20].mxu1 %vm379_vm0, %v11963_v59 }
  0xdc   : > { %10268 = vmatmul.mubr.msk.f32.gmra.mrb[56].mxu0 %vm379_vm0, %v11965_v60  ;;  %9752 = vmatprep.mubr.msk.f32.mxu1 %vm379_vm0, %v11967_v62  ;;  %v12047_v60 = vld [vmem:[#allocation2 + $0x150] sm:$0xff] }
  0xdd   : > { %10270 = vmatprep.mubr.msk.f32.mxu0 %vm379_vm0, %v11969_v26  ;;  %v12033_v26 = vld [vmem:[#allocation2 + $0x2e2] sm:$0xff] }
  0xde   : > { %13391 = vst [vmem:[#allocation23_spill] sm:$0xff] %v12033_v26 }
  0xdf   : > { %9753 = vmatmul.mubr.msk.f32.gmra.mrb[22].mxu1 %vm379_vm0, %v11979_v0 }
  0xe0   : > { %10271 = vmatmul.mubr.msk.f32.gmra.mrb[58].mxu0 %vm379_vm0, %v11981_v1  ;;  %9755 = vmatprep.mubr.msk.f32.mxu1 %vm379_vm0, %v11983_v2  ;;  %v12031_v1 = vld [vmem:[#allocation2 + $0x140] sm:$0xff] }
  0xe1   : > { %10273 = vmatprep.mubr.msk.f32.mxu0 %vm379_vm0, %v11985_v4  ;;  %v12017_v4 = vld [vmem:[#allocation2 + $0x2ca] sm:$0xff] }
  0xe2   : > { %13389 = vst [vmem:[#allocation21_spill] sm:$0xff] %v12017_v4 }
  0xe3   : > { %9756 = vmatmul.mubr.msk.f32.gmra.mrb[24].mxu1 %vm379_vm0, %v11995_v5 }
  0xe4   : > { %10274 = vmatmul.mubr.msk.f32.gmra.mrb[60].mxu0 %vm379_vm0, %v11997_v9  ;;  %9758 = vmatprep.mubr.msk.f32.mxu1 %vm379_vm0, %v11999_v11  ;;  %v12029_v9 = vld [vmem:[#allocation2 + $0x2d2] sm:$0xff] }
  0xe5   : > { %10276 = vmatprep.mubr.msk.f32.mxu0 %vm379_vm0, %v12001_v32  ;;  %v12027_v32 = vld [vmem:[#allocation2 + $0x130] sm:$0xff]  ;;  %13390 = vst [vmem:[#allocation22_spill] sm:$0xff] %v12029_v9 }
  0xe7   : > { %9759 = vmatmul.mubr.msk.f32.gmra.mrb[26].mxu1 %vm379_vm0, %v12011_v27 }
  0xe8   : > { %10277 = vmatmul.mubr.msk.f32.gmra.mrb[62].mxu0 %vm379_vm0, %v12013_v28  ;;  %9761 = vmatprep.mubr.msk.f32.mxu1 %vm379_vm0, %v12015_v12  ;;  %v12045_v28 = vld [vmem:[#allocation2 + $0x2ea] sm:$0xff] }
  0xe9   : > { %10279 = vmatprep.mubr.msk.f32.mxu0 %vm379_vm0, %v12017_v4  ;;  %v12043_v4 = vld [vmem:[#allocation2 + $0x148] sm:$0xff]  ;;  %13392 = vst [vmem:[#allocation24_spill] sm:$0xff] %v12045_v28 }
  0xeb   : > { %9762 = vmatmul.mubr.msk.f32.gmra.mrb[28].mxu1 %vm379_vm0, %v12027_v32 }
  0xec   : > { %10280 = vmatmul.mubr.msk.f32.gmra.mrb[64].mxu0 %vm379_vm0, %v12029_v9  ;;  %9764 = vmatprep.mubr.msk.f32.mxu1 %vm379_vm0, %v12031_v1  ;;  %v4360_v9 = vld [vmem:[#allocation2 + $0x302] sm:$0xff] }
  0xed   : > { %10282 = vmatprep.mubr.msk.f32.mxu0 %vm379_vm0, %v12033_v26  ;;  %v12059_v26 = vld [vmem:[#allocation2 + $0x160] sm:$0xff] }
  0xef   : > { %9765 = vmatmul.mubr.msk.f32.gmra.mrb[30].mxu1 %vm379_vm0, %v12043_v4 }
  0xf0   : > { %10283 = vmatmul.mubr.msk.f32.gmra.mrb[66].mxu0 %vm379_vm0, %v12045_v28  ;;  %9767 = vmatprep.mubr.msk.f32.mxu1 %vm379_vm0, %v12047_v60  ;;  %v12069_v28 = vld [vmem:[#allocation2 + $0x170] sm:$0xff] }
  0xf1   : > { %10285 = vmatprep.mubr.msk.f32.mxu0 %vm379_vm0, %v12049_v57  ;;  %v4362_v57 = vld [vmem:[#allocation2 + $0x312] sm:$0xff] }
  0xf3   : > { %9768 = vmatmul.mubr.msk.f32.gmra.mrb[32].mxu1 %vm379_vm0, %v12059_v26 }
  0xf4   : > { %10286 = vmatmul.mubr.msk.f32.gmra.mrb[68].mxu0 %vm379_vm0, %v4360_v9  ;;  %9770 = vmatprep.mubr.msk.f32.mxu1 %vm379_vm0, %v12061_v54  ;;  %v8910_v9 = vld [vmem:[%s11401_s24 + $0x190] sm:$0xff]  }
  0xf5   : > { %10288 = vmatprep.mubr.msk.f32.mxu0 %vm379_vm0, %v4361_v49  ;;  %v12086_v49 = vld [vmem:[#allocation2 + $0x188] sm:$0xff]  ;;  %v8884_v36 = vunpack.c.l.bf16 %v8910_v9 }
  0xf7   : > { %9771 = vmatmul.mubr.msk.f32.gmra.mrb[34].mxu1 %vm379_vm0, %v12069_v28  ;;  %481 = vst.msk [vmem:[#allocation2 + $0x320] sm:$0xff] %vm379_vm0, %v8884_v36 }
  0xf8   : > { %10289 = vmatmul.mubr.msk.f32.gmra.mrb[70].mxu0 %vm379_vm0, %v4362_v57  ;;  %9773 = vmatprep.mubr.msk.f32.mxu1 %vm379_vm0, %v12071_v46  ;;  %v8885_v57 = vunpack.c.h.bf16 %v8910_v9  ;;  %v8278_v9 = vld [vmem:[%s13339_s1 + $0x78] sm:$0xff] }
  0xf9   : > { %10299 = vmatprep.mubr.msk.f32.mxu0 %vm379_vm0, %v11831_v15  ;;  %v12099_v15 = vld [vmem:[#allocation2 + $0x1a0] sm:$0xff] }
  0xfa   : > { %482 = vst.msk [vmem:[#allocation2 + $0x328] sm:$0xff] %vm379_vm0, %v8885_v57  ;;  %v1922_v57 = vld [vmem:[#allocation2 + $0x12] sm:$0xff] }
  0xfb   : > { %9774 = vmatmul.mubr.msk.f32.gmra.mrb[36].mxu1 %vm379_vm0, %v12086_v49 }
  0xfc   : > { %10300 = vmatmul.mubr.msk.f32.vlgmr.msra.gmra.mrb[0].mxu0 %vm379_vm0, %v11842_v17  ;;  %9776 = vmatprep.mubr.msk.f32.mxu1 %vm379_vm0, %v12089_v40  ;;  %v12118_v17 = vld [vmem:[#allocation2 + $0x1c0] sm:$0xff] }
  0xfd   : > { %10698 = vmatpush3.bf16.msra.mxu0 %v11713_v8  ;;  %10302 = vmatprep.mubr.msk.f32.mxu0 %vm379_vm0, %v11846_v20  ;;  %v12116_v8 = vld [vmem:[#allocation2 + $0x1b0] sm:$0xff] }
  0xfe   : > { %10700 = vmatprep.subr.bf16.mxu0 %v10699_v38  ;;  %v12130_v20 = vld [vmem:[#allocation2 + $0x1d0] sm:$0xff] }
  0xff   : > { %9777 = vmatmul.mubr.msk.f32.gmra.mrb[38].mxu1 %vm379_vm0, %v12099_v15 }
 0x100   : > { %10303 = vmatmul.mubr.msk.f32.gmra.mrb[2].mxu0 %vm379_vm0, %v11854_v23  ;;  %9779 = vmatprep.mubr.msk.f32.mxu1 %vm379_vm0, %v12103_v42  ;;  %v12140_v23 = vld [vmem:[#allocation2 + $0x1e0] sm:$0xff] }
 0x101   : > { %10305 = vmatprep.mubr.msk.f32.mxu0 %vm379_vm0, %v11868_v29  ;;  %10702 = vmatpush3.bf16.msra.mxu0 %v10699_v38  ;;  %v12142_v29 = vld [vmem:[#allocation2 + $0x1e8] sm:$0xff]  ;;  %v12162_v38 = vld [vmem:[#allocation2 + $0x200] sm:$0xff] }
 0x103   : > { %9780 = vmatmul.mubr.msk.f32.gmra.mrb[40].mxu1 %vm379_vm0, %v12116_v8 }
 0x104   : > { %10306 = vmatmul.mubr.msk.f32.gmra.mrb[4].mxu0 %vm379_vm0, %v11882_v33  ;;  %9782 = vmatprep.mubr.msk.f32.mxu1 %vm379_vm0, %v12118_v17  ;;  %v8655_v33 = vld [vmem:[%s13339_s1 + $0x100] sm:$0xff] }
 0x105   : > { %10308 = vmatprep.mubr.msk.f32.mxu0 %vm379_vm0, %v11886_v35  ;;  %v8656_v35 = vld [vmem:[%s13339_s1 + $0x108] sm:$0xff] }
 0x106   : > { %v12150_v36 = vpack.c.bf16 %v8656_v35, %v8655_v33  ;;  %v12367_v33 = vld [vmem:[#allocation2 + $0x72] sm:$0xff]  ;;  %v12369_v35 = vld [vmem:[#allocation2 + $0x82] sm:$0xff] }
 0x107   : > { %9783 = vmatmul.mubr.msk.f32.gmra.mrb[42].mxu1 %vm379_vm0, %v12128_v53 }
 0x108   : > { %10309 = vmatmul.mubr.msk.f32.gmra.mrb[6].mxu0 %vm379_vm0, %v11899_v37  ;;  %9785 = vmatprep.mubr.msk.f32.mxu1 %vm379_vm0, %v12130_v20  ;;  %v12160_v37 = vld [vmem:[#allocation2 + $0x1f0] sm:$0xff] }
 0x109   : > { %10311 = vmatprep.mubr.msk.f32.mxu0 %vm379_vm0, %v11903_v39  ;;  %10704 = vmatprep.subr.bf16.mxu0 %v12150_v36  ;;  %v12173_v39 = vld [vmem:[#allocation2 + $0x208] sm:$0xff] }
 0x10b   : > { %9786 = vmatmul.mubr.msk.f32.gmra.mrb[44].mxu1 %vm379_vm0, %v12140_v23 }
 0x10c   : > { %10312 = vmatmul.mubr.msk.f32.gmra.mrb[8].mxu0 %vm379_vm0, %v11915_v41  ;;  %9788 = vmatprep.mubr.msk.f32.mxu1 %vm379_vm0, %v12142_v29  ;;  %v12175_v41 = vld [vmem:[#allocation2 + $0x210] sm:$0xff] }
 0x10d   : > { %10314 = vmatprep.mubr.msk.f32.mxu0 %vm379_vm0, %v11919_v43  ;;  %v12185_v43 = vld [vmem:[#allocation2 + $0x220] sm:$0xff] }
 0x10f   : > { %9789 = vmatmul.mubr.msk.f32.gmra.mrb[46].mxu1 %vm379_vm0, %v12160_v37 }
 0x110   : > { %10315 = vmatmul.mubr.msk.f32.gmra.mrb[10].mxu0 %vm379_vm0, %v11931_v45  ;;  %9791 = vmatprep.mubr.msk.f32.mxu1 %vm379_vm0, %v12162_v38  ;;  %v12187_v45 = vld [vmem:[#allocation2 + $0x228] sm:$0xff] }
 0x111   : > { %10317 = vmatprep.mubr.msk.f32.mxu0 %vm379_vm0, %v11935_v47  ;;  %v12197_v47 = vld [vmem:[#allocation2 + $0x230] sm:$0xff] }
 0x113   : > { %9792 = vmatmul.mubr.msk.f32.gmra.mrb[48].mxu1 %vm379_vm0, %v12173_v39 }
 0x114   : > { %10318 = vmatmul.mubr.msk.f32.gmra.mrb[12].mxu0 %vm379_vm0, %v11947_v51  ;;  %9794 = vmatprep.mubr.msk.f32.mxu1 %vm379_vm0, %v12175_v41  ;;  %v12199_v51 = vld [vmem:[#allocation2 + $0x240] sm:$0xff] }
 0x115   : > { %10320 = vmatprep.mubr.msk.f32.mxu0 %vm379_vm0, %v11951_v56  ;;  %v12209_v56 = vld [vmem:[#allocation2 + $0x248] sm:$0xff] }
 0x117   : > { %9795 = vmatmul.mubr.msk.f32.gmra.mrb[50].mxu1 %vm379_vm0, %v12185_v43 }
 0x118   : > { %10321 = vmatmul.mubr.msk.f32.gmra.mrb[14].mxu0 %vm379_vm0, %v11963_v59  ;;  %9797 = vmatprep.mubr.msk.f32.mxu1 %vm379_vm0, %v12187_v45  ;;  %v12211_v59 = vld [vmem:[#allocation2 + $0x250] sm:$0xff] }
 0x119   : > { %10323 = vmatprep.mubr.msk.f32.mxu0 %vm379_vm0, %v11967_v62  ;;  %v12221_v62 = vld [vmem:[#allocation2 + $0x260] sm:$0xff] }
 0x11b   : > { %9798 = vmatmul.mubr.msk.f32.gmra.mrb[52].mxu1 %vm379_vm0, %v12197_v47 }
 0x11c   : > { %10324 = vmatmul.mubr.msk.f32.gmra.mrb[16].mxu0 %vm379_vm0, %v11979_v0  ;;  %9800 = vmatprep.mubr.msk.f32.mxu1 %vm379_vm0, %v12199_v51  ;;  %v12223_v0 = vld [vmem:[#allocation2 + $0x268] sm:$0xff] }
 0x11d   : > { %10326 = vmatprep.mubr.msk.f32.mxu0 %vm379_vm0, %v11983_v2  ;;  %v12233_v2 = vld [vmem:[#allocation2 + $0x270] sm:$0xff] }
 0x11f   : > { %9801 = vmatmul.mubr.msk.f32.gmra.mrb[54].mxu1 %vm379_vm0, %v12209_v56 }
 0x120   : > { %10327 = vmatmul.mubr.msk.f32.gmra.mrb[18].mxu0 %vm379_vm0, %v11995_v5  ;;  %9803 = vmatprep.mubr.msk.f32.mxu1 %vm379_vm0, %v12211_v59  ;;  %v12235_v5 = vld [vmem:[#allocation2 + $0x280] sm:$0xff] }
 0x121   : > { %10329 = vmatprep.mubr.msk.f32.mxu0 %vm379_vm0, %v11999_v11  ;;  %v12245_v11 = vld [vmem:[#allocation2 + $0x288] sm:$0xff] }
 0x123   : > { %9804 = vmatmul.mubr.msk.f32.gmra.mrb[56].mxu1 %vm379_vm0, %v12221_v62 }
 0x124   : > { %10330 = vmatmul.mubr.msk.f32.gmra.mrb[20].mxu0 %vm379_vm0, %v12011_v27  ;;  %9806 = vmatprep.mubr.msk.f32.mxu1 %vm379_vm0, %v12223_v0  ;;  %v12247_v27 = vld [vmem:[#allocation2 + $0x290] sm:$0xff] }
 0x125   : > { %10332 = vmatprep.mubr.msk.f32.mxu0 %vm379_vm0, %v12015_v12  ;;  %v12257_v12 = vld [vmem:[#allocation2 + $0x2a0] sm:$0xff] }
 0x127   : > { %9807 = vmatmul.mubr.msk.f32.gmra.mrb[58].mxu1 %vm379_vm0, %v12233_v2 }
 0x128   : > { %10333 = vmatmul.mubr.msk.f32.gmra.mrb[22].mxu0 %vm379_vm0, %v12027_v32  ;;  %9809 = vmatprep.mubr.msk.f32.mxu1 %vm379_vm0, %v12235_v5  ;;  %v12259_v32 = vld [vmem:[#allocation2 + $0x2a8] sm:$0xff] }
 0x129   : > { %10335 = vmatprep.mubr.msk.f32.mxu0 %vm379_vm0, %v12031_v1  ;;  %v12269_v1 = vld [vmem:[#allocation2 + $0x2b0] sm:$0xff] }
 0x12b   : > { %9810 = vmatmul.mubr.msk.f32.gmra.mrb[60].mxu1 %vm379_vm0, %v12245_v11 }
 0x12c   : > { %10336 = vmatmul.mubr.msk.f32.gmra.mrb[24].mxu0 %vm379_vm0, %v12043_v4  ;;  %9812 = vmatprep.mubr.msk.f32.mxu1 %vm379_vm0, %v12247_v27  ;;  %v12271_v4 = vld [vmem:[#allocation2 + $0x2c0] sm:$0xff] }
 0x12d   : > { %10338 = vmatprep.mubr.msk.f32.mxu0 %vm379_vm0, %v12047_v60  ;;  %v12281_v60 = vld [vmem:[#allocation2 + $0x2c8] sm:$0xff] }
 0x12f   : > { %9813 = vmatmul.mubr.msk.f32.gmra.mrb[62].mxu1 %vm379_vm0, %v12257_v12 }
 0x130   : > { %10339 = vmatmul.mubr.msk.f32.gmra.mrb[26].mxu0 %vm379_vm0, %v12059_v26  ;;  %9815 = vmatprep.mubr.msk.f32.mxu1 %vm379_vm0, %v12259_v32  ;;  %v12283_v26 = vld [vmem:[#allocation2 + $0x2d0] sm:$0xff] }
 0x131   : > { %10341 = vmatprep.mubr.msk.f32.mxu0 %vm379_vm0, %v12061_v54  ;;  %v12293_v54 = vld [vmem:[#allocation2 + $0x2e0] sm:$0xff] }
 0x133   : > { %9816 = vmatmul.mubr.msk.f32.gmra.mrb[64].mxu1 %vm379_vm0, %v12269_v1 }
 0x134   : > { %10342 = vmatmul.mubr.msk.f32.gmra.mrb[28].mxu0 %vm379_vm0, %v12069_v28  ;;  %9818 = vmatprep.mubr.msk.f32.mxu1 %vm379_vm0, %v12271_v4  ;;  %v12295_v28 = vld [vmem:[#allocation2 + $0x2e8] sm:$0xff] }
 0x135   : > { %10344 = vmatprep.mubr.msk.f32.mxu0 %vm379_vm0, %v12071_v46  ;;  %v12305_v46 = vld [vmem:[#allocation2 + $0x2f0] sm:$0xff] }
 0x137   : > { %9819 = vmatmul.mubr.msk.f32.gmra.mrb[66].mxu1 %vm379_vm0, %v12281_v60 }
 0x138   : > { %10345 = vmatmul.mubr.msk.f32.gmra.mrb[30].mxu0 %vm379_vm0, %v12086_v49  ;;  %9821 = vmatprep.mubr.msk.f32.mxu1 %vm379_vm0, %v12283_v26  ;;  %v1920_v49 = vld [vmem:[#allocation2 + $0x2] sm:$0xff] }
 0x139   : > { %10347 = vmatprep.mubr.msk.f32.mxu0 %vm379_vm0, %v12089_v40  ;;  %v8277_v40 = vld [vmem:[%s13339_s1 + $0x70] sm:$0xff] }
 0x13b   : > { %9822 = vmatmul.mubr.msk.f32.gmra.mrb[68].mxu1 %vm379_vm0, %v12293_v54 }
 0x13c   : > { %10348 = vmatmul.mubr.msk.f32.gmra.mrb[32].mxu0 %vm379_vm0, %v12099_v15  ;;  %9824 = vmatprep.mubr.msk.f32.mxu1 %vm379_vm0, %v12295_v28  ;;  %v1921_v15 = vld [vmem:[#allocation2 + $0xa] sm:$0xff] }
 0x13d   : > { %10350 = vmatprep.mubr.msk.f32.mxu0 %vm379_vm0, %v12103_v42  ;;  %v10667_v42 = vpack.c.bf16 %v8278_v9, %v8277_v40  ;;  %v13394_v40 = vld [vmem:[#allocation5_spill] sm:$0xff] }
 0x13e   : > { %v5890_v9 = vld [vmem:[#allocation2 + $0x101] sm:$0xff] }
 0x13f   : > { %9825 = vmatmul.mubr.msk.f32.gmra.mrb[70].mxu1 %vm379_vm0, %v12305_v46 }
 0x140   : > { %10351 = vmatmul.mubr.msk.f32.gmra.mrb[34].mxu0 %vm379_vm0, %v12116_v8  ;;  %9835 = vmatprep.mubr.msk.f32.mxu1 %vm379_vm0, %v1920_v49  ;;  %v1924_v8 = vld [vmem:[#allocation2 + $0x2a] sm:$0xff] }
 0x141   : > { %10353 = vmatprep.mubr.msk.f32.mxu0 %vm379_vm0, %v12118_v17  ;;  %v1925_v17 = vld [vmem:[#allocation2 + $0x32] sm:$0xff] }
 0x143   : > { %9836 = vmatmul.mubr.msk.f32.vlgmr.msra.gmra.mrb[0].mxu1 %vm379_vm0, %v1921_v15  ;;  %v13396_v15 = vld [vmem:[#allocation7_spill] sm:$0xff] }
 0x144   : > { %10354 = vmatmul.mubr.msk.f32.gmra.mrb[36].mxu0 %vm379_vm0, %v12128_v53  ;;  %10666 = vmatpush3.bf16.msra.mxu1 %v11872_v31  ;;  %v12333_v31 = vld [vmem:[#allocation2 + $0x42] sm:$0xff]  ;;  %v12343_v53 = vld [vmem:[#allocation2 + $0x4a] sm:$0xff] }
 0x145   : > { %9838 = vmatprep.mubr.msk.f32.mxu1 %vm379_vm0, %v1922_v57  ;;  %10356 = vmatprep.mubr.msk.f32.mxu0 %vm379_vm0, %v12130_v20  ;;  %v12345_v20 = vld [vmem:[#allocation2 + $0x52] sm:$0xff]  ;;  %v5891_v57 = vld [vmem:[#allocation2 + $0x109] sm:$0xff] }
 0x146   : > { %10668 = vmatprep.subr.bf16.mxu1 %v10667_v42 }
 0x147   : > { %9839 = vmatmul.mubr.msk.f32.gmra.mrb[2].mxu1 %vm379_vm0, %v1923_v44  ;;  %v13398_v44 = vld [vmem:[#allocation9_spill] sm:$0xff] }
 0x148   : > { %10357 = vmatmul.mubr.msk.f32.gmra.mrb[38].mxu0 %vm379_vm0, %v12140_v23  ;;  %9841 = vmatprep.mubr.msk.f32.mxu1 %vm379_vm0, %v1924_v8  ;;  %v12355_v23 = vld [vmem:[#allocation2 + $0x62] sm:$0xff]  ;;  %v13399_v8 = vld [vmem:[#allocation10_spill] sm:$0xff] }
 0x149   : > { %10359 = vmatprep.mubr.msk.f32.mxu0 %vm379_vm0, %v12142_v29  ;;  %10670 = vmatpush3.bf16.msra.mxu1 %v10667_v42  ;;  %v12357_v29 = vld [vmem:[#allocation2 + $0x6a] sm:$0xff] }
 0x14a   : > { %10711 = vmatprep.subr.bf16.mxu1 %v11356_v7  ;;  %v5892_v42 = vld [vmem:[#allocation2 + $0x111] sm:$0xff] }
 0x14b   : > { %9842 = vmatmul.mubr.msk.f32.gmra.mrb[4].mxu1 %vm379_vm0, %v1925_v17  ;;  %v5893_v17 = vld [vmem:[#allocation2 + $0x121] sm:$0xff] }
 0x14c   : > { %10360 = vmatmul.mubr.msk.f32.gmra.mrb[40].mxu0 %vm379_vm0, %v12160_v37  ;;  %9844 = vmatprep.mubr.msk.f32.mxu1 %vm379_vm0, %v12333_v31  ;;  %v12379_v37 = vld [vmem:[#allocation2 + $0x8a] sm:$0xff] }
 0x14d   : > { %10362 = vmatprep.mubr.msk.f32.mxu0 %vm379_vm0, %v12162_v38  ;;  %v12381_v38 = vld [vmem:[#allocation2 + $0x92] sm:$0xff] }
 0x14f   : > { %9845 = vmatmul.mubr.msk.f32.gmra.mrb[6].mxu1 %vm379_vm0, %v12343_v53 }
 0x150   : > { %10363 = vmatmul.mubr.msk.f32.gmra.mrb[42].mxu0 %vm379_vm0, %v12173_v39  ;;  %9847 = vmatprep.mubr.msk.f32.mxu1 %vm379_vm0, %v12345_v20  ;;  %v12391_v39 = vld [vmem:[#allocation2 + $0xa2] sm:$0xff] }
 0x151   : > { %10365 = vmatprep.mubr.msk.f32.mxu0 %vm379_vm0, %v12175_v41  ;;  %v12393_v41 = vld [vmem:[#allocation2 + $0xaa] sm:$0xff] }
 0x153   : > { %9848 = vmatmul.mubr.msk.f32.gmra.mrb[8].mxu1 %vm379_vm0, %v12355_v23 }
 0x154   : > { %10366 = vmatmul.mubr.msk.f32.gmra.mrb[44].mxu0 %vm379_vm0, %v12185_v43  ;;  %9850 = vmatprep.mubr.msk.f32.mxu1 %vm379_vm0, %v12357_v29  ;;  %v12403_v43 = vld [vmem:[#allocation2 + $0xb2] sm:$0xff] }
 0x155   : > { %10368 = vmatprep.mubr.msk.f32.mxu0 %vm379_vm0, %v12187_v45  ;;  %v12405_v45 = vld [vmem:[#allocation2 + $0xc2] sm:$0xff] }
 0x157   : > { %9851 = vmatmul.mubr.msk.f32.gmra.mrb[10].mxu1 %vm379_vm0, %v12367_v33 }
 0x158   : > { %10369 = vmatmul.mubr.msk.f32.gmra.mrb[46].mxu0 %vm379_vm0, %v12197_v47  ;;  %9853 = vmatprep.mubr.msk.f32.mxu1 %vm379_vm0, %v12369_v35  ;;  %v12415_v47 = vld [vmem:[#allocation2 + $0xca] sm:$0xff] }
 0x159   : > { %10371 = vmatprep.mubr.msk.f32.mxu0 %vm379_vm0, %v12199_v51  ;;  %v12417_v51 = vld [vmem:[#allocation2 + $0xd2] sm:$0xff] }
 0x15b   : > { %9854 = vmatmul.mubr.msk.f32.gmra.mrb[12].mxu1 %vm379_vm0, %v12379_v37 }
 0x15c   : > { %10372 = vmatmul.mubr.msk.f32.gmra.mrb[48].mxu0 %vm379_vm0, %v12209_v56  ;;  %9856 = vmatprep.mubr.msk.f32.mxu1 %vm379_vm0, %v12381_v38  ;;  %v12427_v56 = vld [vmem:[#allocation2 + $0xe2] sm:$0xff] }
 0x15d   : > { %10374 = vmatprep.mubr.msk.f32.mxu0 %vm379_vm0, %v12211_v59  ;;  %v12429_v59 = vld [vmem:[#allocation2 + $0xea] sm:$0xff] }
 0x15f   : > { %9857 = vmatmul.mubr.msk.f32.gmra.mrb[14].mxu1 %vm379_vm0, %v12391_v39 }
 0x160   : > { %10375 = vmatmul.mubr.msk.f32.gmra.mrb[50].mxu0 %vm379_vm0, %v12221_v62  ;;  %9859 = vmatprep.mubr.msk.f32.mxu1 %vm379_vm0, %v12393_v41  ;;  %v12439_v62 = vld [vmem:[#allocation2 + $0xf2] sm:$0xff] }
 0x161   : > { %10377 = vmatprep.mubr.msk.f32.mxu0 %vm379_vm0, %v12223_v0  ;;  %v12441_v0 = vld [vmem:[#allocation2 + $0x102] sm:$0xff] }
 0x163   : > { %9860 = vmatmul.mubr.msk.f32.gmra.mrb[16].mxu1 %vm379_vm0, %v12403_v43 }
 0x164   : > { %10378 = vmatmul.mubr.msk.f32.gmra.mrb[52].mxu0 %vm379_vm0, %v12233_v2  ;;  %9862 = vmatprep.mubr.msk.f32.mxu1 %vm379_vm0, %v12405_v45  ;;  %v12451_v2 = vld [vmem:[#allocation2 + $0x10a] sm:$0xff] }
 0x165   : > { %10380 = vmatprep.mubr.msk.f32.mxu0 %vm379_vm0, %v12235_v5  ;;  %v12453_v5 = vld [vmem:[#allocation2 + $0x112] sm:$0xff] }
 0x167   : > { %9863 = vmatmul.mubr.msk.f32.gmra.mrb[18].mxu1 %vm379_vm0, %v12415_v47 }
 0x168   : > { %10381 = vmatmul.mubr.msk.f32.gmra.mrb[54].mxu0 %vm379_vm0, %v12245_v11  ;;  %9865 = vmatprep.mubr.msk.f32.mxu1 %vm379_vm0, %v12417_v51  ;;  %v12463_v11 = vld [vmem:[#allocation2 + $0x122] sm:$0xff] }
 0x169   : > { %10383 = vmatprep.mubr.msk.f32.mxu0 %vm379_vm0, %v12247_v27  ;;  %v12465_v27 = vld [vmem:[#allocation2 + $0x12a] sm:$0xff] }
 0x16b   : > { %9866 = vmatmul.mubr.msk.f32.gmra.mrb[20].mxu1 %vm379_vm0, %v12427_v56 }
 0x16c   : > { %10384 = vmatmul.mubr.msk.f32.gmra.mrb[56].mxu0 %vm379_vm0, %v12257_v12  ;;  %9868 = vmatprep.mubr.msk.f32.mxu1 %vm379_vm0, %v12429_v59  ;;  %v12475_v12 = vld [vmem:[#allocation2 + $0x132] sm:$0xff] }
 0x16d   : > { %10386 = vmatprep.mubr.msk.f32.mxu0 %vm379_vm0, %v12259_v32  ;;  %v12477_v32 = vld [vmem:[#allocation2 + $0x300] sm:$0xff] }
 0x16f   : > { %9869 = vmatmul.mubr.msk.f32.gmra.mrb[22].mxu1 %vm379_vm0, %v12439_v62 }
 0x170   : > { %10387 = vmatmul.mubr.msk.f32.gmra.mrb[58].mxu0 %vm379_vm0, %v12269_v1  ;;  %9871 = vmatprep.mubr.msk.f32.mxu1 %vm379_vm0, %v12441_v0  ;;  %v12487_v1 = vld [vmem:[#allocation2 + $0x308] sm:$0xff] }
 0x171   : > { %10389 = vmatprep.mubr.msk.f32.mxu0 %vm379_vm0, %v12271_v4  ;;  %v12489_v4 = vld [vmem:[#allocation2 + $0x310] sm:$0xff] }
 0x173   : > { %9872 = vmatmul.mubr.msk.f32.gmra.mrb[24].mxu1 %vm379_vm0, %v12451_v2 }
 0x174   : > { %10390 = vmatmul.mubr.msk.f32.gmra.mrb[60].mxu0 %vm379_vm0, %v12281_v60  ;;  %9874 = vmatprep.mubr.msk.f32.mxu1 %vm379_vm0, %v12453_v5  ;;  %v5152_v60 = vld [vmem:[#allocation2 + $0x328] sm:$0xff] }
 0x175   : > { %10392 = vmatprep.mubr.msk.f32.mxu0 %vm379_vm0, %v12283_v26  ;;  %v5872_v26 = vld [vmem:[#allocation2 + $0x41] sm:$0xff] }
 0x177   : > { %9875 = vmatmul.mubr.msk.f32.gmra.mrb[26].mxu1 %vm379_vm0, %v12463_v11 }
 0x178   : > { %10393 = vmatmul.mubr.msk.f32.gmra.mrb[62].mxu0 %vm379_vm0, %v12293_v54  ;;  %9877 = vmatprep.mubr.msk.f32.mxu1 %vm379_vm0, %v12465_v27  ;;  %v8658_v54 = vld [vmem:[%s13339_s1 + $0x118] sm:$0xff] }
 0x179   : > { %10395 = vmatprep.mubr.msk.f32.mxu0 %vm379_vm0, %v12295_v28  ;;  %v5874_v28 = vld [vmem:[#allocation2 + $0x51] sm:$0xff] }
 0x17b   : > { %9878 = vmatmul.mubr.msk.f32.gmra.mrb[28].mxu1 %vm379_vm0, %v12475_v12 }
 0x17c   : > { %10396 = vmatmul.mubr.msk.f32.gmra.mrb[64].mxu0 %vm379_vm0, %v12305_v46  ;;  %9880 = vmatprep.mubr.msk.f32.mxu1 %vm379_vm0, %v11752_v48  ;;  %v5151_v48 = vld [vmem:[#allocation2 + $0x320] sm:$0xff]  ;;  %v274_v46 = vld [vmem:[%s11401_s24 + $0x19c] sm:$0x1] }
 0x17d   : > { %10398 = vmatprep.mubr.msk.f32.mxu0 %vm379_vm0, %v12477_v32  ;;  %v378_v49 = vunpack.c.l.bf16 %v274_v46  ;;  %v13405_v46 = vld [vmem:[#allocation16_spill] sm:$0xff] }
 0x17f   : > { %9881 = vmatmul.mubr.msk.f32.gmra.mrb[30].mxu1 %vm379_vm0, %v11754_v50  ;;  %v5153_v50 = vld [vmem:[#allocation2 + $0x330] sm:$0xff]  ;;  %484 = vst.msk [vmem:[#allocation2 + $0x338] sm:$0x3] %vm383_vm1, %v378_v49 }
 0x180   : > { %10399 = vmatmul.mubr.msk.f32.gmra.mrb[66].mxu0 %vm379_vm0, %v12487_v1  ;;  %9883 = vmatprep.mubr.msk.f32.mxu1 %vm379_vm0, %v11762_v52  ;;  %v8657_v52 = vld [vmem:[%s13339_s1 + $0x110] sm:$0xff] }
 0x181   : > { %10401 = vmatprep.mubr.msk.f32.mxu0 %vm379_vm0, %v12489_v4  ;;  %v5900_v49 = vld [vmem:[#allocation2 + $0x169] sm:$0xff] }
 0x183   : > { %9884 = vmatmul.mubr.msk.f32.gmra.mrb[32].mxu1 %vm379_vm0, %v11764_v55  ;;  %v5873_v55 = vld [vmem:[#allocation2 + $0x49] sm:$0xff] }
 0x184   : > { %10402 = vmatmul.mubr.msk.f32.gmra.mrb[68].mxu0 %vm379_vm0, %v5151_v48  ;;  %9886 = vmatprep.mubr.msk.f32.mxu1 %vm379_vm0, %v11772_v21  ;;  %v10707_v21 = vpack.c.bf16 %v8658_v54, %v8657_v52  ;;  %v5894_v48 = vld [vmem:[#allocation2 + $0x129] sm:$0xff]  ;;  %v5896_v52 = vld [vmem:[#allocation2 + $0x141] sm:$0xff] }
 0x185   : > { %10404 = vmatprep.mubr.msk.f32.mxu0 %vm379_vm0, %v5152_v60  ;;  %v13400_v60 = vld [vmem:[#allocation11_spill] sm:$0xff]  ;;  %v13402_v54 = vld [vmem:[#allocation13_spill] sm:$0xff] }
 0x187   : > { %9887 = vmatmul.mubr.msk.f32.gmra.mrb[34].mxu1 %vm379_vm0, %v11774_v58  ;;  %v5875_v58 = vld [vmem:[#allocation2 + $0x61] sm:$0xff] }
 0x188   : > { %10405 = vmatmul.mubr.msk.f32.gmra.mrb[70].mxu0 %vm379_vm0, %v5153_v50  ;;  %9889 = vmatprep.mubr.msk.f32.mxu1 %vm379_vm0, %v11782_v19  ;;  %v5876_v19 = vld [vmem:[#allocation2 + $0x69] sm:$0xff]  ;;  %v13401_v50 = vld [vmem:[#allocation12_spill] sm:$0xff] }
 0x189   : > { %10415 = vmatprep.mubr.msk.f32.mxu0 %vm379_vm0, %v5872_v26  ;;  %v5895_v26 = vld [vmem:[#allocation2 + $0x131] sm:$0xff] }
 0x18b   : > { %9890 = vmatmul.mubr.msk.f32.gmra.mrb[36].mxu1 %vm379_vm0, %v11784_v61  ;;  %v5877_v61 = vld [vmem:[#allocation2 + $0x71] sm:$0xff] }
 0x18c   : > { %10416 = vmatmul.mubr.msk.f32.vlgmr.msra.gmra.mrb[0].mxu0 %vm379_vm0, %v5873_v55  ;;  %9892 = vmatprep.mubr.msk.f32.mxu1 %vm379_vm0, %v11792_v25  ;;  %v5878_v25 = vld [vmem:[#allocation2 + $0x81] sm:$0xff]  ;;  %v13403_v55 = vld [vmem:[#allocation14_spill] sm:$0xff] }
 0x18d   : > { %10706 = vmatpush3.bf16.msra.mxu0 %v12150_v36  ;;  %10418 = vmatprep.mubr.msk.f32.mxu0 %vm379_vm0, %v5874_v28  ;;  %v5880_v36 = vld [vmem:[#allocation2 + $0x91] sm:$0xff] }
 0x18e   : > { %10708 = vmatprep.subr.bf16.mxu0 %v10707_v21  ;;  %v5898_v28 = vld [vmem:[#allocation2 + $0x151] sm:$0xff] }
 0x18f   : > { %9893 = vmatmul.mubr.msk.f32.gmra.mrb[38].mxu1 %vm379_vm0, %v11794_v63  ;;  %v5879_v63 = vld [vmem:[#allocation2 + $0x89] sm:$0xff] }
 0x190   : > { %10419 = vmatmul.mubr.msk.f32.gmra.mrb[2].mxu0 %vm379_vm0, %v5875_v58  ;;  %9895 = vmatprep.mubr.msk.f32.mxu1 %vm379_vm0, %v11808_v3  ;;  %v5881_v3 = vld [vmem:[#allocation2 + $0xa1] sm:$0xff]  ;;  %v13404_v58 = vld [vmem:[#allocation15_spill] sm:$0xff] }
 0x191   : > { %10421 = vmatprep.mubr.msk.f32.mxu0 %vm379_vm0, %v5876_v19  ;;  %10710 = vmatpush3.bf16.msra.mxu0 %v10707_v21  ;;  %v5897_v21 = vld [vmem:[#allocation2 + $0x149] sm:$0xff]  ;;  %v5899_v19 = vld [vmem:[#allocation2 + $0x161] sm:$0xff] }
 0x193   : > { %9896 = vmatmul.mubr.msk.f32.gmra.mrb[40].mxu1 %vm379_vm0, %v11810_v6  ;;  %v5882_v6 = vld [vmem:[#allocation2 + $0xa9] sm:$0xff] }
 0x194   : > { %10422 = vmatmul.mubr.msk.f32.gmra.mrb[4].mxu0 %vm379_vm0, %v5877_v61  ;;  %9898 = vmatprep.mubr.msk.f32.mxu1 %vm379_vm0, %v11817_v10  ;;  %v5883_v10 = vld [vmem:[#allocation2 + $0xb1] sm:$0xff]  ;;  %v13406_v61 = vld [vmem:[#allocation17_spill] sm:$0xff] }
 0x195   : > { %10424 = vmatprep.mubr.msk.f32.mxu0 %vm379_vm0, %v5878_v25  ;;  %v13407_v25 = vld [vmem:[#allocation18_spill] sm:$0xff] }
 0x197   : > { %9899 = vmatmul.mubr.msk.f32.gmra.mrb[42].mxu1 %vm379_vm0, %v11821_v13  ;;  %v5884_v13 = vld [vmem:[#allocation2 + $0xc1] sm:$0xff] }
 0x198   : > { %10425 = vmatmul.mubr.msk.f32.gmra.mrb[6].mxu0 %vm379_vm0, %v5879_v63  ;;  %9901 = vmatprep.mubr.msk.f32.mxu1 %vm379_vm0, %v11829_v14  ;;  %v5885_v14 = vld [vmem:[#allocation2 + $0xc9] sm:$0xff]  ;;  %v5901_v63 = vld [vmem:[#allocation2 + $0x171] sm:$0xff] }
 0x199   : > { %10427 = vmatprep.mubr.msk.f32.mxu0 %vm379_vm0, %v5880_v36  ;;  %v5902_v36 = vld [vmem:[#allocation2 + $0x181] sm:$0xff] }
 0x19b   : > { %9902 = vmatmul.mubr.msk.f32.gmra.mrb[44].mxu1 %vm379_vm0, %v11833_v16  ;;  %v5886_v16 = vld [vmem:[#allocation2 + $0xd1] sm:$0xff] }
 0x19c   : > { %10428 = vmatmul.mubr.msk.f32.gmra.mrb[8].mxu0 %vm379_vm0, %v5881_v3  ;;  %9904 = vmatprep.mubr.msk.f32.mxu1 %vm379_vm0, %v11844_v18  ;;  %v5887_v18 = vld [vmem:[#allocation2 + $0xe1] sm:$0xff]  ;;  %v13408_v3 = vld [vmem:[#allocation19_spill] sm:$0xff] }
 0x19d   : > { %10430 = vmatprep.mubr.msk.f32.mxu0 %vm379_vm0, %v5882_v6  ;;  %v13409_v6 = vld [vmem:[#allocation20_spill] sm:$0xff] }
 0x19f   : > { %9905 = vmatmul.mubr.msk.f32.gmra.mrb[46].mxu1 %vm379_vm0, %v11848_v22  ;;  %v5888_v22 = vld [vmem:[#allocation2 + $0xe9] sm:$0xff] }
 0x1a0   : > { %10431 = vmatmul.mubr.msk.f32.gmra.mrb[10].mxu0 %vm379_vm0, %v5883_v10  ;;  %9907 = vmatprep.mubr.msk.f32.mxu1 %vm379_vm0, %v11860_v24  ;;  %v13395_v24 = vld [vmem:[#allocation6_spill] sm:$0xff] }
 0x1a1   : > { %10433 = vmatprep.mubr.msk.f32.mxu0 %vm379_vm0, %v5884_v13  ;;  %v5903_v10 = vld [vmem:[#allocation2 + $0x189] sm:$0xff]  ;;  %v5904_v13 = vld [vmem:[#allocation2 + $0x191] sm:$0xff] }
 0x1a3   : > { %9908 = vmatmul.mubr.msk.f32.gmra.mrb[48].mxu1 %vm379_vm0, %v11870_v30  ;;  %v5889_v30 = vld [vmem:[#allocation2 + $0xf1] sm:$0xff] }
 0x1a4   : > { %10434 = vmatmul.mubr.msk.f32.gmra.mrb[12].mxu0 %vm379_vm0, %v5885_v14  ;;  %9910 = vmatprep.mubr.msk.f32.mxu1 %vm379_vm0, %v11884_v34  ;;  %v13397_v34 = vld [vmem:[#allocation8_spill] sm:$0xff]  ;;  %v13410_v14 = vld [vmem:[#allocation21_spill] sm:$0xff] }
 0x1a5   : > { %10436 = vmatprep.mubr.msk.f32.mxu0 %vm379_vm0, %v5886_v16  ;;  %v13411_v16 = vld [vmem:[#allocation22_spill] sm:$0xff] }
 0x1a7   : > { %9911 = vmatmul.mubr.msk.f32.gmra.mrb[50].mxu1 %vm379_vm0, %v13394_v40  ;;  %v13412_v40 = vld [vmem:[#allocation23_spill] sm:$0xff] }
 0x1a8   : > { %10437 = vmatmul.mubr.msk.f32.gmra.mrb[14].mxu0 %vm379_vm0, %v5887_v18  ;;  %9913 = vmatprep.mubr.msk.f32.mxu1 %vm379_vm0, %v13395_v24  ;;  %v12616_v18 = vld [vmem:[#allocation2 + $0x1a1] sm:$0xff] }
 0x1a9   : > { %10439 = vmatprep.mubr.msk.f32.mxu0 %vm379_vm0, %v5888_v22  ;;  %v12618_v22 = vld [vmem:[#allocation2 + $0x1a9] sm:$0xff]  ;;  %v13413_v24 = vld [vmem:[#allocation24_spill] sm:$0xff] }
 0x1ab   : > { %9914 = vmatmul.mubr.msk.f32.gmra.mrb[52].mxu1 %vm379_vm0, %v13396_v15  ;;  %v12630_v15 = vld [vmem:[#allocation2 + $0x1c1] sm:$0xff] }
 0x1ac   : > { %10440 = vmatmul.mubr.msk.f32.gmra.mrb[16].mxu0 %vm379_vm0, %v5889_v30  ;;  %9916 = vmatprep.mubr.msk.f32.mxu1 %vm379_vm0, %v13397_v34  ;;  %v12628_v30 = vld [vmem:[#allocation2 + $0x1b1] sm:$0xff]  ;;  %v13414_v34 = vld [vmem:[#allocation25_spill] sm:$0xff] }
 0x1ad   : > { %10442 = vmatprep.mubr.msk.f32.mxu0 %vm379_vm0, %v5890_v9  ;;  %v2711_v9 = vld [vmem:[#allocation2 + $0x20] sm:$0xff] }
 0x1af   : > { %9917 = vmatmul.mubr.msk.f32.gmra.mrb[54].mxu1 %vm379_vm0, %v13398_v44  ;;  %v2713_v44 = vld [vmem:[#allocation2 + $0x30] sm:$0xff] }
 0x1b0   : > { %10443 = vmatmul.mubr.msk.f32.gmra.mrb[18].mxu0 %vm379_vm0, %v5891_v57  ;;  %9919 = vmatprep.mubr.msk.f32.mxu1 %vm379_vm0, %v13399_v8  ;;  %v2712_v57 = vld [vmem:[#allocation2 + $0x28] sm:$0xff]  ;;  %v12641_v8 = vld [vmem:[#allocation2 + $0x1d1] sm:$0xff] }
 0x1b1   : > { %10445 = vmatprep.mubr.msk.f32.mxu0 %vm379_vm0, %v5892_v42  ;;  %v12639_v42 = vld [vmem:[#allocation2 + $0x1c9] sm:$0xff] }
 0x1b3   : > { %9920 = vmatmul.mubr.msk.f32.gmra.mrb[56].mxu1 %vm379_vm0, %v13400_v60  ;;  %v2715_v60 = vld [vmem:[#allocation2 + $0x48] sm:$0xff] }
 0x1b4   : > { %10446 = vmatmul.mubr.msk.f32.gmra.mrb[20].mxu0 %vm379_vm0, %v5893_v17  ;;  %9922 = vmatprep.mubr.msk.f32.mxu1 %vm379_vm0, %v13401_v50  ;;  %v2714_v17 = vld [vmem:[#allocation2 + $0x40] sm:$0xff]  ;;  %v12652_v50 = vld [vmem:[#allocation2 + $0x1e9] sm:$0xff] }
 0x1b5   : > { %10448 = vmatprep.mubr.msk.f32.mxu0 %vm379_vm0, %v5894_v48  ;;  %v12648_v48 = vld [vmem:[#allocation2 + $0x1e1] sm:$0xff] }
 0x1b7   : > { %9923 = vmatmul.mubr.msk.f32.gmra.mrb[58].mxu1 %vm379_vm0, %v13402_v54  ;;  %v2717_v54 = vld [vmem:[#allocation2 + $0x60] sm:$0xff] }
 0x1b8   : > { %10449 = vmatmul.mubr.msk.f32.gmra.mrb[22].mxu0 %vm379_vm0, %v5895_v26  ;;  %9925 = vmatprep.mubr.msk.f32.mxu1 %vm379_vm0, %v13403_v55  ;;  %v13415_v26 = vld [vmem:[#allocation4_spill] sm:$0xff] }
 0x1b9   : > { %10451 = vmatprep.mubr.msk.f32.mxu0 %vm379_vm0, %v5896_v52  ;;  %v12661_v52 = vld [vmem:[#allocation2 + $0x1f1] sm:$0xff]  ;;  %v12663_v55 = vld [vmem:[#allocation2 + $0x201] sm:$0xff] }
 0x1bb   : > { %9926 = vmatmul.mubr.msk.f32.gmra.mrb[60].mxu1 %vm379_vm0, %v13404_v58  ;;  %v2719_v58 = vld [vmem:[#allocation2 + $0x70] sm:$0xff] }
 0x1bc   : > { %10452 = vmatmul.mubr.msk.f32.gmra.mrb[24].mxu0 %vm379_vm0, %v5897_v21  ;;  %9928 = vmatprep.mubr.msk.f32.mxu1 %vm379_vm0, %v13405_v46  ;;  %v2718_v21 = vld [vmem:[#allocation2 + $0x68] sm:$0xff]  ;;  %v12674_v46 = vld [vmem:[#allocation2 + $0x211] sm:$0xff] }
 0x1bd   : > { %10454 = vmatprep.mubr.msk.f32.mxu0 %vm379_vm0, %v5898_v28  ;;  %v12672_v28 = vld [vmem:[#allocation2 + $0x209] sm:$0xff] }
 0x1bf   : > { %9929 = vmatmul.mubr.msk.f32.gmra.mrb[62].mxu1 %vm379_vm0, %v13406_v61  ;;  %v2721_v61 = vld [vmem:[#allocation2 + $0x88] sm:$0xff] }
 0x1c0   : > { %10455 = vmatmul.mubr.msk.f32.gmra.mrb[26].mxu0 %vm379_vm0, %v5899_v19  ;;  %9931 = vmatprep.mubr.msk.f32.mxu1 %vm379_vm0, %v13407_v25  ;;  %v2720_v19 = vld [vmem:[#allocation2 + $0x80] sm:$0xff]  ;;  %v12684_v25 = vld [vmem:[#allocation2 + $0x229] sm:$0xff] }
 0x1c1   : > { %10457 = vmatprep.mubr.msk.f32.mxu0 %vm379_vm0, %v5900_v49  ;;  %v12682_v49 = vld [vmem:[#allocation2 + $0x221] sm:$0xff] }
 0x1c3   : > { %9932 = vmatmul.mubr.msk.f32.gmra.mrb[64].mxu1 %vm379_vm0, %v13408_v3  ;;  %v2723_v3 = vld [vmem:[#allocation2 + $0xa0] sm:$0xff] }
 0x1c4   : > { %10458 = vmatmul.mubr.msk.f32.gmra.mrb[28].mxu0 %vm379_vm0, %v5901_v63  ;;  %9934 = vmatprep.mubr.msk.f32.mxu1 %vm379_vm0, %v13409_v6  ;;  %v2722_v63 = vld [vmem:[#allocation2 + $0x90] sm:$0xff]  ;;  %v12694_v6 = vld [vmem:[#allocation2 + $0x241] sm:$0xff] }
 0x1c5   : > { %10460 = vmatprep.mubr.msk.f32.mxu0 %vm379_vm0, %v5902_v36  ;;  %v12692_v36 = vld [vmem:[#allocation2 + $0x231] sm:$0xff] }
 0x1c7   : > { %9935 = vmatmul.mubr.msk.f32.gmra.mrb[66].mxu1 %vm379_vm0, %v13410_v14  ;;  %v2725_v14 = vld [vmem:[#allocation2 + $0xb0] sm:$0xff] }
 0x1c8   : > { %10461 = vmatmul.mubr.msk.f32.gmra.mrb[30].mxu0 %vm379_vm0, %v5903_v10  ;;  %9937 = vmatprep.mubr.msk.f32.mxu1 %vm379_vm0, %v13411_v16  ;;  %v2724_v10 = vld [vmem:[#allocation2 + $0xa8] sm:$0xff]  ;;  %v12704_v16 = vld [vmem:[#allocation2 + $0x251] sm:$0xff] }
 0x1c9   : > { %10463 = vmatprep.mubr.msk.f32.mxu0 %vm379_vm0, %v5904_v13  ;;  %v12702_v13 = vld [vmem:[#allocation2 + $0x249] sm:$0xff] }
 0x1cb   : > { %9938 = vmatmul.mubr.msk.f32.gmra.mrb[68].mxu1 %vm379_vm0, %v13412_v40  ;;  %v2726_v40 = vld [vmem:[#allocation2 + $0xc0] sm:$0xff] }
 0x1cc   : > { %10464 = vmatmul.mubr.msk.f32.gmra.mrb[32].mxu0 %vm379_vm0, %v12616_v18  ;;  %9940 = vmatprep.mubr.msk.f32.mxu1 %vm379_vm0, %v13413_v24  ;;  %v12712_v24 = vld [vmem:[#allocation2 + $0x261] sm:$0xff] }
 0x1cd   : > { %10466 = vmatprep.mubr.msk.f32.mxu0 %vm379_vm0, %v12618_v22 }
 0x1cf   : > { %9941 = vmatmul.mubr.msk.f32.gmra.mrb[70].mxu1 %vm379_vm0, %v13414_v34  ;;  %v12714_v34 = vld [vmem:[#allocation2 + $0x269] sm:$0xff] }
 0x1d0   : > { %10467 = vmatmul.mubr.msk.f32.gmra.mrb[34].mxu0 %vm379_vm0, %v12628_v30  ;;  %9951 = vmatprep.mubr.msk.f32.mxu1 %vm379_vm0, %v2711_v9  ;;  %v2727_v9 = vld [vmem:[#allocation2 + $0xc8] sm:$0xff] }
 0x1d1   : > { %10469 = vmatprep.mubr.msk.f32.mxu0 %vm379_vm0, %v12630_v15 }
 0x1d3   : > { %9952 = vmatmul.mubr.msk.f32.vlgmr.msra.gmra.mrb[0].mxu1 %vm379_vm0, %v2712_v57  ;;  %v2728_v57 = vld [vmem:[#allocation2 + $0xd0] sm:$0xff] }
 0x1d4   : > { %10470 = vmatmul.mubr.msk.f32.gmra.mrb[36].mxu0 %vm379_vm0, %v12639_v42  ;;  %10713 = vmatpush3.bf16.msra.mxu1 %v11356_v7  ;;  %v2716_v7 = vld [vmem:[#allocation2 + $0x50] sm:$0xff] }
 0x1d5   : > { %9954 = vmatprep.mubr.msk.f32.mxu1 %vm379_vm0, %v2713_v44  ;;  %10472 = vmatprep.mubr.msk.f32.mxu0 %vm379_vm0, %v12641_v8  ;;  %v12722_v44 = vld [vmem:[#allocation2 + $0x271] sm:$0xff] }
 0x1d6   : > { %10712 = vmatprep.subr.bf16.mxu1 %v13415_v26 }
 0x1d7   : > { %9955 = vmatmul.mubr.msk.f32.gmra.mrb[2].mxu1 %vm379_vm0, %v2714_v17  ;;  %v2729_v17 = vld [vmem:[#allocation2 + $0xe0] sm:$0xff] }
 0x1d8   : > { %10473 = vmatmul.mubr.msk.f32.gmra.mrb[38].mxu0 %vm379_vm0, %v12648_v48  ;;  %9957 = vmatprep.mubr.msk.f32.mxu1 %vm379_vm0, %v2715_v60  ;;  %v12724_v60 = vld [vmem:[#allocation2 + $0x281] sm:$0xff] }
 0x1d9   : > { %10475 = vmatprep.mubr.msk.f32.mxu0 %vm379_vm0, %v12652_v50  ;;  %10714 = vmatpush3.bf16.msra.mxu1 %v13415_v26  ;;  %v2730_v26 = vld [vmem:[#allocation2 + $0xe8] sm:$0xff] }
 0x1db   : > { %9958 = vmatmul.mubr.msk.f32.gmra.mrb[4].mxu1 %vm379_vm0, %v2716_v7  ;;  %v12732_v7 = vld [vmem:[#allocation2 + $0x289] sm:$0xff] }
 0x1dc   : > { %10476 = vmatmul.mubr.msk.f32.gmra.mrb[40].mxu0 %vm379_vm0, %v12661_v52  ;;  %9960 = vmatprep.mubr.msk.f32.mxu1 %vm379_vm0, %v2717_v54  ;;  %v2731_v54 = vld [vmem:[#allocation2 + $0xf0] sm:$0xff] }
 0x1dd   : > { %10478 = vmatprep.mubr.msk.f32.mxu0 %vm379_vm0, %v12663_v55 }
 0x1df   : > { %9961 = vmatmul.mubr.msk.f32.gmra.mrb[6].mxu1 %vm379_vm0, %v2718_v21  ;;  %v12734_v21 = vld [vmem:[#allocation2 + $0x291] sm:$0xff] }
 0x1e0   : > { %10479 = vmatmul.mubr.msk.f32.gmra.mrb[42].mxu0 %vm379_vm0, %v12672_v28  ;;  %9963 = vmatprep.mubr.msk.f32.mxu1 %vm379_vm0, %v2719_v58  ;;  %v2732_v58 = vld [vmem:[#allocation2 + $0x100] sm:$0xff] }
 0x1e1   : > { %10481 = vmatprep.mubr.msk.f32.mxu0 %vm379_vm0, %v12674_v46 }
 0x1e3   : > { %9964 = vmatmul.mubr.msk.f32.gmra.mrb[8].mxu1 %vm379_vm0, %v2720_v19  ;;  %v12742_v19 = vld [vmem:[#allocation2 + $0x2a1] sm:$0xff] }
 0x1e4   : > { %10482 = vmatmul.mubr.msk.f32.gmra.mrb[44].mxu0 %vm379_vm0, %v12682_v49  ;;  %9966 = vmatprep.mubr.msk.f32.mxu1 %vm379_vm0, %v2721_v61  ;;  %v2733_v61 = vld [vmem:[#allocation2 + $0x108] sm:$0xff] }
 0x1e5   : > { %10484 = vmatprep.mubr.msk.f32.mxu0 %vm379_vm0, %v12684_v25 }
 0x1e7   : > { %9967 = vmatmul.mubr.msk.f32.gmra.mrb[10].mxu1 %vm379_vm0, %v2722_v63  ;;  %v12744_v63 = vld [vmem:[#allocation2 + $0x2a9] sm:$0xff] }
 0x1e8   : > { %10485 = vmatmul.mubr.msk.f32.gmra.mrb[46].mxu0 %vm379_vm0, %v12692_v36  ;;  %9969 = vmatprep.mubr.msk.f32.mxu1 %vm379_vm0, %v2723_v3  ;;  %v2734_v3 = vld [vmem:[#allocation2 + $0x110] sm:$0xff] }
 0x1e9   : > { %10487 = vmatprep.mubr.msk.f32.mxu0 %vm379_vm0, %v12694_v6 }
 0x1eb   : > { %9970 = vmatmul.mubr.msk.f32.gmra.mrb[12].mxu1 %vm379_vm0, %v2724_v10  ;;  %v12752_v10 = vld [vmem:[#allocation2 + $0x2b1] sm:$0xff] }
 0x1ec   : > { %10488 = vmatmul.mubr.msk.f32.gmra.mrb[48].mxu0 %vm379_vm0, %v12702_v13  ;;  %9972 = vmatprep.mubr.msk.f32.mxu1 %vm379_vm0, %v2725_v14  ;;  %v2735_v14 = vld [vmem:[#allocation2 + $0x120] sm:$0xff] }
 0x1ed   : > { %10490 = vmatprep.mubr.msk.f32.mxu0 %vm379_vm0, %v12704_v16 }
 0x1ef   : > { %9973 = vmatmul.mubr.msk.f32.gmra.mrb[14].mxu1 %vm379_vm0, %v2726_v40  ;;  %v12754_v40 = vld [vmem:[#allocation2 + $0x2c1] sm:$0xff] }
 0x1f0   : > { %10491 = vmatmul.mubr.msk.f32.gmra.mrb[50].mxu0 %vm379_vm0, %v12712_v24  ;;  %9975 = vmatprep.mubr.msk.f32.mxu1 %vm379_vm0, %v2727_v9  ;;  %v2736_v9 = vld [vmem:[#allocation2 + $0x128] sm:$0xff] }
 0x1f1   : > { %10493 = vmatprep.mubr.msk.f32.mxu0 %vm379_vm0, %v12714_v34 }
 0x1f3   : > { %9976 = vmatmul.mubr.msk.f32.gmra.mrb[16].mxu1 %vm379_vm0, %v2728_v57  ;;  %v12762_v57 = vld [vmem:[#allocation2 + $0x2c9] sm:$0xff] }
 0x1f4   : > { %10494 = vmatmul.mubr.msk.f32.gmra.mrb[52].mxu0 %vm379_vm0, %v12722_v44  ;;  %9978 = vmatprep.mubr.msk.f32.mxu1 %vm379_vm0, %v2729_v17  ;;  %13416 = vst [vmem:[#allocation5_spill] sm:$0xff] %v12762_v57  ;;  %v2737_v17 = vld [vmem:[#allocation2 + $0x130] sm:$0xff] }
 0x1f5   : > { %10496 = vmatprep.mubr.msk.f32.mxu0 %vm379_vm0, %v12724_v60 }
 0x1f7   : > { %9979 = vmatmul.mubr.msk.f32.gmra.mrb[18].mxu1 %vm379_vm0, %v2730_v26  ;;  %v12764_v26 = vld [vmem:[#allocation2 + $0x2d1] sm:$0xff] }
 0x1f8   : > { %10497 = vmatmul.mubr.msk.f32.gmra.mrb[54].mxu0 %vm379_vm0, %v12732_v7  ;;  %9981 = vmatprep.mubr.msk.f32.mxu1 %vm379_vm0, %v2731_v54  ;;  %13417 = vst [vmem:[#allocation6_spill] sm:$0xff] %v12764_v26  ;;  %v2738_v54 = vld [vmem:[#allocation2 + $0x140] sm:$0xff] }
 0x1f9   : > { %10499 = vmatprep.mubr.msk.f32.mxu0 %vm379_vm0, %v12734_v21 }
 0x1fb   : > { %9982 = vmatmul.mubr.msk.f32.gmra.mrb[20].mxu1 %vm379_vm0, %v2732_v58  ;;  %v12772_v58 = vld [vmem:[#allocation2 + $0x2e1] sm:$0xff] }
 0x1fc   : > { %10500 = vmatmul.mubr.msk.f32.gmra.mrb[56].mxu0 %vm379_vm0, %v12742_v19  ;;  %9984 = vmatprep.mubr.msk.f32.mxu1 %vm379_vm0, %v2733_v61  ;;  %13418 = vst [vmem:[#allocation7_spill] sm:$0xff] %v12772_v58  ;;  %v2739_v61 = vld [vmem:[#allocation2 + $0x148] sm:$0xff] }
 0x1fd   : > { %10502 = vmatprep.mubr.msk.f32.mxu0 %vm379_vm0, %v12744_v63 }
 0x1ff   : > { %9985 = vmatmul.mubr.msk.f32.gmra.mrb[22].mxu1 %vm379_vm0, %v2734_v3  ;;  %v12774_v3 = vld [vmem:[#allocation2 + $0x2e9] sm:$0xff] }
 0x200   : > { %10503 = vmatmul.mubr.msk.f32.gmra.mrb[58].mxu0 %vm379_vm0, %v12752_v10  ;;  %9987 = vmatprep.mubr.msk.f32.mxu1 %vm379_vm0, %v2735_v14  ;;  %13419 = vst [vmem:[#allocation8_spill] sm:$0xff] %v12774_v3  ;;  %v2740_v14 = vld [vmem:[#allocation2 + $0x150] sm:$0xff] }
 0x201   : > { %10505 = vmatprep.mubr.msk.f32.mxu0 %vm379_vm0, %v12754_v40 }
 0x203   : > { %9988 = vmatmul.mubr.msk.f32.gmra.mrb[24].mxu1 %vm379_vm0, %v2736_v9  ;;  %v12782_v9 = vld [vmem:[#allocation2 + $0x2f1] sm:$0xff] }
 0x204   : > { %10506 = vmatmul.mubr.msk.f32.gmra.mrb[60].mxu0 %vm379_vm0, %v12762_v57  ;;  %9990 = vmatprep.mubr.msk.f32.mxu1 %vm379_vm0, %v2737_v17  ;;  %13420 = vst [vmem:[#allocation9_spill] sm:$0xff] %v12782_v9  ;;  %v2741_v17 = vld [vmem:[#allocation2 + $0x160] sm:$0xff]  ;;  %v5943_v57 = vld [vmem:[#allocation2 + $0x331] sm:$0xff] }
 0x205   : > { %10508 = vmatprep.mubr.msk.f32.mxu0 %vm379_vm0, %v12764_v26  ;;  %v12784_v26 = vld [vmem:[#allocation2 + $0x301] sm:$0xff] }
 0x206   : > { %13421 = vst [vmem:[#allocation10_spill] sm:$0xff] %v12784_v26 }
 0x207   : > { %9991 = vmatmul.mubr.msk.f32.gmra.mrb[26].mxu1 %vm379_vm0, %v2738_v54  ;;  %v2742_v54 = vld [vmem:[#allocation2 + $0x168] sm:$0xff] }
 0x208   : > { %10509 = vmatmul.mubr.msk.f32.gmra.mrb[62].mxu0 %vm379_vm0, %v12772_v58  ;;  %9993 = vmatprep.mubr.msk.f32.mxu1 %vm379_vm0, %v2739_v61  ;;  %v12792_v61 = vld [vmem:[#allocation2 + $0x309] sm:$0xff]  ;;  %v12794_v58 = vld [vmem:[#allocation2 + $0x311] sm:$0xff] }
 0x209   : > { %10511 = vmatprep.mubr.msk.f32.mxu0 %vm379_vm0, %v12774_v3  ;;  %13422 = vst [vmem:[#allocation11_spill] sm:$0xff] %v12792_v61  ;;  %v2743_v3 = vld [vmem:[#allocation2 + $0x170] sm:$0xff] }
 0x20b   : > { %9994 = vmatmul.mubr.msk.f32.gmra.mrb[28].mxu1 %vm379_vm0, %v2740_v14  ;;  %v2744_v14 = vld [vmem:[#allocation2 + $0x180] sm:$0xff] }
 0x20c   : > { %10512 = vmatmul.mubr.msk.f32.gmra.mrb[64].mxu0 %vm379_vm0, %v12782_v9  ;;  %9996 = vmatprep.mubr.msk.f32.mxu1 %vm379_vm0, %v2741_v17  ;;  %v5941_v17 = vld [vmem:[#allocation2 + $0x321] sm:$0xff] }
 0x20d   : > { %10514 = vmatprep.mubr.msk.f32.mxu0 %vm379_vm0, %v12784_v26  ;;  %v2745_v9 = vld [vmem:[#allocation2 + $0x188] sm:$0xff] }
 0x20e   : > { %v5942_v26 = vld [vmem:[#allocation2 + $0x329] sm:$0xff] }
 0x20f   : > { %9997 = vmatmul.mubr.msk.f32.gmra.mrb[30].mxu1 %vm379_vm0, %v2742_v54  ;;  %v2746_v54 = vld [vmem:[#allocation2 + $0x190] sm:$0xff] }
 0x210   : > { %10515 = vmatmul.mubr.msk.f32.gmra.mrb[66].mxu0 %vm379_vm0, %v12792_v61  ;;  %9999 = vmatprep.mubr.msk.f32.mxu1 %vm379_vm0, %v2743_v3  ;;  %v2747_v61 = vld [vmem:[#allocation2 + $0x1a0] sm:$0xff]  ;;  %v2748_v3 = vld [vmem:[#allocation2 + $0x1a8] sm:$0xff] }
 0x211   : > { %10517 = vmatprep.mubr.msk.f32.mxu0 %vm379_vm0, %v12794_v58 }
 0x213   : > { %10000 = vmatmul.mubr.msk.f32.gmra.mrb[32].mxu1 %vm379_vm0, %v2744_v14  ;;  %v2749_v14 = vld [vmem:[#allocation2 + $0x1b0] sm:$0xff] }
 0x214   : > { %10518 = vmatmul.mubr.msk.f32.gmra.mrb[68].mxu0 %vm379_vm0, %v5941_v17  ;;  %10002 = vmatprep.mubr.msk.f32.mxu1 %vm379_vm0, %v2745_v9  ;;  %v2751_v9 = vld [vmem:[#allocation2 + $0x1c8] sm:$0xff]  ;;  %v6688_v17 = vld [vmem:[#allocation2 + $0x152] sm:$0xff] }
 0x215   : > { %10520 = vmatprep.mubr.msk.f32.mxu0 %vm379_vm0, %v5942_v26  ;;  %v2750_v26 = vld [vmem:[#allocation2 + $0x1c0] sm:$0xff] }
 0x217   : > { %10003 = vmatmul.mubr.msk.f32.gmra.mrb[34].mxu1 %vm379_vm0, %v2746_v54  ;;  %v6689_v54 = vld [vmem:[#allocation2 + $0x162] sm:$0xff] }
 0x218   : > { %10521 = vmatmul.mubr.msk.f32.gmra.mrb[70].mxu0 %vm379_vm0, %v5943_v57  ;;  %10005 = vmatprep.mubr.msk.f32.mxu1 %vm379_vm0, %v2747_v61  ;;  %v2753_v57 = vld [vmem:[#allocation2 + $0x1e0] sm:$0xff]  ;;  %v6687_v61 = vld [vmem:[#allocation2 + $0x14a] sm:$0xff] }
 0x219   : > { %10531 = vmatprep.mubr.msk.f32.mxu0 %vm379_vm0, %v12333_v31  ;;  %v2752_v31 = vld [vmem:[#allocation2 + $0x1d0] sm:$0xff] }
 0x21b   : > { %10006 = vmatmul.mubr.msk.f32.gmra.mrb[36].mxu1 %vm379_vm0, %v2748_v3  ;;  %v2775_v3 = vld [vmem:[#allocation2 + $0x2c8] sm:$0xff] }
 0x21c   : > { %10532 = vmatmul.mubr.msk.f32.vlgmr.msra.gmra.mrb[0].mxu0 %vm379_vm0, %v12343_v53  ;;  %10008 = vmatprep.mubr.msk.f32.mxu1 %vm379_vm0, %v2749_v14  ;;  %v2754_v53 = vld [vmem:[#allocation2 + $0x1e8] sm:$0xff]  ;;  %v2776_v14 = vld [vmem:[#allocation2 + $0x2d0] sm:$0xff] }
 0x21d   : > { %10534 = vmatprep.mubr.msk.f32.mxu0 %vm379_vm0, %v12345_v20  ;;  %v2755_v20 = vld [vmem:[#allocation2 + $0x1f0] sm:$0xff] }
 0x21f   : > { %10009 = vmatmul.mubr.msk.f32.gmra.mrb[38].mxu1 %vm379_vm0, %v2750_v26  ;;  %v6691_v26 = vld [vmem:[#allocation2 + $0x172] sm:$0xff] }
 0x220   : > { %10535 = vmatmul.mubr.msk.f32.gmra.mrb[2].mxu0 %vm379_vm0, %v12355_v23  ;;  %10011 = vmatprep.mubr.msk.f32.mxu1 %vm379_vm0, %v2751_v9  ;;  %v2756_v23 = vld [vmem:[#allocation2 + $0x200] sm:$0xff] }
 0x221   : > { %10537 = vmatprep.mubr.msk.f32.mxu0 %vm379_vm0, %v12357_v29  ;;  %v2757_v29 = vld [vmem:[#allocation2 + $0x208] sm:$0xff]  ;;  %v2777_v9 = vld [vmem:[#allocation2 + $0x2e0] sm:$0xff] }
 0x223   : > { %10012 = vmatmul.mubr.msk.f32.gmra.mrb[40].mxu1 %vm379_vm0, %v2752_v31  ;;  %v6692_v31 = vld [vmem:[#allocation2 + $0x182] sm:$0xff] }
 0x224   : > { %10538 = vmatmul.mubr.msk.f32.gmra.mrb[4].mxu0 %vm379_vm0, %v12367_v33  ;;  %10014 = vmatprep.mubr.msk.f32.mxu1 %vm379_vm0, %v2753_v57  ;;  %v2758_v33 = vld [vmem:[#allocation2 + $0x210] sm:$0xff]  ;;  %v2778_v57 = vld [vmem:[#allocation2 + $0x2e8] sm:$0xff] }
 0x225   : > { %10540 = vmatprep.mubr.msk.f32.mxu0 %vm379_vm0, %v12369_v35  ;;  %v2759_v35 = vld [vmem:[#allocation2 + $0x220] sm:$0xff] }
 0x227   : > { %10015 = vmatmul.mubr.msk.f32.gmra.mrb[42].mxu1 %vm379_vm0, %v2754_v53  ;;  %v6693_v53 = vld [vmem:[#allocation2 + $0x18a] sm:$0xff] }
 0x228   : > { %10541 = vmatmul.mubr.msk.f32.gmra.mrb[6].mxu0 %vm379_vm0, %v12379_v37  ;;  %10017 = vmatprep.mubr.msk.f32.mxu1 %vm379_vm0, %v2755_v20  ;;  %v2760_v37 = vld [vmem:[#allocation2 + $0x228] sm:$0xff]  ;;  %v2779_v20 = vld [vmem:[#allocation2 + $0x2f0] sm:$0xff] }
 0x229   : > { %10543 = vmatprep.mubr.msk.f32.mxu0 %vm379_vm0, %v12381_v38  ;;  %v2761_v38 = vld [vmem:[#allocation2 + $0x230] sm:$0xff] }
 0x22b   : > { %10018 = vmatmul.mubr.msk.f32.gmra.mrb[44].mxu1 %vm379_vm0, %v2756_v23  ;;  %v6694_v23 = vld [vmem:[#allocation2 + $0x192] sm:$0xff] }
 0x22c   : > { %10544 = vmatmul.mubr.msk.f32.gmra.mrb[8].mxu0 %vm379_vm0, %v12391_v39  ;;  %10020 = vmatprep.mubr.msk.f32.mxu1 %vm379_vm0, %v2757_v29  ;;  %v2762_v39 = vld [vmem:[#allocation2 + $0x240] sm:$0xff] }
 0x22d   : > { %10546 = vmatprep.mubr.msk.f32.mxu0 %vm379_vm0, %v12393_v41  ;;  %v2763_v41 = vld [vmem:[#allocation2 + $0x248] sm:$0xff] }
 0x22e   : > { %v6695_v29 = vld [vmem:[#allocation2 + $0x1a2] sm:$0xff] }
 0x22f   : > { %10021 = vmatmul.mubr.msk.f32.gmra.mrb[46].mxu1 %vm379_vm0, %v2758_v33  ;;  %v6696_v33 = vld [vmem:[#allocation2 + $0x1aa] sm:$0xff] }
 0x230   : > { %10547 = vmatmul.mubr.msk.f32.gmra.mrb[10].mxu0 %vm379_vm0, %v12403_v43  ;;  %10023 = vmatprep.mubr.msk.f32.mxu1 %vm379_vm0, %v2759_v35  ;;  %v2764_v43 = vld [vmem:[#allocation2 + $0x250] sm:$0xff] }
 0x231   : > { %10549 = vmatprep.mubr.msk.f32.mxu0 %vm379_vm0, %v12405_v45  ;;  %v2765_v45 = vld [vmem:[#allocation2 + $0x260] sm:$0xff]  ;;  %v6697_v35 = vld [vmem:[#allocation2 + $0x1b2] sm:$0xff] }
 0x233   : > { %10024 = vmatmul.mubr.msk.f32.gmra.mrb[48].mxu1 %vm379_vm0, %v2760_v37  ;;  %v6698_v37 = vld [vmem:[#allocation2 + $0x1c2] sm:$0xff] }
 0x234   : > { %10550 = vmatmul.mubr.msk.f32.gmra.mrb[12].mxu0 %vm379_vm0, %v12415_v47  ;;  %10026 = vmatprep.mubr.msk.f32.mxu1 %vm379_vm0, %v2761_v38  ;;  %v2766_v47 = vld [vmem:[#allocation2 + $0x268] sm:$0xff]  ;;  %v6700_v38 = vld [vmem:[#allocation2 + $0x1d2] sm:$0xff] }
 0x235   : > { %10552 = vmatprep.mubr.msk.f32.mxu0 %vm379_vm0, %v12417_v51  ;;  %v2767_v51 = vld [vmem:[#allocation2 + $0x270] sm:$0xff] }
 0x237   : > { %10027 = vmatmul.mubr.msk.f32.gmra.mrb[50].mxu1 %vm379_vm0, %v2762_v39  ;;  %v6728_v39 = vld [vmem:[#allocation2 + $0x302] sm:$0xff] }
 0x238   : > { %10553 = vmatmul.mubr.msk.f32.gmra.mrb[14].mxu0 %vm379_vm0, %v12427_v56  ;;  %10029 = vmatprep.mubr.msk.f32.mxu1 %vm379_vm0, %v2763_v41  ;;  %v2768_v56 = vld [vmem:[#allocation2 + $0x280] sm:$0xff]  ;;  %v13424_v41 = vld [vmem:[#allocation6_spill] sm:$0xff] }
 0x239   : > { %10555 = vmatprep.mubr.msk.f32.mxu0 %vm379_vm0, %v12429_v59  ;;  %v2769_v59 = vld [vmem:[#allocation2 + $0x288] sm:$0xff] }
 0x23b   : > { %10030 = vmatmul.mubr.msk.f32.gmra.mrb[52].mxu1 %vm379_vm0, %v2764_v43  ;;  %v6730_v43 = vld [vmem:[#allocation2 + $0x312] sm:$0xff] }
 0x23c   : > { %10556 = vmatmul.mubr.msk.f32.gmra.mrb[16].mxu0 %vm379_vm0, %v12439_v62  ;;  %10032 = vmatprep.mubr.msk.f32.mxu1 %vm379_vm0, %v2765_v45  ;;  %v2770_v62 = vld [vmem:[#allocation2 + $0x290] sm:$0xff]  ;;  %v13426_v45 = vld [vmem:[#allocation8_spill] sm:$0xff] }
 0x23d   : > { %10558 = vmatprep.mubr.msk.f32.mxu0 %vm379_vm0, %v12441_v0  ;;  %v2771_v0 = vld [vmem:[#allocation2 + $0x2a0] sm:$0xff] }
 0x23f   : > { %10033 = vmatmul.mubr.msk.f32.gmra.mrb[54].mxu1 %vm379_vm0, %v2766_v47  ;;  %v13427_v47 = vld [vmem:[#allocation9_spill] sm:$0xff] }
 0x240   : > { %10559 = vmatmul.mubr.msk.f32.gmra.mrb[18].mxu0 %vm379_vm0, %v12451_v2  ;;  %10035 = vmatprep.mubr.msk.f32.mxu1 %vm379_vm0, %v2767_v51  ;;  %v6686_v2 = vld [vmem:[#allocation2 + $0x142] sm:$0xff] }
 0x241   : > { %10561 = vmatprep.mubr.msk.f32.mxu0 %vm379_vm0, %v12453_v5  ;;  %v2772_v5 = vld [vmem:[#allocation2 + $0x2a8] sm:$0xff] }
 0x242   : > { %v6731_v51 = vld [vmem:[#allocation2 + $0x322] sm:$0xff] }
 0x243   : > { %10036 = vmatmul.mubr.msk.f32.gmra.mrb[56].mxu1 %vm379_vm0, %v2768_v56  ;;  %v6732_v56 = vld [vmem:[#allocation2 + $0x32a] sm:$0xff] }
 0x244   : > { %10562 = vmatmul.mubr.msk.f32.gmra.mrb[20].mxu0 %vm379_vm0, %v12463_v11  ;;  %10038 = vmatprep.mubr.msk.f32.mxu1 %vm379_vm0, %v2769_v59  ;;  %v2773_v11 = vld [vmem:[#allocation2 + $0x2b0] sm:$0xff] }
 0x245   : > { %10564 = vmatprep.mubr.msk.f32.mxu0 %vm379_vm0, %v12465_v27  ;;  %v2774_v27 = vld [vmem:[#allocation2 + $0x2c0] sm:$0xff]  ;;  %v13428_v59 = vld [vmem:[#allocation10_spill] sm:$0xff] }
 0x247   : > { %10039 = vmatmul.mubr.msk.f32.gmra.mrb[58].mxu1 %vm379_vm0, %v2770_v62  ;;  %v13429_v62 = vld [vmem:[#allocation11_spill] sm:$0xff] }
 0x248   : > { %10565 = vmatmul.mubr.msk.f32.gmra.mrb[22].mxu0 %vm379_vm0, %v12475_v12  ;;  %10041 = vmatprep.mubr.msk.f32.mxu1 %vm379_vm0, %v2771_v0  ;;  %v6690_v12 = vld [vmem:[#allocation2 + $0x16a] sm:$0xff]  ;;  %v6733_v0 = vld [vmem:[#allocation2 + $0x332] sm:$0xff] }
 0x249   : > { %10567 = vmatprep.mubr.msk.f32.mxu0 %vm379_vm0, %v6686_v2 }
 0x24b   : > { %10042 = vmatmul.mubr.msk.f32.gmra.mrb[60].mxu1 %vm379_vm0, %v2772_v5 }
 0x24c   : > { %10568 = vmatmul.mubr.msk.f32.gmra.mrb[24].mxu0 %vm379_vm0, %v6687_v61  ;;  %10044 = vmatprep.mubr.msk.f32.mxu1 %vm379_vm0, %v2773_v11 }
 0x24d   : > { %10570 = vmatprep.mubr.msk.f32.mxu0 %vm379_vm0, %v6688_v17 }
 0x24f   : > { %10045 = vmatmul.mubr.msk.f32.gmra.mrb[62].mxu1 %vm379_vm0, %v2774_v27 }
 0x250   : > { %10571 = vmatmul.mubr.msk.f32.gmra.mrb[26].mxu0 %vm379_vm0, %v6689_v54  ;;  %10047 = vmatprep.mubr.msk.f32.mxu1 %vm379_vm0, %v2775_v3 }
 0x251   : > { %10573 = vmatprep.mubr.msk.f32.mxu0 %vm379_vm0, %v6690_v12 }
 0x253   : > { %10048 = vmatmul.mubr.msk.f32.gmra.mrb[64].mxu1 %vm379_vm0, %v2776_v14 }
 0x254   : > { %10574 = vmatmul.mubr.msk.f32.gmra.mrb[28].mxu0 %vm379_vm0, %v6691_v26  ;;  %10050 = vmatprep.mubr.msk.f32.mxu1 %vm379_vm0, %v2777_v9 }
 0x255   : > { %10576 = vmatprep.mubr.msk.f32.mxu0 %vm379_vm0, %v6692_v31 }
 0x257   : > { %10051 = vmatmul.mubr.msk.f32.gmra.mrb[66].mxu1 %vm379_vm0, %v2778_v57 }
 0x258   : > { %10577 = vmatmul.mubr.msk.f32.gmra.mrb[30].mxu0 %vm379_vm0, %v6693_v53  ;;  %10053 = vmatprep.mubr.msk.f32.mxu1 %vm379_vm0, %v2779_v20 }
 0x259   : > { %10579 = vmatprep.mubr.msk.f32.mxu0 %vm379_vm0, %v6694_v23 }
 0x25b   : > { %10054 = vmatmul.mubr.msk.f32.gmra.mrb[68].mxu1 %vm379_vm0, %v12477_v32  ;;  %v6699_v32 = vld [vmem:[#allocation2 + $0x1ca] sm:$0xff] }
 0x25c   : > { %10580 = vmatmul.mubr.msk.f32.gmra.mrb[32].mxu0 %vm379_vm0, %v6695_v29  ;;  %10056 = vmatprep.mubr.msk.f32.mxu1 %vm379_vm0, %v12487_v1  ;;  %v6701_v1 = vld [vmem:[#allocation2 + $0x1e2] sm:$0xff] }
 0x25d   : > { %10582 = vmatprep.mubr.msk.f32.mxu0 %vm379_vm0, %v6696_v33 }
 0x25f   : > { %10057 = vmatmul.mubr.msk.f32.gmra.mrb[70].mxu1 %vm379_vm0, %v12489_v4  ;;  %v6702_v4 = vld [vmem:[#allocation2 + $0x1ea] sm:$0xff] }
 0x260   : > { %10583 = vmatmul.mubr.msk.f32.gmra.mrb[34].mxu0 %vm379_vm0, %v6697_v35  ;;  %10121 = vmatprep.mubr.msk.f32.mxu1 %vm379_vm0, %v12616_v18  ;;  %v6703_v18 = vld [vmem:[#allocation2 + $0x1f2] sm:$0xff] }
 0x261   : > { %10585 = vmatprep.mubr.msk.f32.mxu0 %vm379_vm0, %v6698_v37 }
 0x263   : > { %10122 = vmatmul.mubr.msk.f32.vlgmr.msra.gmra.mrb[36].mxu1 %vm379_vm0, %v12618_v22  ;;  %v6704_v22 = vld [vmem:[#allocation2 + $0x202] sm:$0xff] }
 0x264   : > { %10586 = vmatmul.mubr.msk.f32.gmra.mrb[36].mxu0 %vm379_vm0, %v6699_v32  ;;  %10124 = vmatprep.mubr.msk.f32.mxu1 %vm379_vm0, %v12628_v30  ;;  %v6705_v30 = vld [vmem:[#allocation2 + $0x20a] sm:$0xff] }
 0x265   : > { %10588 = vmatprep.mubr.msk.f32.mxu0 %vm379_vm0, %v6700_v38 }
 0x267   : > { %10125 = vmatmul.mubr.msk.f32.gmra.mrb[38].mxu1 %vm379_vm0, %v12630_v15  ;;  %v6706_v15 = vld [vmem:[#allocation2 + $0x212] sm:$0xff] }
 0x268   : > { %10589 = vmatmul.mubr.msk.f32.gmra.mrb[38].mxu0 %vm379_vm0, %v6701_v1  ;;  %10127 = vmatprep.mubr.msk.f32.mxu1 %vm379_vm0, %v12639_v42  ;;  %v6707_v42 = vld [vmem:[#allocation2 + $0x222] sm:$0xff] }
 0x269   : > { %10591 = vmatprep.mubr.msk.f32.mxu0 %vm379_vm0, %v6702_v4 }
 0x26b   : > { %10128 = vmatmul.mubr.msk.f32.gmra.mrb[40].mxu1 %vm379_vm0, %v12641_v8  ;;  %v6708_v8 = vld [vmem:[#allocation2 + $0x22a] sm:$0xff] }
 0x26c   : > { %10592 = vmatmul.mubr.msk.f32.gmra.mrb[40].mxu0 %vm379_vm0, %v6703_v18  ;;  %10130 = vmatprep.mubr.msk.f32.mxu1 %vm379_vm0, %v12648_v48  ;;  %v6709_v48 = vld [vmem:[#allocation2 + $0x232] sm:$0xff] }
 0x26d   : > { %10594 = vmatprep.mubr.msk.f32.mxu0 %vm379_vm0, %v6704_v22 }
 0x26f   : > { %10131 = vmatmul.mubr.msk.f32.gmra.mrb[42].mxu1 %vm379_vm0, %v12652_v50  ;;  %v6710_v50 = vld [vmem:[#allocation2 + $0x242] sm:$0xff] }
 0x270   : > { %10595 = vmatmul.mubr.msk.f32.gmra.mrb[42].mxu0 %vm379_vm0, %v6705_v30  ;;  %10133 = vmatprep.mubr.msk.f32.mxu1 %vm379_vm0, %v12661_v52  ;;  %v6711_v52 = vld [vmem:[#allocation2 + $0x24a] sm:$0xff] }
 0x271   : > { %10597 = vmatprep.mubr.msk.f32.mxu0 %vm379_vm0, %v6706_v15 }
 0x273   : > { %10134 = vmatmul.mubr.msk.f32.gmra.mrb[44].mxu1 %vm379_vm0, %v12663_v55  ;;  %v6712_v55 = vld [vmem:[#allocation2 + $0x252] sm:$0xff] }
 0x274   : > { %10598 = vmatmul.mubr.msk.f32.gmra.mrb[44].mxu0 %vm379_vm0, %v6707_v42  ;;  %10136 = vmatprep.mubr.msk.f32.mxu1 %vm379_vm0, %v12672_v28  ;;  %v6713_v28 = vld [vmem:[#allocation2 + $0x262] sm:$0xff] }
 0x275   : > { %10600 = vmatprep.mubr.msk.f32.mxu0 %vm379_vm0, %v6708_v8 }
 0x277   : > { %10137 = vmatmul.mubr.msk.f32.gmra.mrb[46].mxu1 %vm379_vm0, %v12674_v46  ;;  %v6714_v46 = vld [vmem:[#allocation2 + $0x26a] sm:$0xff] }
 0x278   : > { %10601 = vmatmul.mubr.msk.f32.gmra.mrb[46].mxu0 %vm379_vm0, %v6709_v48  ;;  %10139 = vmatprep.mubr.msk.f32.mxu1 %vm379_vm0, %v12682_v49  ;;  %v6715_v49 = vld [vmem:[#allocation2 + $0x272] sm:$0xff] }
 0x279   : > { %10603 = vmatprep.mubr.msk.f32.mxu0 %vm379_vm0, %v6710_v50 }
 0x27b   : > { %10140 = vmatmul.mubr.msk.f32.gmra.mrb[48].mxu1 %vm379_vm0, %v12684_v25  ;;  %v6716_v25 = vld [vmem:[#allocation2 + $0x282] sm:$0xff] }
 0x27c   : > { %10604 = vmatmul.mubr.msk.f32.gmra.mrb[48].mxu0 %vm379_vm0, %v6711_v52  ;;  %10142 = vmatprep.mubr.msk.f32.mxu1 %vm379_vm0, %v12692_v36  ;;  %v6717_v36 = vld [vmem:[#allocation2 + $0x28a] sm:$0xff] }
 0x27d   : > { %10606 = vmatprep.mubr.msk.f32.mxu0 %vm379_vm0, %v6712_v55 }
 0x27f   : > { %10143 = vmatmul.mubr.msk.f32.gmra.mrb[50].mxu1 %vm379_vm0, %v12694_v6  ;;  %v6718_v6 = vld [vmem:[#allocation2 + $0x292] sm:$0xff] }
 0x280   : > { %10607 = vmatmul.mubr.msk.f32.gmra.mrb[50].mxu0 %vm379_vm0, %v6713_v28  ;;  %10145 = vmatprep.mubr.msk.f32.mxu1 %vm379_vm0, %v12702_v13  ;;  %v6719_v13 = vld [vmem:[#allocation2 + $0x2a2] sm:$0xff] }
 0x281   : > { %10609 = vmatprep.mubr.msk.f32.mxu0 %vm379_vm0, %v6714_v46 }
 0x283   : > { %10146 = vmatmul.mubr.msk.f32.gmra.mrb[52].mxu1 %vm379_vm0, %v12704_v16  ;;  %v6720_v16 = vld [vmem:[#allocation2 + $0x2aa] sm:$0xff] }
 0x284   : > { %10610 = vmatmul.mubr.msk.f32.gmra.mrb[52].mxu0 %vm379_vm0, %v6715_v49  ;;  %10148 = vmatprep.mubr.msk.f32.mxu1 %vm379_vm0, %v12712_v24  ;;  %v6721_v24 = vld [vmem:[#allocation2 + $0x2b2] sm:$0xff]  ;;  %v13074_v49 = vld [vmem:[%s13340_s2] ss:$0 sm:$0xff] }
 0x285   : > { %10612 = vmatprep.mubr.msk.f32.mxu0 %vm379_vm0, %v6716_v25 }
 0x287   : > { %10149 = vmatmul.mubr.msk.f32.gmra.mrb[54].mxu1 %vm379_vm0, %v12714_v34  ;;  %v6722_v34 = vld [vmem:[#allocation2 + $0x2c2] sm:$0xff] }
 0x288   : > { %10613 = vmatmul.mubr.msk.f32.gmra.mrb[54].mxu0 %vm379_vm0, %v6717_v36  ;;  %10151 = vmatprep.mubr.msk.f32.mxu1 %vm379_vm0, %v12722_v44  ;;  %v6723_v44 = vld [vmem:[#allocation2 + $0x2ca] sm:$0xff] }
 0x289   : > { %10615 = vmatprep.mubr.msk.f32.mxu0 %vm379_vm0, %v6718_v6 }
 0x28b   : > { %10152 = vmatmul.mubr.msk.f32.gmra.mrb[56].mxu1 %vm379_vm0, %v12724_v60  ;;  %v6724_v60 = vld [vmem:[#allocation2 + $0x2d2] sm:$0xff] }
 0x28c   : > { %10616 = vmatmul.mubr.msk.f32.gmra.mrb[56].mxu0 %vm379_vm0, %v6719_v13  ;;  %10154 = vmatprep.mubr.msk.f32.mxu1 %vm379_vm0, %v12732_v7  ;;  %v6725_v7 = vld [vmem:[#allocation2 + $0x2e2] sm:$0xff] }
 0x28d   : > { %10618 = vmatprep.mubr.msk.f32.mxu0 %vm379_vm0, %v6720_v16 }
 0x28f   : > { %10155 = vmatmul.mubr.msk.f32.gmra.mrb[58].mxu1 %vm379_vm0, %v12734_v21  ;;  %v6726_v21 = vld [vmem:[#allocation2 + $0x2ea] sm:$0xff] }
 0x290   : > { %10619 = vmatmul.mubr.msk.f32.gmra.mrb[58].mxu0 %vm379_vm0, %v6721_v24  ;;  %10157 = vmatprep.mubr.msk.f32.mxu1 %vm379_vm0, %v12742_v19  ;;  %v13423_v19 = vld [vmem:[#allocation5_spill] sm:$0xff] }
 0x291   : > { %10621 = vmatprep.mubr.msk.f32.mxu0 %vm379_vm0, %v6722_v34 }
 0x293   : > { %10158 = vmatmul.mubr.msk.f32.gmra.mrb[60].mxu1 %vm379_vm0, %v12744_v63  ;;  %v6727_v63 = vld [vmem:[#allocation2 + $0x2f2] sm:$0xff] }
 0x294   : > { %10622 = vmatmul.mubr.msk.f32.gmra.mrb[60].mxu0 %vm379_vm0, %v6723_v44  ;;  %10160 = vmatprep.mubr.msk.f32.mxu1 %vm379_vm0, %v12752_v10  ;;  %v13425_v10 = vld [vmem:[#allocation7_spill] sm:$0xff] }
 0x295   : > { %10624 = vmatprep.mubr.msk.f32.mxu0 %vm379_vm0, %v6724_v60 }
 0x297   : > { %10161 = vmatmul.mubr.msk.f32.gmra.mrb[62].mxu1 %vm379_vm0, %v12754_v40  ;;  %v6729_v40 = vld [vmem:[#allocation2 + $0x30a] sm:$0xff] }
 0x298   : > { %10625 = vmatmul.mubr.msk.f32.gmra.mrb[62].mxu0 %vm379_vm0, %v6725_v7  ;;  %10163 = vmatprep.mubr.msk.f32.mxu1 %vm379_vm0, %v13423_v19 }
 0x299   : > { %10627 = vmatprep.mubr.msk.f32.mxu0 %vm379_vm0, %v6726_v21 }
 0x29b   : > { %10164 = vmatmul.mubr.msk.f32.gmra.mrb[64].mxu1 %vm379_vm0, %v13424_v41 }
 0x29c   : > { %10628 = vmatmul.mubr.msk.f32.gmra.mrb[64].mxu0 %vm379_vm0, %v6727_v63  ;;  %10166 = vmatprep.mubr.msk.f32.mxu1 %vm379_vm0, %v13425_v10 }
 0x29d   : > { %10630 = vmatprep.mubr.msk.f32.mxu0 %vm379_vm0, %v6728_v39 }
 0x29f   : > { %10167 = vmatmul.mubr.msk.f32.gmra.mrb[66].mxu1 %vm379_vm0, %v13426_v45 }
 0x2a0   : > { %10631 = vmatmul.mubr.msk.f32.gmra.mrb[66].mxu0 %vm379_vm0, %v6729_v40  ;;  %10169 = vmatprep.mubr.msk.f32.mxu1 %vm379_vm0, %v13427_v47 }
 0x2a1   : > { %10633 = vmatprep.mubr.msk.f32.mxu0 %vm379_vm0, %v6730_v43 }
 0x2a3   : > { %10170 = vmatmul.mubr.msk.f32.gmra.mrb[68].mxu1 %vm379_vm0, %v13428_v59 }
 0x2a4   : > { %10634 = vmatmul.mubr.msk.f32.gmra.mrb[68].mxu0 %vm379_vm0, %v6731_v51  ;;  %10172 = vmatprep.mubr.msk.f32.mxu1 %vm379_vm0, %v13429_v62 }
 0x2a5   : > { %10636 = vmatprep.mubr.msk.f32.mxu0 %vm379_vm0, %v6732_v56 }
 0x2a6   : > { %v9953_v2 = vpop.f32.mrb[0].mxu1 }
 0x2a7   : > { %v3070_v5 = vpop.f32.mrb[1].mxu1  ;;  %10173 = vmatmul.mubr.msk.f32.gmra.mrb[70].mxu1 %vm379_vm0, %v12794_v58 }
 0x2a8   : > { %10637 = vmatmul.mubr.msk.f32.gmra.mrb[70].mxu0 %vm379_vm0, %v6733_v0 }
 0x2aa   : > { %v9956_v61 = vpop.f32.mrb[2].mxu1 }
 0x2ab   : > { %v3080_v11 = vpop.f32.mrb[3].mxu1 }
 0x2ae   : > { %v9959_v17 = vpop.f32.mrb[4].mxu1 }
 0x2af   : > { %v3090_v27 = vpop.f32.mrb[5].mxu1 }
 0x2b2   : > { %v9962_v54 = vpop.f32.mrb[6].mxu1 }
 0x2b3   : > { %v3100_v3 = vpop.f32.mrb[7].mxu1 }
 0x2b6   : > { %v13015_v12 = vpop.f32.mrb[8].mxu1 }
 0x2b7   : > { %v13017_v14 = vpop.f32.mrb[9].mxu1 }
 0x2ba   : > { %v13019_v26 = vpop.f32.mrb[10].mxu1 }
 0x2bb   : > { %v13021_v9 = vpop.f32.mrb[11].mxu1 }
 0x2be   : > { %v13023_v31 = vpop.f32.mrb[12].mxu1 }
 0x2bf   : > { %v13025_v57 = vpop.f32.mrb[13].mxu1 }
 0x2c2   : > { %v13027_v58 = vpop.f32.mrb[14].mxu1 }
 0x2c3   : > { %v13029_v53 = vpop.f32.mrb[15].mxu1 }
 0x2c6   : > { %v13031_v20 = vpop.f32.mrb[16].mxu1 }
 0x2c7   : > { %v13033_v23 = vpop.f32.mrb[17].mxu1 }
 0x2ca   : > { %v13035_v29 = vpop.f32.mrb[18].mxu1 }
 0x2cb   : > { %v13037_v33 = vpop.f32.mrb[19].mxu1 }
 0x2ce   : > { %v13039_v35 = vpop.f32.mrb[20].mxu1 }
 0x2cf   : > { %v13041_v37 = vpop.f32.mrb[21].mxu1 }
 0x2d2   : > { %v13043_v32 = vpop.f32.mrb[22].mxu1 }
 0x2d3   : > { %v13045_v38 = vpop.f32.mrb[23].mxu1 }
 0x2d6   : > { %v13047_v1 = vpop.f32.mrb[24].mxu1 }
 0x2d7   : > { %v13049_v4 = vpop.f32.mrb[25].mxu1 }
 0x2da   : > { %v13051_v18 = vpop.f32.mrb[26].mxu1 }
 0x2db   : > { %v13053_v22 = vpop.f32.mrb[27].mxu1 }
 0x2de   : > { %v13055_v30 = vpop.f32.mrb[28].mxu1 }
 0x2df   : > { %v13057_v15 = vpop.f32.mrb[29].mxu1 }
 0x2e2   : > { %v13059_v42 = vpop.f32.mrb[30].mxu1 }
 0x2e3   : > { %v13061_v8 = vpop.f32.mrb[31].mxu1 }
 0x2e6   : > { %v13063_v48 = vpop.f32.mrb[32].mxu1 }
 0x2e7   : > { %v13065_v50 = vpop.f32.mrb[33].mxu1 }
 0x2ea   : > { %v13067_v52 = vpop.f32.mrb[34].mxu1 }
 0x2eb   : > { %v13069_v55 = vpop.f32.mrb[35].mxu1 }
 0x2ef   : > { %v10533_v28 = vpop.f32.mrb[0].mxu0 }
 0x2f0   : > { %v10715_v46 = vadd.f32 %v10533_v28, %v9953_v2  ;;  %v7021_v25 = vpop.f32.mrb[1].mxu0 }
 0x2f1   : > { %v10716_v36 = vadd.f32 %v7021_v25, %v3070_v5 }
 0x2f2   : > { %v7460_v7 = vadd.f32 %v10715_v46, %v13074_v49 }
 0x2f3   : > { %v7459_v6 = vadd.f32 %v10716_v36, %v13074_v49  ;;  %v10536_v13 = vpop.f32.mrb[2].mxu0 }
 0x2f4   : > { %v10717_v16 = vadd.f32 %v10536_v13, %v9956_v61  ;;  %v7031_v24 = vpop.f32.mrb[3].mxu0  ;;  %v7532_v51 = vmax.f32 %v7460_v7, 0.0 }
 0x2f5   : > { %v10718_v34 = vadd.f32 %v7031_v24, %v3080_v11  ;;  %v7531_v44 = vmax.f32 %v7459_v6, 0.0 }
 0x2f6   : > { %v7462_v60 = vadd.f32 %v10717_v16, %v13074_v49  ;;  %v7607_v28 = vsel %vm7603_vm2, %v7532_v51, -inf }
 0x2f7   : > { %v7461_v21 = vadd.f32 %v10718_v34, %v13074_v49  ;;  %v10539_v19 = vpop.f32.mrb[4].mxu0  ;;  %v7604_v40 = vsel %vm7603_vm2, %v7531_v44, -inf }
 0x2f8   : > { %v7534_v63 = vmax.f32 %v7462_v60, 0.0  ;;  %v10719_v39 = vadd.f32 %v10539_v19, %v9959_v17  ;;  %v7041_v41 = vpop.f32.mrb[5].mxu0 }
 0x2f9   : > { %v10720_v10 = vadd.f32 %v7041_v41, %v3090_v27  ;;  %v7533_v45 = vmax.f32 %v7461_v21, 0.0 }
 0x2fa   : > { %v7605_v43 = vsel %vm7603_vm2, %v7534_v63, -inf  ;;  %v7464_v47 = vadd.f32 %v10719_v39, %v13074_v49 }
 0x2fb   : > { %v7606_v56 = vmax.f32 %v7604_v40, %v7605_v43  ;;  %v7463_v59 = vadd.f32 %v10720_v10, %v13074_v49  ;;  %v10542_v62 = vpop.f32.mrb[6].mxu0  ;;  %v7610_v17 = vsel %vm7603_vm2, %v7533_v45, -inf }
 0x2fc   : > { %v7536_v0 = vmax.f32 %v7464_v47, 0.0  ;;  %v10721_v2 = vadd.f32 %v10542_v62, %v9962_v54  ;;  %v7051_v5 = vpop.f32.mrb[7].mxu0 }
 0x2fd   : > { %7712 = vst.msk [vmem:[#allocation3] sm:$0xff] %vm7603_vm2, %v7606_v56  ;;  %v7535_v61 = vmax.f32 %v7463_v59, 0.0  ;;  %v10722_v11 = vadd.f32 %v7051_v5, %v3100_v3 }
 0x2fe   : > { %v7611_v27 = vsel %vm7603_vm2, %v7536_v0, -inf  ;;  %v7466_v3 = vadd.f32 %v10721_v2, %v13074_v49 }
 0x2ff   : > { %v7612_v46 = vmax.f32 %v7610_v17, %v7611_v27  ;;  %v7608_v25 = vsel %vm7603_vm2, %v7535_v61, -inf  ;;  %v7465_v36 = vadd.f32 %v10722_v11, %v13074_v49  ;;  %v10545_v6 = vpop.f32.mrb[8].mxu0 }
 0x300   : > { %v7609_v13 = vmax.f32 %v7607_v28, %v7608_v25  ;;  %v10723_v54 = vadd.f32 %v10545_v6, %v13015_v12  ;;  %v7061_v16 = vpop.f32.mrb[9].mxu0  ;;  %v7538_v12 = vmax.f32 %v7466_v3, 0.0 }
 0x301   : > { %7714 = vst.msk [vmem:[#allocation3 + $0x10] sm:$0xff] %vm7603_vm2, %v7612_v46  ;;  %v10724_v24 = vadd.f32 %v7061_v16, %v13017_v14  ;;  %v7537_v34 = vmax.f32 %v7465_v36, 0.0 }
 0x302   : > { %7713 = vst.msk [vmem:[#allocation3 + $0x8] sm:$0xff] %vm7603_vm2, %v7609_v13  ;;  %v7468_v44 = vadd.f32 %v10723_v54, %v13074_v49  ;;  %v7616_v61 = vsel %vm7603_vm2, %v7538_v12, -inf }
 0x303   : > { %v7467_v60 = vadd.f32 %v10724_v24, %v13074_v49  ;;  %v10548_v7 = vpop.f32.mrb[10].mxu0  ;;  %v7613_v41 = vsel %vm7603_vm2, %v7537_v34, -inf }
 0x304   : > { %v7540_v21 = vmax.f32 %v7468_v44, 0.0  ;;  %v10725_v19 = vadd.f32 %v10548_v7, %v13019_v26  ;;  %v7071_v63 = vpop.f32.mrb[11].mxu0 }
 0x305   : > { %v10726_v39 = vadd.f32 %v7071_v63, %v13021_v9  ;;  %v7539_v10 = vmax.f32 %v7467_v60, 0.0 }
 0x306   : > { %v7614_v14 = vsel %vm7603_vm2, %v7540_v21, -inf  ;;  %v7470_v40 = vadd.f32 %v10725_v19, %v13074_v49 }
 0x307   : > { %v7615_v43 = vmax.f32 %v7613_v41, %v7614_v14  ;;  %v7469_v45 = vadd.f32 %v10726_v39, %v13074_v49  ;;  %v10551_v47 = vpop.f32.mrb[12].mxu0 }
 0x308   : > { %v7750_v51 = vld [vmem:[#allocation3 + $0x10] ss:$2 sm:$0xf]  ;;  %v7798_v56 = vld [vmem:[#allocation3 + $0x11] ss:$2 sm:$0xf]  ;;  %v10727_v26 = vadd.f32 %v10551_v47, %v13023_v31 }
 0x309   : > { %v7844_v59 = vmax.f32 %v7750_v51, %v7798_v56  ;;  %v7748_v62 = vld [vmem:[#allocation3] ss:$2 sm:$0xff]  ;;  %v7796_v9 = vld [vmem:[#allocation3 + $0x1] ss:$2 sm:$0xff]  ;;  %7715 = vst.msk [vmem:[#allocation3 + $0x18] sm:$0xff] %vm7603_vm2, %v7615_v43  ;;  %v7542_v0 = vmax.f32 %v7470_v40, 0.0 }
 0x30a   : > { %v7541_v2 = vmax.f32 %v7469_v45, 0.0  ;;  %v7843_v5 = vmax.f32 %v7748_v62, %v7796_v9  ;;  %v7619_v31 = vsel %vm7603_vm2, %v7539_v10, -inf  ;;  %v7081_v11 = vpop.f32.mrb[13].mxu0 }
 0x30b   : > { %v8759_v17 = vpack.c.bf16 %v7844_v59, %v7844_v59  ;;  %v7620_v27 = vsel %vm7603_vm2, %v7542_v0, -inf  ;;  %v10728_v46 = vadd.f32 %v7081_v11, %v13025_v57  ;;  %v10554_v25 = vpop.f32.mrb[14].mxu0  ;;  %v7472_v57 = vadd.f32 %v10727_v26, %v13074_v49 }
 0x30c   : > { %v7617_v28 = vsel %vm7603_vm2, %v7541_v2, -inf  ;;  %v8758_v36 = vpack.c.bf16 %v7843_v5, %v7843_v5  ;;  %v7621_v6 = vmax.f32 %v7619_v31, %v7620_v27  ;;  %v7091_v54 = vpop.f32.mrb[15].mxu0  ;;  %v10729_v3 = vadd.f32 %v10554_v25, %v13027_v58 }
 0x30d   : > { %v7618_v13 = vmax.f32 %v7616_v61, %v7617_v28  ;;  %7966 = vst.msk [vmem:[%s13109_s19 + $0x4] sm:$0x3] %vm7965_vm3, %v8759_v17  ;;  %v7471_v16 = vadd.f32 %v10728_v46, %v13074_v49  ;;  %v10730_v24 = vadd.f32 %v7091_v54, %v13029_v53  ;;  %v7544_v39 = vmax.f32 %v7472_v57, 0.0 }
 0x30e   : > { %7964 = vst.msk [vmem:[%s13109_s19] sm:$0xf] %vm7963_vm4, %v8758_v36  ;;  %v7474_v44 = vadd.f32 %v10729_v3, %v13074_v49 }
 0x30f   : > { %7717 = vst.msk [vmem:[#allocation3 + $0x28] sm:$0xff] %vm7603_vm2, %v7621_v6  ;;  %7716 = vst.msk [vmem:[#allocation3 + $0x20] sm:$0xff] %vm7603_vm2, %v7618_v13  ;;  %v7543_v34 = vmax.f32 %v7471_v16, 0.0  ;;  %v7473_v60 = vadd.f32 %v10730_v24, %v13074_v49  ;;  %v10557_v7 = vpop.f32.mrb[16].mxu0  ;;  %v7625_v17 = vsel %vm7603_vm2, %v7544_v39, -inf }
 0x310   : > { %v10731_v21 = vadd.f32 %v10557_v7, %v13031_v20  ;;  %v7101_v19 = vpop.f32.mrb[17].mxu0  ;;  %v7546_v58 = vmax.f32 %v7474_v44, 0.0 }
 0x311   : > { %v7545_v63 = vmax.f32 %v7473_v60, 0.0  ;;  %v10732_v53 = vadd.f32 %v7101_v19, %v13033_v23  ;;  %v7622_v41 = vsel %vm7603_vm2, %v7543_v34, -inf }
 0x312   : > { %v7476_v12 = vadd.f32 %v10731_v21, %v13074_v49  ;;  %v7623_v14 = vsel %vm7603_vm2, %v7546_v58, -inf }
 0x313   : > { %v7475_v10 = vadd.f32 %v10732_v53, %v13074_v49  ;;  %v10560_v40 = vpop.f32.mrb[18].mxu0  ;;  %v7624_v43 = vmax.f32 %v7622_v41, %v7623_v14  ;;  %v7628_v45 = vsel %vm7603_vm2, %v7545_v63, -inf }
 0x314   : > { %v7548_v47 = vmax.f32 %v7476_v12, 0.0  ;;  %v10733_v20 = vadd.f32 %v10560_v40, %v13035_v29  ;;  %v7111_v51 = vpop.f32.mrb[19].mxu0 }
 0x315   : > { %v10734_v23 = vadd.f32 %v7111_v51, %v13037_v33  ;;  %7718 = vst.msk [vmem:[#allocation3 + $0x30] sm:$0xff] %vm7603_vm2, %v7624_v43  ;;  %v7547_v2 = vmax.f32 %v7475_v10, 0.0 }
 0x316   : > { %v7754_v56 = vld [vmem:[#allocation3 + $0x28] ss:$2 sm:$0xf]  ;;  %v7802_v26 = vld [vmem:[#allocation3 + $0x29] ss:$2 sm:$0xf]  ;;  %v7478_v36 = vadd.f32 %v10733_v20, %v13074_v49 }
 0x317   : > { %v7846_v59 = vmax.f32 %v7754_v56, %v7802_v26  ;;  %v7752_v62 = vld [vmem:[#allocation3 + $0x18] ss:$2 sm:$0xff]  ;;  %v7800_v9 = vld [vmem:[#allocation3 + $0x19] ss:$2 sm:$0xff]  ;;  %v7629_v0 = vsel %vm7603_vm2, %v7548_v47, -inf  ;;  %v7477_v31 = vadd.f32 %v10734_v23, %v13074_v49  ;;  %v10563_v29 = vpop.f32.mrb[20].mxu0 }
 0x318   : > { %v7845_v5 = vmax.f32 %v7752_v62, %v7800_v9  ;;  %v7630_v61 = vmax.f32 %v7628_v45, %v7629_v0  ;;  %v7626_v33 = vsel %vm7603_vm2, %v7547_v2, -inf  ;;  %v10735_v27 = vadd.f32 %v10563_v29, %v13039_v35  ;;  %v7121_v28 = vpop.f32.mrb[21].mxu0 }
 0x319   : > { %v8761_v11 = vpack.c.bf16 %v7846_v59, %v7846_v59  ;;  %v7627_v25 = vmax.f32 %v7625_v17, %v7626_v33  ;;  %v10736_v6 = vadd.f32 %v7121_v28, %v13041_v37  ;;  %v7549_v13 = vmax.f32 %v7477_v31, 0.0 }
 0x31a   : > { %v8760_v46 = vpack.c.bf16 %v7845_v5, %v7845_v5  ;;  %7720 = vst.msk [vmem:[#allocation3 + $0x40] sm:$0xff] %vm7603_vm2, %v7630_v61  ;;  %v7480_v54 = vadd.f32 %v10735_v27, %v13074_v49  ;;  %v7550_v34 = vmax.f32 %v7478_v36, 0.0 }
 0x31b   : > { %7968 = vst.msk [vmem:[%s13109_s19 + $0xc] sm:$0x3] %vm7965_vm3, %v8761_v11  ;;  %v7479_v35 = vadd.f32 %v10736_v6, %v13074_v49  ;;  %v10566_v16 = vpop.f32.mrb[22].mxu0  ;;  %v7631_v37 = vsel %vm7603_vm2, %v7549_v13, -inf }
 0x31c   : > { %7967 = vst.msk [vmem:[%s13109_s19 + $0x8] sm:$0xf] %vm7963_vm4, %v8760_v46  ;;  %v7552_v3 = vmax.f32 %v7480_v54, 0.0  ;;  %v10737_v24 = vadd.f32 %v10566_v16, %v13043_v32  ;;  %v7131_v57 = vpop.f32.mrb[23].mxu0  ;;  %v7634_v43 = vsel %vm7603_vm2, %v7550_v34, -inf }
 0x31d   : > { %7719 = vst.msk [vmem:[#allocation3 + $0x38] sm:$0xff] %vm7603_vm2, %v7627_v25  ;;  %v10738_v44 = vadd.f32 %v7131_v57, %v13045_v38  ;;  %v7551_v7 = vmax.f32 %v7479_v35, 0.0 }
 0x31e   : > { %v7632_v60 = vsel %vm7603_vm2, %v7552_v3, -inf  ;;  %v7482_v21 = vadd.f32 %v10737_v24, %v13074_v49 }
 0x31f   : > { %v7633_v19 = vmax.f32 %v7631_v37, %v7632_v60  ;;  %v7481_v58 = vadd.f32 %v10738_v44, %v13074_v49  ;;  %v10569_v63 = vpop.f32.mrb[24].mxu0  ;;  %v7637_v45 = vsel %vm7603_vm2, %v7551_v7, -inf }
 0x320   : > { %v10739_v39 = vadd.f32 %v10569_v63, %v13047_v1  ;;  %v7554_v41 = vmax.f32 %v7482_v21, 0.0  ;;  %v7141_v14 = vpop.f32.mrb[25].mxu0 }
 0x321   : > { %v7758_v53 = vld [vmem:[#allocation3 + $0x40] ss:$2 sm:$0xf]  ;;  %v7806_v12 = vld [vmem:[#allocation3 + $0x41] ss:$2 sm:$0xf]  ;;  %v10740_v47 = vadd.f32 %v7141_v14, %v13049_v4 }
 0x322   : > { %v7848_v32 = vmax.f32 %v7758_v53, %v7806_v12  ;;  %7721 = vst.msk [vmem:[#allocation3 + $0x48] sm:$0xff] %vm7603_vm2, %v7633_v19  ;;  %v7553_v38 = vmax.f32 %v7481_v58, 0.0  ;;  %v7638_v1 = vsel %vm7603_vm2, %v7554_v41, -inf  ;;  %v7484_v5 = vadd.f32 %v10739_v39, %v13074_v49 }
 0x323   : > { %v10572_v26 = vpop.f32.mrb[26].mxu0  ;;  %v7639_v23 = vmax.f32 %v7637_v45, %v7638_v1  ;;  %v7483_v62 = vadd.f32 %v10740_v47, %v13074_v49 }
 0x324   : > { %v7756_v10 = vld [vmem:[#allocation3 + $0x30] ss:$2 sm:$0xff]  ;;  %v7804_v40 = vld [vmem:[#allocation3 + $0x31] ss:$2 sm:$0xff]  ;;  %v8763_v20 = vpack.c.bf16 %v7848_v32, %v7848_v32  ;;  %v7635_v56 = vsel %vm7603_vm2, %v7553_v38, -inf  ;;  %v7151_v9 = vpop.f32.mrb[27].mxu0  ;;  %v10741_v2 = vadd.f32 %v10572_v26, %v13051_v18 }
 0x325   : > { %v7847_v51 = vmax.f32 %v7756_v10, %v7804_v40  ;;  %v7636_v59 = vmax.f32 %v7634_v43, %v7635_v56  ;;  %v10742_v4 = vadd.f32 %v7151_v9, %v13053_v22  ;;  %7723 = vst.msk [vmem:[#allocation3 + $0x58] sm:$0xff] %vm7603_vm2, %v7639_v23  ;;  %v7555_v61 = vmax.f32 %v7483_v62, 0.0 }
 0x326   : > { %7970 = vst.msk [vmem:[%s13109_s19 + $0x14] sm:$0x3] %vm7965_vm3, %v8763_v20  ;;  %v7486_v31 = vadd.f32 %v10741_v2, %v13074_v49  ;;  %v7556_v46 = vmax.f32 %v7484_v5, 0.0 }
 0x327   : > { %v8762_v0 = vpack.c.bf16 %v7847_v51, %v7847_v51  ;;  %7722 = vst.msk [vmem:[#allocation3 + $0x50] sm:$0xff] %vm7603_vm2, %v7636_v59  ;;  %v7485_v29 = vadd.f32 %v10742_v4, %v13074_v49  ;;  %v10575_v11 = vpop.f32.mrb[28].mxu0  ;;  %v7640_v25 = vsel %vm7603_vm2, %v7555_v61, -inf }
 0x328   : > { %v10743_v17 = vadd.f32 %v10575_v11, %v13055_v30  ;;  %v7161_v33 = vpop.f32.mrb[29].mxu0  ;;  %v7558_v18 = vmax.f32 %v7486_v31, 0.0  ;;  %v7643_v53 = vsel %vm7603_vm2, %v7556_v46, -inf }
 0x329   : > { %7969 = vst.msk [vmem:[%s13109_s19 + $0x10] sm:$0xf] %vm7963_vm4, %v8762_v0  ;;  %v7557_v27 = vmax.f32 %v7485_v29, 0.0  ;;  %v10744_v22 = vadd.f32 %v7161_v33, %v13057_v15 }
 0x32a   : > { %v7488_v28 = vadd.f32 %v10743_v17, %v13074_v49  ;;  %v7641_v36 = vsel %vm7603_vm2, %v7558_v18, -inf }
 0x32b   : > { %v7487_v6 = vadd.f32 %v10744_v22, %v13074_v49  ;;  %v10578_v13 = vpop.f32.mrb[30].mxu0  ;;  %v7642_v54 = vmax.f32 %v7640_v25, %v7641_v36  ;;  %v7646_v35 = vsel %vm7603_vm2, %v7557_v27, -inf }
 0x32c   : > { %v7560_v16 = vmax.f32 %v7488_v28, 0.0  ;;  %v10745_v30 = vadd.f32 %v10578_v13, %v13059_v42  ;;  %v7171_v3 = vpop.f32.mrb[31].mxu0  ;;  %v7762_v24 = vld [vmem:[#allocation3 + $0x58] ss:$2 sm:$0xf] }
 0x32d   : > { %v7810_v57 = vld [vmem:[#allocation3 + $0x59] ss:$2 sm:$0xf]  ;;  %v10746_v15 = vadd.f32 %v7171_v3, %v13061_v8  ;;  %7724 = vst.msk [vmem:[#allocation3 + $0x60] sm:$0xff] %vm7603_vm2, %v7642_v54  ;;  %v7559_v7 = vmax.f32 %v7487_v6, 0.0 }
 0x32e   : > { %v7850_v34 = vmax.f32 %v7762_v24, %v7810_v57  ;;  %v7760_v44 = vld [vmem:[#allocation3 + $0x48] ss:$2 sm:$0xff]  ;;  %v7808_v37 = vld [vmem:[#allocation3 + $0x49] ss:$2 sm:$0xff]  ;;  %v7647_v60 = vsel %vm7603_vm2, %v7560_v16, -inf  ;;  %v7490_v38 = vadd.f32 %v10745_v30, %v13074_v49 }
 0x32f   : > { %v7849_v21 = vmax.f32 %v7760_v44, %v7808_v37  ;;  %v7648_v19 = vmax.f32 %v7646_v35, %v7647_v60  ;;  %v7489_v58 = vadd.f32 %v10746_v15, %v13074_v49  ;;  %v10581_v42 = vpop.f32.mrb[32].mxu0  ;;  %v7644_v8 = vsel %vm7603_vm2, %v7559_v7, -inf }
 0x330   : > { %v8765_v63 = vpack.c.bf16 %v7850_v34, %v7850_v34  ;;  %v10747_v12 = vadd.f32 %v10581_v42, %v13063_v48  ;;  %v7181_v39 = vpop.f32.mrb[33].mxu0  ;;  %v7645_v41 = vmax.f32 %v7643_v53, %v7644_v8  ;;  %v7562_v51 = vmax.f32 %v7490_v38, 0.0 }
 0x331   : > { %v8764_v32 = vpack.c.bf16 %v7849_v21, %v7849_v21  ;;  %7726 = vst.msk [vmem:[#allocation3 + $0x70] sm:$0xff] %vm7603_vm2, %v7648_v19  ;;  %v10748_v14 = vadd.f32 %v7181_v39, %v13065_v50  ;;  %v7561_v10 = vmax.f32 %v7489_v58, 0.0 }
 0x332   : > { %7972 = vst.msk [vmem:[%s13109_s19 + $0x1c] sm:$0x3] %vm7965_vm3, %v8765_v63  ;;  %v7492_v40 = vadd.f32 %v10747_v12, %v13074_v49  ;;  %v7652_v33 = vsel %vm7603_vm2, %v7562_v51, -inf }
 0x333   : > { %7971 = vst.msk [vmem:[%s13109_s19 + $0x18] sm:$0xf] %vm7963_vm4, %v8764_v32  ;;  %v7491_v48 = vadd.f32 %v10748_v14, %v13074_v49  ;;  %v10584_v43 = vpop.f32.mrb[34].mxu0  ;;  %v7649_v50 = vsel %vm7603_vm2, %v7561_v10, -inf }
 0x334   : > { %7725 = vst.msk [vmem:[#allocation3 + $0x68] sm:$0xff] %vm7603_vm2, %v7645_v41  ;;  %v7564_v45 = vmax.f32 %v7492_v40, 0.0  ;;  %v10749_v47 = vadd.f32 %v10584_v43, %v13067_v52  ;;  %v7191_v20 = vpop.f32.mrb[35].mxu0 }
 0x335   : > { %v10750_v1 = vadd.f32 %v7191_v20, %v13069_v55  ;;  %v7563_v26 = vmax.f32 %v7491_v48, 0.0 }
 0x336   : > { %v7650_v56 = vsel %vm7603_vm2, %v7564_v45, -inf  ;;  %v7494_v23 = vadd.f32 %v10749_v47, %v13074_v49  ;;  %v10123_v9 = vpop.f32.mrb[36].mxu1 }
 0x337   : > { %v7651_v59 = vmax.f32 %v7649_v50, %v7650_v56  ;;  %v7493_v62 = vadd.f32 %v10750_v1, %v13074_v49  ;;  %v10587_v0 = vpop.f32.mrb[36].mxu0  ;;  %v4040_v31 = vpop.f32.mrb[37].mxu1  ;;  %v7655_v18 = vsel %vm7603_vm2, %v7563_v26, -inf }
 0x338   : > { %v7766_v2 = vld [vmem:[#allocation3 + $0x70] ss:$2 sm:$0xf]  ;;  %v7814_v4 = vld [vmem:[#allocation3 + $0x71] ss:$2 sm:$0xf]  ;;  %v10751_v5 = vadd.f32 %v10587_v0, %v10123_v9 }
 0x339   : > { %v7852_v52 = vmax.f32 %v7766_v2, %v7814_v4  ;;  %7727 = vst.msk [vmem:[#allocation3 + $0x78] sm:$0xff] %vm7603_vm2, %v7651_v59  ;;  %v7566_v61 = vmax.f32 %v7494_v23, 0.0  ;;  %v7565_v55 = vmax.f32 %v7493_v62, 0.0  ;;  %v7201_v29 = vpop.f32.mrb[37].mxu0 }
 0x33a   : > { %v10752_v27 = vadd.f32 %v7201_v29, %v4040_v31  ;;  %v10126_v36 = vpop.f32.mrb[38].mxu1  ;;  %v7496_v15 = vadd.f32 %v10751_v5, %v13074_v49 }
 0x33b   : > { %v7764_v11 = vld [vmem:[#allocation3 + $0x60] ss:$2 sm:$0xff]  ;;  %v7812_v17 = vld [vmem:[#allocation3 + $0x61] ss:$2 sm:$0xff]  ;;  %v8767_v22 = vpack.c.bf16 %v7852_v52, %v7852_v52  ;;  %v7656_v46 = vsel %vm7603_vm2, %v7566_v61, -inf  ;;  %v7653_v25 = vsel %vm7603_vm2, %v7565_v55, -inf }
 0x33c   : > { %v7851_v28 = vmax.f32 %v7764_v11, %v7812_v17  ;;  %v10590_v6 = vpop.f32.mrb[38].mxu0  ;;  %v7657_v13 = vmax.f32 %v7655_v18, %v7656_v46  ;;  %v7654_v54 = vmax.f32 %v7652_v33, %v7653_v25  ;;  %v7495_v35 = vadd.f32 %v10752_v27, %v13074_v49  ;;  %v4050_v16 = vpop.f32.mrb[39].mxu1 }
 0x33d   : > { %v7211_v30 = vpop.f32.mrb[39].mxu0  ;;  %7974 = vst.msk [vmem:[%s13109_s19 + $0x24] sm:$0x3] %vm7965_vm3, %v8767_v22  ;;  %v10753_v24 = vadd.f32 %v10590_v6, %v10126_v36  ;;  %v7568_v12 = vmax.f32 %v7496_v15, 0.0 }
 0x33e   : > { %v8766_v3 = vpack.c.bf16 %v7851_v28, %v7851_v28  ;;  %v10754_v57 = vadd.f32 %v7211_v30, %v4050_v16  ;;  %7729 = vst.msk [vmem:[#allocation3 + $0x88] sm:$0xff] %vm7603_vm2, %v7657_v13  ;;  %7728 = vst.msk [vmem:[#allocation3 + $0x80] sm:$0xff] %vm7603_vm2, %v7654_v54  ;;  %v7567_v34 = vmax.f32 %v7495_v35, 0.0  ;;  %v10129_v60 = vpop.f32.mrb[40].mxu1 }
 0x33f   : > { %v7498_v44 = vadd.f32 %v10753_v24, %v13074_v49  ;;  %v10593_v7 = vpop.f32.mrb[40].mxu0  ;;  %v4060_v19 = vpop.f32.mrb[41].mxu1  ;;  %v7661_v52 = vsel %vm7603_vm2, %v7568_v12, -inf }
 0x340   : > { %7973 = vst.msk [vmem:[%s13109_s19 + $0x20] sm:$0xf] %vm7963_vm4, %v8766_v3  ;;  %v7497_v37 = vadd.f32 %v10754_v57, %v13074_v49  ;;  %v10755_v21 = vadd.f32 %v10593_v7, %v10129_v60  ;;  %v7221_v58 = vpop.f32.mrb[41].mxu0  ;;  %v7658_v39 = vsel %vm7603_vm2, %v7567_v34, -inf }
 0x341   : > { %v7570_v42 = vmax.f32 %v7498_v44, 0.0  ;;  %v10756_v53 = vadd.f32 %v7221_v58, %v4060_v19 }
 0x342   : > { %v7569_v63 = vmax.f32 %v7497_v37, 0.0  ;;  %v7500_v8 = vadd.f32 %v10755_v21, %v13074_v49  ;;  %v10132_v38 = vpop.f32.mrb[42].mxu1 }
 0x343   : > { %v7659_v32 = vsel %vm7603_vm2, %v7570_v42, -inf  ;;  %v7499_v41 = vadd.f32 %v10756_v53, %v13074_v49  ;;  %v10596_v14 = vpop.f32.mrb[42].mxu0  ;;  %v4070_v45 = vpop.f32.mrb[43].mxu1 }
 0x344   : > { %v7660_v10 = vmax.f32 %v7658_v39, %v7659_v32  ;;  %v7664_v40 = vsel %vm7603_vm2, %v7569_v63, -inf  ;;  %v7572_v48 = vmax.f32 %v7500_v8, 0.0  ;;  %v10757_v43 = vadd.f32 %v10596_v14, %v10132_v38  ;;  %v7231_v47 = vpop.f32.mrb[43].mxu0 }
 0x345   : > { %v7770_v20 = vld [vmem:[#allocation3 + $0x88] ss:$2 sm:$0xf]  ;;  %v7818_v51 = vld [vmem:[#allocation3 + $0x89] ss:$2 sm:$0xf]  ;;  %v10758_v1 = vadd.f32 %v7231_v47, %v4070_v45 }
 0x346   : > { %v7854_v50 = vmax.f32 %v7770_v20, %v7818_v51  ;;  %v7768_v56 = vld [vmem:[#allocation3 + $0x78] ss:$2 sm:$0xff]  ;;  %v7816_v26 = vld [vmem:[#allocation3 + $0x79] ss:$2 sm:$0xff]  ;;  %7730 = vst.msk [vmem:[#allocation3 + $0x90] sm:$0xff] %vm7603_vm2, %v7660_v10  ;;  %v7665_v23 = vsel %vm7603_vm2, %v7572_v48, -inf  ;;  %v7502_v33 = vadd.f32 %v10757_v43, %v13074_v49 }
 0x347   : > { %v7571_v59 = vmax.f32 %v7499_v41, 0.0  ;;  %v7853_v62 = vmax.f32 %v7768_v56, %v7816_v26  ;;  %v7666_v9 = vmax.f32 %v7664_v40, %v7665_v23  ;;  %v7501_v0 = vadd.f32 %v10758_v1, %v13074_v49  ;;  %v10135_v2 = vpop.f32.mrb[44].mxu1  ;;  %v10599_v4 = vpop.f32.mrb[44].mxu0 }
 0x348   : > { %v8769_v5 = vpack.c.bf16 %v7854_v50, %v7854_v50  ;;  %v10759_v55 = vadd.f32 %v10599_v4, %v10135_v2  ;;  %v4080_v31 = vpop.f32.mrb[45].mxu1  ;;  %v7241_v29 = vpop.f32.mrb[45].mxu0  ;;  %v7574_v35 = vmax.f32 %v7502_v33, 0.0 }
 0x349   : > { %v7662_v61 = vsel %vm7603_vm2, %v7571_v59, -inf  ;;  %v8768_v11 = vpack.c.bf16 %v7853_v62, %v7853_v62  ;;  %7732 = vst.msk [vmem:[#allocation3 + $0xa0] sm:$0xff] %vm7603_vm2, %v7666_v9  ;;  %v10760_v18 = vadd.f32 %v7241_v29, %v4080_v31  ;;  %v7573_v27 = vmax.f32 %v7501_v0, 0.0 }
 0x34a   : > { %v7663_v17 = vmax.f32 %v7661_v52, %v7662_v61  ;;  %7976 = vst.msk [vmem:[%s13109_s19 + $0x2c] sm:$0x3] %vm7965_vm3, %v8769_v5  ;;  %v7504_v22 = vadd.f32 %v10759_v55, %v13074_v49  ;;  %v10138_v46 = vpop.f32.mrb[46].mxu1  ;;  %v7670_v39 = vsel %vm7603_vm2, %v7574_v35, -inf }
 0x34b   : > { %7975 = vst.msk [vmem:[%s13109_s19 + $0x28] sm:$0xf] %vm7963_vm4, %v8768_v11  ;;  %v7503_v28 = vadd.f32 %v10760_v18, %v13074_v49  ;;  %v10602_v25 = vpop.f32.mrb[46].mxu0  ;;  %v4090_v13 = vpop.f32.mrb[47].mxu1  ;;  %v7667_v30 = vsel %vm7603_vm2, %v7573_v27, -inf }
 0x34c   : > { %7731 = vst.msk [vmem:[#allocation3 + $0x98] sm:$0xff] %vm7603_vm2, %v7663_v17  ;;  %v7576_v36 = vmax.f32 %v7504_v22, 0.0  ;;  %v10761_v6 = vadd.f32 %v10602_v25, %v10138_v46  ;;  %v7251_v54 = vpop.f32.mrb[47].mxu0 }
 0x34d   : > { %v10762_v16 = vadd.f32 %v7251_v54, %v4090_v13  ;;  %v7575_v24 = vmax.f32 %v7503_v28, 0.0 }
 0x34e   : > { %v7668_v3 = vsel %vm7603_vm2, %v7576_v36, -inf  ;;  %v7506_v57 = vadd.f32 %v10761_v6, %v13074_v49  ;;  %v10141_v44 = vpop.f32.mrb[48].mxu1 }
 0x34f   : > { %v7669_v15 = vmax.f32 %v7667_v30, %v7668_v3  ;;  %v7505_v34 = vadd.f32 %v10762_v16, %v13074_v49  ;;  %v10605_v37 = vpop.f32.mrb[48].mxu0  ;;  %v4100_v63 = vpop.f32.mrb[49].mxu1  ;;  %v7673_v32 = vsel %vm7603_vm2, %v7575_v24, -inf }
 0x350   : > { %v7774_v60 = vld [vmem:[#allocation3 + $0xa0] ss:$2 sm:$0xf]  ;;  %v7822_v7 = vld [vmem:[#allocation3 + $0xa1] ss:$2 sm:$0xf]  ;;  %v10763_v21 = vadd.f32 %v10605_v37, %v10141_v44 }
 0x351   : > { %v7856_v19 = vmax.f32 %v7774_v60, %v7822_v7  ;;  %7733 = vst.msk [vmem:[#allocation3 + $0xa8] sm:$0xff] %vm7603_vm2, %v7669_v15  ;;  %v7578_v58 = vmax.f32 %v7506_v57, 0.0  ;;  %v7577_v42 = vmax.f32 %v7505_v34, 0.0  ;;  %v7261_v53 = vpop.f32.mrb[49].mxu0 }
 0x352   : > { %v10764_v41 = vadd.f32 %v7261_v53, %v4100_v63  ;;  %v10144_v48 = vpop.f32.mrb[50].mxu1  ;;  %v7508_v23 = vadd.f32 %v10763_v21, %v13074_v49 }
 0x353   : > { %v7772_v8 = vld [vmem:[#allocation3 + $0x90] ss:$2 sm:$0xff]  ;;  %v7820_v12 = vld [vmem:[#allocation3 + $0x91] ss:$2 sm:$0xff]  ;;  %v8771_v38 = vpack.c.bf16 %v7856_v19, %v7856_v19  ;;  %v7674_v10 = vsel %vm7603_vm2, %v7578_v58, -inf  ;;  %v7671_v40 = vsel %vm7603_vm2, %v7577_v42, -inf }
 0x354   : > { %v7855_v14 = vmax.f32 %v7772_v8, %v7820_v12  ;;  %v10608_v43 = vpop.f32.mrb[50].mxu0  ;;  %v7675_v45 = vmax.f32 %v7673_v32, %v7674_v10  ;;  %v7672_v47 = vmax.f32 %v7670_v39, %v7671_v40  ;;  %v7507_v20 = vadd.f32 %v10764_v41, %v13074_v49  ;;  %v4110_v51 = vpop.f32.mrb[51].mxu1 }
 0x355   : > { %v7271_v1 = vpop.f32.mrb[51].mxu0  ;;  %7978 = vst.msk [vmem:[%s13109_s19 + $0x34] sm:$0x3] %vm7965_vm3, %v8771_v38  ;;  %v10765_v56 = vadd.f32 %v10608_v43, %v10144_v48  ;;  %v7580_v11 = vmax.f32 %v7508_v23, 0.0 }
 0x356   : > { %v8770_v50 = vpack.c.bf16 %v7855_v14, %v7855_v14  ;;  %v10766_v26 = vadd.f32 %v7271_v1, %v4110_v51  ;;  %7735 = vst.msk [vmem:[#allocation3 + $0xb8] sm:$0xff] %vm7603_vm2, %v7675_v45  ;;  %7734 = vst.msk [vmem:[#allocation3 + $0xb0] sm:$0xff] %vm7603_vm2, %v7672_v47  ;;  %v7579_v59 = vmax.f32 %v7507_v20, 0.0  ;;  %v10147_v0 = vpop.f32.mrb[52].mxu1 }
 0x357   : > { %v7510_v62 = vadd.f32 %v10765_v56, %v13074_v49  ;;  %v10611_v2 = vpop.f32.mrb[52].mxu0  ;;  %v4120_v5 = vpop.f32.mrb[53].mxu1  ;;  %v7679_v19 = vsel %vm7603_vm2, %v7580_v11, -inf }
 0x358   : > { %7977 = vst.msk [vmem:[%s13109_s19 + $0x30] sm:$0xf] %vm7963_vm4, %v8770_v50  ;;  %v7509_v9 = vadd.f32 %v10766_v26, %v13074_v49  ;;  %v10767_v4 = vadd.f32 %v10611_v2, %v10147_v0  ;;  %v7281_v52 = vpop.f32.mrb[53].mxu0  ;;  %v7676_v17 = vsel %vm7603_vm2, %v7579_v59, -inf }
 0x359   : > { %v7582_v61 = vmax.f32 %v7510_v62, 0.0  ;;  %v10768_v31 = vadd.f32 %v7281_v52, %v4120_v5 }
 0x35a   : > { %v7581_v55 = vmax.f32 %v7509_v9, 0.0  ;;  %v7512_v29 = vadd.f32 %v10767_v4, %v13074_v49  ;;  %v10150_v27 = vpop.f32.mrb[54].mxu1 }
 0x35b   : > { %v7677_v33 = vsel %vm7603_vm2, %v7582_v61, -inf  ;;  %v7511_v18 = vadd.f32 %v10768_v31, %v13074_v49  ;;  %v10614_v22 = vpop.f32.mrb[54].mxu0  ;;  %v4130_v6 = vpop.f32.mrb[55].mxu1 }
 0x35c   : > { %v7678_v28 = vmax.f32 %v7676_v17, %v7677_v33  ;;  %v7682_v46 = vsel %vm7603_vm2, %v7581_v55, -inf  ;;  %v7584_v25 = vmax.f32 %v7512_v29, 0.0  ;;  %v10769_v36 = vadd.f32 %v10614_v22, %v10150_v27  ;;  %v7291_v13 = vpop.f32.mrb[55].mxu0 }
 0x35d   : > { %v7778_v54 = vld [vmem:[#allocation3 + $0xb8] ss:$2 sm:$0xf]  ;;  %v7826_v35 = vld [vmem:[#allocation3 + $0xb9] ss:$2 sm:$0xf]  ;;  %v10770_v16 = vadd.f32 %v7291_v13, %v4130_v6 }
 0x35e   : > { %v7858_v30 = vmax.f32 %v7778_v54, %v7826_v35  ;;  %v7776_v3 = vld [vmem:[#allocation3 + $0xa8] ss:$2 sm:$0xff]  ;;  %v7824_v24 = vld [vmem:[#allocation3 + $0xa9] ss:$2 sm:$0xff]  ;;  %7736 = vst.msk [vmem:[#allocation3 + $0xc0] sm:$0xff] %vm7603_vm2, %v7678_v28  ;;  %v7683_v57 = vsel %vm7603_vm2, %v7584_v25, -inf  ;;  %v7514_v39 = vadd.f32 %v10769_v36, %v13074_v49 }
 0x35f   : > { %v7583_v15 = vmax.f32 %v7511_v18, 0.0  ;;  %v7857_v34 = vmax.f32 %v7776_v3, %v7824_v24  ;;  %v7684_v44 = vmax.f32 %v7682_v46, %v7683_v57  ;;  %v7513_v37 = vadd.f32 %v10770_v16, %v13074_v49  ;;  %v10153_v60 = vpop.f32.mrb[56].mxu1  ;;  %v10617_v7 = vpop.f32.mrb[56].mxu0 }
 0x360   : > { %v8773_v21 = vpack.c.bf16 %v7858_v30, %v7858_v30  ;;  %v10771_v42 = vadd.f32 %v10617_v7, %v10153_v60  ;;  %v4140_v63 = vpop.f32.mrb[57].mxu1  ;;  %v7301_v53 = vpop.f32.mrb[57].mxu0  ;;  %v7586_v20 = vmax.f32 %v7514_v39, 0.0 }
 0x361   : > { %v7680_v58 = vsel %vm7603_vm2, %v7583_v15, -inf  ;;  %v8772_v8 = vpack.c.bf16 %v7857_v34, %v7857_v34  ;;  %7738 = vst.msk [vmem:[#allocation3 + $0xd0] sm:$0xff] %vm7603_vm2, %v7684_v44  ;;  %v10772_v32 = vadd.f32 %v7301_v53, %v4140_v63  ;;  %v7585_v41 = vmax.f32 %v7513_v37, 0.0 }
 0x362   : > { %v7681_v12 = vmax.f32 %v7679_v19, %v7680_v58  ;;  %7980 = vst.msk [vmem:[%s13109_s19 + $0x3c] sm:$0x3] %vm7965_vm3, %v8773_v21  ;;  %v7516_v38 = vadd.f32 %v10771_v42, %v13074_v49  ;;  %v10156_v10 = vpop.f32.mrb[58].mxu1  ;;  %v7688_v17 = vsel %vm7603_vm2, %v7586_v20, -inf }
 0x363   : > { %7979 = vst.msk [vmem:[%s13109_s19 + $0x38] sm:$0xf] %vm7963_vm4, %v8772_v8  ;;  %v7515_v14 = vadd.f32 %v10772_v32, %v13074_v49  ;;  %v10620_v40 = vpop.f32.mrb[58].mxu0  ;;  %v4150_v45 = vpop.f32.mrb[59].mxu1  ;;  %v7685_v1 = vsel %vm7603_vm2, %v7585_v41, -inf }
 0x364   : > { %7737 = vst.msk [vmem:[#allocation3 + $0xc8] sm:$0xff] %vm7603_vm2, %v7681_v12  ;;  %v7588_v48 = vmax.f32 %v7516_v38, 0.0  ;;  %v10773_v43 = vadd.f32 %v10620_v40, %v10156_v10  ;;  %v7311_v47 = vpop.f32.mrb[59].mxu0 }
 0x365   : > { %v10774_v51 = vadd.f32 %v7311_v47, %v4150_v45  ;;  %v7587_v56 = vmax.f32 %v7515_v14, 0.0 }
 0x366   : > { %v7686_v50 = vsel %vm7603_vm2, %v7588_v48, -inf  ;;  %v7518_v26 = vadd.f32 %v10773_v43, %v13074_v49  ;;  %v10159_v62 = vpop.f32.mrb[60].mxu1 }
 0x367   : > { %v7687_v23 = vmax.f32 %v7685_v1, %v7686_v50  ;;  %v7517_v59 = vadd.f32 %v10774_v51, %v13074_v49  ;;  %v10623_v9 = vpop.f32.mrb[60].mxu0  ;;  %v4160_v55 = vpop.f32.mrb[61].mxu1  ;;  %v7691_v33 = vsel %vm7603_vm2, %v7587_v56, -inf }
 0x368   : > { %v7782_v0 = vld [vmem:[#allocation3 + $0xd0] ss:$2 sm:$0xf]  ;;  %v7830_v2 = vld [vmem:[#allocation3 + $0xd1] ss:$2 sm:$0xf]  ;;  %v10775_v4 = vadd.f32 %v10623_v9, %v10159_v62 }
 0x369   : > { %v7860_v5 = vmax.f32 %v7782_v0, %v7830_v2  ;;  %7739 = vst.msk [vmem:[#allocation3 + $0xd8] sm:$0xff] %vm7603_vm2, %v7687_v23  ;;  %v7590_v52 = vmax.f32 %v7518_v26, 0.0  ;;  %v7589_v61 = vmax.f32 %v7517_v59, 0.0  ;;  %v7321_v31 = vpop.f32.mrb[61].mxu0  ;;  %v11301_v62 = vld [vmem:[%s13340_s2] ss:$0 sm:$0xff] }
 0x36a   : > { %v10776_v18 = vadd.f32 %v7321_v31, %v4160_v55  ;;  %v10162_v25 = vpop.f32.mrb[62].mxu1  ;;  %v7520_v57 = vadd.f32 %v10775_v4, %v13074_v49 }
 0x36b   : > { %v7780_v29 = vld [vmem:[#allocation3 + $0xc0] ss:$2 sm:$0xff]  ;;  %v7828_v11 = vld [vmem:[#allocation3 + $0xc1] ss:$2 sm:$0xff]  ;;  %v8775_v27 = vpack.c.bf16 %v7860_v5, %v7860_v5  ;;  %v7692_v28 = vsel %vm7603_vm2, %v7590_v52, -inf  ;;  %v7689_v46 = vsel %vm7603_vm2, %v7589_v61, -inf }
 0x36c   : > { %v7859_v22 = vmax.f32 %v7780_v29, %v7828_v11  ;;  %v10626_v36 = vpop.f32.mrb[62].mxu0  ;;  %v7693_v6 = vmax.f32 %v7691_v33, %v7692_v28  ;;  %v7690_v13 = vmax.f32 %v7688_v17, %v7689_v46  ;;  %v7519_v54 = vadd.f32 %v10776_v18, %v13074_v49  ;;  %v4170_v35 = vpop.f32.mrb[63].mxu1 }
 0x36d   : > { %v7331_v16 = vpop.f32.mrb[63].mxu0  ;;  %7982 = vst.msk [vmem:[%s13109_s19 + $0x44] sm:$0x3] %vm7965_vm3, %v8775_v27  ;;  %v10777_v3 = vadd.f32 %v10626_v36, %v10162_v25  ;;  %v7592_v8 = vmax.f32 %v7520_v57, 0.0 }
 0x36e   : > { %v8774_v30 = vpack.c.bf16 %v7859_v22, %v7859_v22  ;;  %v10778_v24 = vadd.f32 %v7331_v16, %v4170_v35  ;;  %7741 = vst.msk [vmem:[#allocation3 + $0xe8] sm:$0xff] %vm7603_vm2, %v7693_v6  ;;  %7740 = vst.msk [vmem:[#allocation3 + $0xe0] sm:$0xff] %vm7603_vm2, %v7690_v13  ;;  %v7591_v15 = vmax.f32 %v7519_v54, 0.0  ;;  %v10165_v37 = vpop.f32.mrb[64].mxu1 }
 0x36f   : > { %v7522_v34 = vadd.f32 %v10777_v3, %v13074_v49  ;;  %v10629_v60 = vpop.f32.mrb[64].mxu0  ;;  %v4180_v21 = vpop.f32.mrb[65].mxu1  ;;  %v7697_v5 = vsel %vm7603_vm2, %v7592_v8, -inf }
 0x370   : > { %7981 = vst.msk [vmem:[%s13109_s19 + $0x40] sm:$0xf] %vm7963_vm4, %v8774_v30  ;;  %v7521_v44 = vadd.f32 %v10778_v24, %v13074_v49  ;;  %v10779_v7 = vadd.f32 %v10629_v60, %v10165_v37  ;;  %v7341_v19 = vpop.f32.mrb[65].mxu0  ;;  %v7694_v12 = vsel %vm7603_vm2, %v7591_v15, -inf }
 0x371   : > { %v7594_v58 = vmax.f32 %v7522_v34, 0.0  ;;  %v10780_v63 = vadd.f32 %v7341_v19, %v4180_v21 }
 0x372   : > { %v7593_v42 = vmax.f32 %v7521_v44, 0.0  ;;  %v7524_v53 = vadd.f32 %v10779_v7, %v13074_v49  ;;  %v10168_v41 = vpop.f32.mrb[66].mxu1 }
 0x373   : > { %v7695_v39 = vsel %vm7603_vm2, %v7594_v58, -inf  ;;  %v7523_v32 = vadd.f32 %v10780_v63, %v13074_v49  ;;  %v10632_v38 = vpop.f32.mrb[66].mxu0  ;;  %v4190_v43 = vpop.f32.mrb[67].mxu1 }
 0x374   : > { %v7696_v14 = vmax.f32 %v7694_v12, %v7695_v39  ;;  %v7700_v10 = vsel %vm7603_vm2, %v7593_v42, -inf  ;;  %v7596_v40 = vmax.f32 %v7524_v53, 0.0  ;;  %v10781_v48 = vadd.f32 %v10632_v38, %v10168_v41  ;;  %v7351_v45 = vpop.f32.mrb[67].mxu0 }
 0x375   : > { %v7786_v47 = vld [vmem:[#allocation3 + $0xe8] ss:$2 sm:$0xf]  ;;  %v7834_v20 = vld [vmem:[#allocation3 + $0xe9] ss:$2 sm:$0xf]  ;;  %v10782_v51 = vadd.f32 %v7351_v45, %v4190_v43 }
 0x376   : > { %v7862_v1 = vmax.f32 %v7786_v47, %v7834_v20  ;;  %v7784_v50 = vld [vmem:[#allocation3 + $0xd8] ss:$2 sm:$0xff]  ;;  %v7832_v56 = vld [vmem:[#allocation3 + $0xd9] ss:$2 sm:$0xff]  ;;  %7742 = vst.msk [vmem:[#allocation3 + $0xf0] sm:$0xff] %vm7603_vm2, %v7696_v14  ;;  %v7701_v26 = vsel %vm7603_vm2, %v7596_v40, -inf  ;;  %v7526_v17 = vadd.f32 %v11301_v62, %v10781_v48 }
 0x377   : > { %v7595_v49 = vmax.f32 %v7523_v32, 0.0  ;;  %v7861_v23 = vmax.f32 %v7784_v50, %v7832_v56  ;;  %v7702_v59 = vmax.f32 %v7700_v10, %v7701_v26  ;;  %v7525_v9 = vadd.f32 %v11301_v62, %v10782_v51  ;;  %v10171_v0 = vpop.f32.mrb[68].mxu1  ;;  %v10635_v2 = vpop.f32.mrb[68].mxu0 }
 0x378   : > { %v8777_v4 = vpack.c.bf16 %v7862_v1, %v7862_v1  ;;  %v10783_v61 = vadd.f32 %v10635_v2, %v10171_v0  ;;  %v4200_v55 = vpop.f32.mrb[69].mxu1  ;;  %v7361_v31 = vpop.f32.mrb[69].mxu0  ;;  %v7598_v54 = vmax.f32 %v7526_v17, 0.0 }
 0x379   : > { %v7698_v52 = vsel %vm7603_vm2, %v7595_v49, -inf  ;;  %v8776_v29 = vpack.c.bf16 %v7861_v23, %v7861_v23  ;;  %7744 = vst.msk [vmem:[#allocation3 + $0x100] sm:$0xff] %vm7603_vm2, %v7702_v59  ;;  %v10784_v33 = vadd.f32 %v7361_v31, %v4200_v55  ;;  %v7597_v18 = vmax.f32 %v7525_v9, 0.0 }
 0x37a   : > { %v7699_v11 = vmax.f32 %v7697_v5, %v7698_v52  ;;  %7984 = vst.msk [vmem:[%s13109_s19 + $0x4c] sm:$0x3] %vm7965_vm3, %v8777_v4  ;;  %v7528_v27 = vadd.f32 %v11301_v62, %v10783_v61  ;;  %v10174_v28 = vpop.f32.mrb[70].mxu1  ;;  %v7706_v58 = vsel %vm7603_vm2, %v7598_v54, -inf }
 0x37b   : > { %7983 = vst.msk [vmem:[%s13109_s19 + $0x48] sm:$0xf] %vm7963_vm4, %v8776_v29  ;;  %v7527_v22 = vadd.f32 %v11301_v62, %v10784_v33  ;;  %v10638_v46 = vpop.f32.mrb[70].mxu0  ;;  %v4210_v6 = vpop.f32.mrb[71].mxu1  ;;  %v7703_v16 = vsel %vm7603_vm2, %v7597_v18, -inf }
 0x37c   : > { %7743 = vst.msk [vmem:[#allocation3 + $0xf8] sm:$0xff] %vm7603_vm2, %v7699_v11  ;;  %v7600_v25 = vmax.f32 %v7528_v27, 0.0  ;;  %v10785_v36 = vadd.f32 %v10638_v46, %v10174_v28  ;;  %v7371_v13 = vpop.f32.mrb[71].mxu0 }
 0x37d   : > { %v10786_v35 = vadd.f32 %v7371_v13, %v4210_v6  ;;  %v7599_v3 = vmax.f32 %v7527_v22, 0.0 }
 0x37e   : > { %v7704_v30 = vsel %vm7603_vm2, %v7600_v25, -inf  ;;  %v7530_v24 = vadd.f32 %v11301_v62, %v10785_v36 }
 0x37f   : > { %v7705_v57 = vmax.f32 %v7703_v16, %v7704_v30  ;;  %v7529_v15 = vadd.f32 %v11301_v62, %v10786_v35  ;;  %v7709_v42 = vsel %vm7603_vm2, %v7599_v3, -inf }
 0x380   : > { %v7790_v34 = vld [vmem:[#allocation3 + $0x100] ss:$2 sm:$0xf]  ;;  %v7838_v44 = vld [vmem:[#allocation3 + $0x101] ss:$2 sm:$0xf] }
 0x381   : > { %v7864_v37 = vmax.f32 %v7790_v34, %v7838_v44  ;;  %7745 = vst.msk [vmem:[#allocation3 + $0x108] sm:$0xff] %vm7603_vm2, %v7705_v57  ;;  %v7602_v60 = vmax.f32 %v7530_v24, 0.0  ;;  %v7601_v7 = vmax.f32 %v7529_v15, 0.0 }
 0x383   : > { %v7788_v21 = vld [vmem:[#allocation3 + $0xf0] ss:$2 sm:$0xff]  ;;  %v7836_v19 = vld [vmem:[#allocation3 + $0xf1] ss:$2 sm:$0xff]  ;;  %v8779_v63 = vpack.c.bf16 %v7864_v37, %v7864_v37  ;;  %v7710_v8 = vsel %vm7603_vm2, %v7602_v60, -inf  ;;  %v7707_v12 = vsel %vm7603_vm2, %v7601_v7, -inf }
 0x384   : > { %v7863_v53 = vmax.f32 %v7788_v21, %v7836_v19  ;;  %v7711_v39 = vmax.f32 %v7709_v42, %v7710_v8  ;;  %v7708_v32 = vmax.f32 %v7706_v58, %v7707_v12 }
 0x385   : > { %7986 = vst.msk [vmem:[%s13109_s19 + $0x54] sm:$0x3] %vm7965_vm3, %v8779_v63 }
 0x386   : > { %v8778_v41 = vpack.c.bf16 %v7863_v53, %v7863_v53  ;;  %7747 = vst.msk [vmem:[#allocation3 + $0x118] sm:$0xff] %vm7603_vm2, %v7711_v39  ;;  %7746 = vst.msk [vmem:[#allocation3 + $0x110] sm:$0xff] %vm7603_vm2, %v7708_v32 }
 0x388   : > { %7985 = vst.msk [vmem:[%s13109_s19 + $0x50] sm:$0xf] %vm7963_vm4, %v8778_v41 }
 0x38d   : > { %v7794_v38 = vld [vmem:[#allocation3 + $0x118] ss:$2 sm:$0xf]  ;;  %v7842_v14 = vld [vmem:[#allocation3 + $0x119] ss:$2 sm:$0xf] }
 0x38e   : > { %v7866_v10 = vmax.f32 %v7794_v38, %v7842_v14  ;;  %v7792_v40 = vld [vmem:[#allocation3 + $0x108] ss:$2 sm:$0xff]  ;;  %v7840_v48 = vld [vmem:[#allocation3 + $0x109] ss:$2 sm:$0xff] }
 0x38f   : > { %v7865_v43 = vmax.f32 %v7792_v40, %v7840_v48 }
 0x390   : > { %v8781_v45 = vpack.c.bf16 %v7866_v10, %v7866_v10 }
 0x391   : > { %v8780_v47 = vpack.c.bf16 %v7865_v43, %v7865_v43 }
 0x392   : > { %7988 = vst.msk [vmem:[%s13109_s19 + $0x5c] sm:$0x3] %vm7965_vm3, %v8781_v45 }
 0x393   : > { %7987 = vst.msk [vmem:[%s13109_s19 + $0x58] sm:$0xf] %vm7963_vm4, %v8780_v47 }
 0x394 PF: > { %s13_s12 = sadd.s32 1, %s11308_s12  }
 0x395   : > { %p10_p4 = scmp.ge.s32.totalorder %s13_s12, 4  }
 0x397   :  { %12 = sbr.rel (!%p10_p4) target bundleno = 1 (0x1), region = 119 }

</bundles_post_ra>
